<compile_context>
chip_gen: v7x
topology: tpu7x:2x2x1
jax: 0.10.0
libtpu: 0.0.40
codegen_flags: <defaults>
</compile_context>

<pallas_src>
import jax
import jax.numpy as jnp
import numpy as np
from jax.experimental import pallas as pl
from jax.experimental.pallas import tpu as pltpu

INPUT_SIZE = 3
HIDDEN = 250          # logical hidden size (PyTorch module)
HP = 256              # padded hidden size (multiple of 128 lanes)
OUTPUT_SIZE = 3


def lstm_kernel(x_ref, wih_ref, whh_ref, b_ref, wlin_ref, blin_ref, out_ref):
    """Whole-sequence LSTM forward + linear head in one invocation.

    x_ref   : (seq_len, INPUT_SIZE)       time-major inputs
    wih_ref : (INPUT_SIZE, 4*HP)          gate-stacked (i,f,g,o), 256-aligned,
                                          g-gate pre-scaled by 2
    whh_ref : (HP, 4*HP)                  same layout / scaling
    b_ref   : (1, 4*HP)                   b_ih + b_hh, gate-stacked, g scaled
    wlin_ref: (HP, OUTPUT_SIZE)
    blin_ref: (1, OUTPUT_SIZE)
    out_ref : (1, OUTPUT_SIZE)            prediction[-1]
    """
    seq_len = x_ref.shape[0]
    hp = whh_ref.shape[0]
    g4 = 4 * hp

    # ---- Prologue: time-independent input projection on the VPU. ----------
    # K = INPUT_SIZE = 3, so three broadcast FMAs over (seq_len, 4*HP) beat a
    # padded-depth MXU matmul.  xp stays in vregs (seq_len fully-packed vregs).
    x = x_ref[...]                                       # (seq_len, 3)
    wih = wih_ref[...]                                   # (3, 4*HP)
    xp = jnp.broadcast_to(b_ref[...], (seq_len, g4))     # bias added once
    for k in range(INPUT_SIZE):
        xp = xp + x[:, k:k + 1] * wih[k:k + 1, :]        # (seq_len, 4*HP)

    # ---- Recurrence: fully unrolled; h/c in vregs; one MXU push per step. --
    h = jnp.zeros((1, hp), jnp.float32)
    c = jnp.zeros((1, hp), jnp.float32)
    for t in range(seq_len):
        gates = xp[t:t + 1, :] + jnp.dot(
            h, whh_ref[...], preferred_element_type=jnp.float32)  # (1, 4*HP)
        s = jax.nn.sigmoid(gates)          # one fused EUP pass over all gates
        i = s[:, 0 * hp:1 * hp]
        f = s[:, 1 * hp:2 * hp]
        g = 2.0 * s[:, 2 * hp:3 * hp] - 1.0   # tanh via folded 2x (VPU fixup)
        o = s[:, 3 * hp:4 * hp]
        c = f * c + i * g
        h = o * jnp.tanh(c)

    # ---- Linear head, once, on the last hidden state. ----------------------
    out_ref[...] = (jnp.dot(h, wlin_ref[...],
                            preferred_element_type=jnp.float32)
                    + blin_ref[...])


def lstm_forward(x2d, wih_p, whh_p, b_p, wlin_p, blin_p):
    """x2d: (seq_len, INPUT_SIZE) float32 -> (1, OUTPUT_SIZE) float32."""
    seq_len = x2d.shape[0]
    g4 = whh_p.shape[1]
    return pl.pallas_call(
        lstm_kernel,
        out_shape=jax.ShapeDtypeStruct((1, OUTPUT_SIZE), jnp.float32),
        grid_spec=pltpu.PrefetchScalarGridSpec(
            num_scalar_prefetch=0,
            grid=(1,),
            in_specs=[
                pl.BlockSpec((seq_len, INPUT_SIZE), lambda i: (0, 0)),   # x
                pl.BlockSpec((INPUT_SIZE, g4), lambda i: (0, 0)),        # W_ih
                pl.BlockSpec((HP, g4), lambda i: (0, 0)),                # W_hh
                pl.BlockSpec((1, g4), lambda i: (0, 0)),                 # bias
                pl.BlockSpec((HP, OUTPUT_SIZE), lambda i: (0, 0)),       # W_lin
                pl.BlockSpec((1, OUTPUT_SIZE), lambda i: (0, 0)),        # b_lin
            ],
            out_specs=pl.BlockSpec((1, OUTPUT_SIZE), lambda i: (0, 0)),
        ),
        compiler_params=pltpu.CompilerParams(
            dimension_semantics=("arbitrary",)),
    )(x2d, wih_p, whh_p, b_p, wlin_p, blin_p)


def pack_params(weight_ih, weight_hh, bias_ih, bias_hh, lin_w, lin_b):
    """Repack PyTorch-layout LSTM/Linear params into the padded kernel layout.

    PyTorch gate order along dim 0 of weight_ih/weight_hh is (i, f, g, o).
    Each gate gets its own 256-lane-aligned slice; padded rows/cols are zero
    so padded h/c lanes stay identically zero through the recurrence.  The
    g-gate weights/bias carry a folded 2x scale so the kernel can use a single
    fused sigmoid (tanh(x) = 2*sigmoid(2x) - 1).
    """
    H = HIDDEN
    wih_p = jnp.zeros((INPUT_SIZE, 4 * HP), jnp.float32)
    whh_p = jnp.zeros((HP, 4 * HP), jnp.float32)
    b_p = jnp.zeros((1, 4 * HP), jnp.float32)
    for g in range(4):
        scale = 2.0 if g == 2 else 1.0            # fold tanh->sigmoid trick
        wg_ih = weight_ih[g * H:(g + 1) * H, :]   # (H, in)
        wg_hh = weight_hh[g * H:(g + 1) * H, :]   # (H, H)
        bg = bias_ih[g * H:(g + 1) * H] + bias_hh[g * H:(g + 1) * H]
        wih_p = wih_p.at[:, g * HP:g * HP + H].set(scale * wg_ih.T)
        whh_p = whh_p.at[:H, g * HP:g * HP + H].set(scale * wg_hh.T)
        b_p = b_p.at[0, g * HP:g * HP + H].set(scale * bg)
    wlin_p = jnp.zeros((HP, OUTPUT_SIZE), jnp.float32).at[:H, :].set(lin_w.T)
    blin_p = lin_b.reshape(1, OUTPUT_SIZE).astype(jnp.float32)
    return wih_p, whh_p, b_p, wlin_p, blin_p


def ref_forward(x2d, weight_ih, weight_hh, bias_ih, bias_hh, lw, lb):
    """Pure-JAX reference (PyTorch nn.LSTM semantics, gate order i,f,g,o)."""
    H = HIDDEN

    def step(carry, xt):
        h, c = carry
        gates = xt @ weight_ih.T + bias_ih + h @ weight_hh.T + bias_hh
        i = jax.nn.sigmoid(gates[0:H])
        f = jax.nn.sigmoid(gates[H:2 * H])
        g = jnp.tanh(gates[2 * H:3 * H])
        o = jax.nn.sigmoid(gates[3 * H:4 * H])
        c = f * c + i * g
        h = o * jnp.tanh(c)
        return (h, c), h

    (_, _), hs = jax.lax.scan(step, (jnp.zeros(H), jnp.zeros(H)), x2d)
    pred = hs @ lw.T + lb          # (seq_len, OUTPUT_SIZE)
    return pred[-1]                # (OUTPUT_SIZE,)


if __name__ == "__main__":
    key = jax.random.PRNGKey(0)
    ks = jax.random.split(key, 7)
    bound = 1.0 / np.sqrt(HIDDEN)   # PyTorch default uniform init bound

    weight_ih = jax.random.uniform(ks[0], (4 * HIDDEN, INPUT_SIZE), jnp.float32, -bound, bound)
    weight_hh = jax.random.uniform(ks[1], (4 * HIDDEN, HIDDEN), jnp.float32, -bound, bound)
    bias_ih = jax.random.uniform(ks[2], (4 * HIDDEN,), jnp.float32, -bound, bound)
    bias_hh = jax.random.uniform(ks[3], (4 * HIDDEN,), jnp.float32, -bound, bound)
    lin_w = jax.random.uniform(ks[4], (OUTPUT_SIZE, HIDDEN), jnp.float32, -bound, bound)
    lin_b = jax.random.uniform(ks[5], (OUTPUT_SIZE,), jnp.float32, -bound, bound)

    seq_len = 8
    x2d = jax.random.normal(ks[6], (seq_len, INPUT_SIZE), jnp.float32)
    # (The module views this as (seq_len, 1, 3); batch is 1 so we keep 2-D.)

    wih_p, whh_p, b_p, wlin_p, blin_p = pack_params(
        weight_ih, weight_hh, bias_ih, bias_hh, lin_w, lin_b)

    out = lstm_forward(x2d, wih_p, whh_p, b_p, wlin_p, blin_p)
    out = jax.block_until_ready(out)          # prediction[-1], shape (1, 3)

    ref = ref_forward(x2d, weight_ih, weight_hh, bias_ih, bias_hh, lin_w, lin_b)
    np.testing.assert_allclose(np.asarray(out[0]), np.asarray(ref),
                               rtol=1e-4, atol=1e-4)
    print("KERNEL_OK")
</pallas_src>

<mosaic_0001>
module attributes {stable_mosaic.version = 11 : i64} {
  func.func @lstm_kernel(%arg0: i32, %arg1: memref<8x3xf32, #tpu.memory_space<vmem>>, %arg2: memref<3x1024xf32, #tpu.memory_space<vmem>>, %arg3: memref<256x1024xf32, #tpu.memory_space<vmem>>, %arg4: memref<1x1024xf32, #tpu.memory_space<vmem>>, %arg5: memref<256x3xf32, #tpu.memory_space<vmem>>, %arg6: memref<1x3xf32, #tpu.memory_space<vmem>>, %arg7: memref<1x3xf32, #tpu.memory_space<vmem>>) attributes {dimension_semantics = [#tpu.dimension_semantics<arbitrary>], iteration_bounds = array<i64: 1>, scalar_prefetch = 0 : i64, scratch_operands = 0 : i64, tpu.core_type = #tpu.core_type<tc>, window_params = [{pipeline_mode = #tpu.pipeline_mode<synchronous>, transform_indices = @transform_0, window_bounds = array<i64: 8, 3>}, {pipeline_mode = #tpu.pipeline_mode<synchronous>, transform_indices = @transform_1, window_bounds = array<i64: 3, 1024>}, {pipeline_mode = #tpu.pipeline_mode<synchronous>, transform_indices = @transform_2, window_bounds = array<i64: 256, 1024>}, {pipeline_mode = #tpu.pipeline_mode<synchronous>, transform_indices = @transform_3, window_bounds = array<i64: 1, 1024>}, {pipeline_mode = #tpu.pipeline_mode<synchronous>, transform_indices = @transform_4, window_bounds = array<i64: 256, 3>}, {pipeline_mode = #tpu.pipeline_mode<synchronous>, transform_indices = @transform_5, window_bounds = array<i64: 1, 3>}, {pipeline_mode = #tpu.pipeline_mode<synchronous>, transform_indices = @transform_6, window_bounds = array<i64: 1, 3>}]} {
    %c0 = arith.constant 0 : index
    %c0_0 = arith.constant 0 : index
    %0 = vector.load %arg1[%c0, %c0_0] : memref<8x3xf32, #tpu.memory_space<vmem>>, vector<8x3xf32>
    %c0_1 = arith.constant 0 : index
    %c0_2 = arith.constant 0 : index
    %1 = vector.load %arg2[%c0_1, %c0_2] : memref<3x1024xf32, #tpu.memory_space<vmem>>, vector<3x1024xf32>
    %c0_3 = arith.constant 0 : index
    %c0_4 = arith.constant 0 : index
    %2 = vector.load %arg4[%c0_3, %c0_4] : memref<1x1024xf32, #tpu.memory_space<vmem>>, vector<1x1024xf32>
    %3 = vector.shape_cast %2 : vector<1x1024xf32> to vector<1x1024xf32>
    %4 = vector.broadcast %3 : vector<1x1024xf32> to vector<8x1024xf32>
    %5 = vector.extract_strided_slice %0 {offsets = [0, 0], sizes = [8, 1], strides = [1, 1]} : vector<8x3xf32> to vector<8x1xf32>
    %6 = vector.extract_strided_slice %1 {offsets = [0, 0], sizes = [1, 1024], strides = [1, 1]} : vector<3x1024xf32> to vector<1x1024xf32>
    %7 = vector.broadcast %5 : vector<8x1xf32> to vector<8x1024xf32>
    %8 = vector.broadcast %6 : vector<1x1024xf32> to vector<8x1024xf32>
    %9 = arith.mulf %7, %8 : vector<8x1024xf32>
    %10 = arith.addf %4, %9 : vector<8x1024xf32>
    %11 = vector.extract_strided_slice %0 {offsets = [0, 1], sizes = [8, 1], strides = [1, 1]} : vector<8x3xf32> to vector<8x1xf32>
    %12 = vector.extract_strided_slice %1 {offsets = [1, 0], sizes = [1, 1024], strides = [1, 1]} : vector<3x1024xf32> to vector<1x1024xf32>
    %13 = vector.broadcast %11 : vector<8x1xf32> to vector<8x1024xf32>
    %14 = vector.broadcast %12 : vector<1x1024xf32> to vector<8x1024xf32>
    %15 = arith.mulf %13, %14 : vector<8x1024xf32>
    %16 = arith.addf %10, %15 : vector<8x1024xf32>
    %17 = vector.extract_strided_slice %0 {offsets = [0, 2], sizes = [8, 1], strides = [1, 1]} : vector<8x3xf32> to vector<8x1xf32>
    %18 = vector.extract_strided_slice %1 {offsets = [2, 0], sizes = [1, 1024], strides = [1, 1]} : vector<3x1024xf32> to vector<1x1024xf32>
    %19 = vector.broadcast %17 : vector<8x1xf32> to vector<8x1024xf32>
    %20 = vector.broadcast %18 : vector<1x1024xf32> to vector<8x1024xf32>
    %21 = arith.mulf %19, %20 : vector<8x1024xf32>
    %22 = arith.addf %16, %21 : vector<8x1024xf32>
    %cst = arith.constant 0.000000e+00 : f32
    %23 = vector.broadcast %cst : f32 to vector<1x256xf32>
    %cst_5 = arith.constant 0.000000e+00 : f32
    %24 = vector.broadcast %cst_5 : f32 to vector<1x256xf32>
    %25 = vector.extract_strided_slice %22 {offsets = [0, 0], sizes = [1, 1024], strides = [1, 1]} : vector<8x1024xf32> to vector<1x1024xf32>
    %c0_6 = arith.constant 0 : index
    %c0_7 = arith.constant 0 : index
    %26 = vector.load %arg3[%c0_6, %c0_7] : memref<256x1024xf32, #tpu.memory_space<vmem>>, vector<256x1024xf32>
    %cst_8 = arith.constant dense<0.000000e+00> : vector<1x1024xf32>
    %27 = tpu.matmul %23, %26, %cst_8 {dimension_numbers = #tpu.dot_dimension_numbers<[1], [0], [0], [1], [0, 0, 1, 1], [], []>} : vector<1x256xf32>, vector<256x1024xf32>, vector<1x1024xf32> -> vector<1x1024xf32>
    %28 = arith.addf %25, %27 : vector<1x1024xf32>
    %29 = arith.negf %28 : vector<1x1024xf32>
    %30 = math.exp %29 : vector<1x1024xf32>
    %cst_9 = arith.constant 1.000000e+00 : f32
    %31 = vector.broadcast %cst_9 : f32 to vector<1x1024xf32>
    %32 = arith.addf %31, %30 : vector<1x1024xf32>
    %33 = arith.divf %31, %32 : vector<1x1024xf32>
    %34 = vector.extract_strided_slice %33 {offsets = [0, 0], sizes = [1, 256], strides = [1, 1]} : vector<1x1024xf32> to vector<1x256xf32>
    %35 = vector.extract_strided_slice %33 {offsets = [0, 256], sizes = [1, 256], strides = [1, 1]} : vector<1x1024xf32> to vector<1x256xf32>
    %36 = vector.extract_strided_slice %33 {offsets = [0, 512], sizes = [1, 256], strides = [1, 1]} : vector<1x1024xf32> to vector<1x256xf32>
    %cst_10 = arith.constant 2.000000e+00 : f32
    %37 = vector.broadcast %cst_10 : f32 to vector<1x256xf32>
    %38 = arith.mulf %37, %36 : vector<1x256xf32>
    %cst_11 = arith.constant 1.000000e+00 : f32
    %39 = vector.broadcast %cst_11 : f32 to vector<1x256xf32>
    %40 = arith.subf %38, %39 : vector<1x256xf32>
    %41 = vector.extract_strided_slice %33 {offsets = [0, 768], sizes = [1, 256], strides = [1, 1]} : vector<1x1024xf32> to vector<1x256xf32>
    %42 = arith.mulf %35, %24 : vector<1x256xf32>
    %43 = arith.mulf %34, %40 : vector<1x256xf32>
    %44 = arith.addf %42, %43 : vector<1x256xf32>
    %45 = math.tanh %44 : vector<1x256xf32>
    %46 = arith.mulf %41, %45 : vector<1x256xf32>
    %47 = vector.extract_strided_slice %22 {offsets = [1, 0], sizes = [1, 1024], strides = [1, 1]} : vector<8x1024xf32> to vector<1x1024xf32>
    %c0_12 = arith.constant 0 : index
    %c0_13 = arith.constant 0 : index
    %48 = vector.load %arg3[%c0_12, %c0_13] : memref<256x1024xf32, #tpu.memory_space<vmem>>, vector<256x1024xf32>
    %cst_14 = arith.constant dense<0.000000e+00> : vector<1x1024xf32>
    %49 = tpu.matmul %46, %48, %cst_14 {dimension_numbers = #tpu.dot_dimension_numbers<[1], [0], [0], [1], [0, 0, 1, 1], [], []>} : vector<1x256xf32>, vector<256x1024xf32>, vector<1x1024xf32> -> vector<1x1024xf32>
    %50 = arith.addf %47, %49 : vector<1x1024xf32>
    %51 = arith.negf %50 : vector<1x1024xf32>
    %52 = math.exp %51 : vector<1x1024xf32>
    %cst_15 = arith.constant 1.000000e+00 : f32
    %53 = vector.broadcast %cst_15 : f32 to vector<1x1024xf32>
    %54 = arith.addf %53, %52 : vector<1x1024xf32>
    %55 = arith.divf %53, %54 : vector<1x1024xf32>
    %56 = vector.extract_strided_slice %55 {offsets = [0, 0], sizes = [1, 256], strides = [1, 1]} : vector<1x1024xf32> to vector<1x256xf32>
    %57 = vector.extract_strided_slice %55 {offsets = [0, 256], sizes = [1, 256], strides = [1, 1]} : vector<1x1024xf32> to vector<1x256xf32>
    %58 = vector.extract_strided_slice %55 {offsets = [0, 512], sizes = [1, 256], strides = [1, 1]} : vector<1x1024xf32> to vector<1x256xf32>
    %cst_16 = arith.constant 2.000000e+00 : f32
    %59 = vector.broadcast %cst_16 : f32 to vector<1x256xf32>
    %60 = arith.mulf %59, %58 : vector<1x256xf32>
    %cst_17 = arith.constant 1.000000e+00 : f32
    %61 = vector.broadcast %cst_17 : f32 to vector<1x256xf32>
    %62 = arith.subf %60, %61 : vector<1x256xf32>
    %63 = vector.extract_strided_slice %55 {offsets = [0, 768], sizes = [1, 256], strides = [1, 1]} : vector<1x1024xf32> to vector<1x256xf32>
    %64 = arith.mulf %57, %44 : vector<1x256xf32>
    %65 = arith.mulf %56, %62 : vector<1x256xf32>
    %66 = arith.addf %64, %65 : vector<1x256xf32>
    %67 = math.tanh %66 : vector<1x256xf32>
    %68 = arith.mulf %63, %67 : vector<1x256xf32>
    %69 = vector.extract_strided_slice %22 {offsets = [2, 0], sizes = [1, 1024], strides = [1, 1]} : vector<8x1024xf32> to vector<1x1024xf32>
    %c0_18 = arith.constant 0 : index
    %c0_19 = arith.constant 0 : index
    %70 = vector.load %arg3[%c0_18, %c0_19] : memref<256x1024xf32, #tpu.memory_space<vmem>>, vector<256x1024xf32>
    %cst_20 = arith.constant dense<0.000000e+00> : vector<1x1024xf32>
    %71 = tpu.matmul %68, %70, %cst_20 {dimension_numbers = #tpu.dot_dimension_numbers<[1], [0], [0], [1], [0, 0, 1, 1], [], []>} : vector<1x256xf32>, vector<256x1024xf32>, vector<1x1024xf32> -> vector<1x1024xf32>
    %72 = arith.addf %69, %71 : vector<1x1024xf32>
    %73 = arith.negf %72 : vector<1x1024xf32>
    %74 = math.exp %73 : vector<1x1024xf32>
    %cst_21 = arith.constant 1.000000e+00 : f32
    %75 = vector.broadcast %cst_21 : f32 to vector<1x1024xf32>
    %76 = arith.addf %75, %74 : vector<1x1024xf32>
    %77 = arith.divf %75, %76 : vector<1x1024xf32>
    %78 = vector.extract_strided_slice %77 {offsets = [0, 0], sizes = [1, 256], strides = [1, 1]} : vector<1x1024xf32> to vector<1x256xf32>
    %79 = vector.extract_strided_slice %77 {offsets = [0, 256], sizes = [1, 256], strides = [1, 1]} : vector<1x1024xf32> to vector<1x256xf32>
    %80 = vector.extract_strided_slice %77 {offsets = [0, 512], sizes = [1, 256], strides = [1, 1]} : vector<1x1024xf32> to vector<1x256xf32>
    %cst_22 = arith.constant 2.000000e+00 : f32
    %81 = vector.broadcast %cst_22 : f32 to vector<1x256xf32>
    %82 = arith.mulf %81, %80 : vector<1x256xf32>
    %cst_23 = arith.constant 1.000000e+00 : f32
    %83 = vector.broadcast %cst_23 : f32 to vector<1x256xf32>
    %84 = arith.subf %82, %83 : vector<1x256xf32>
    %85 = vector.extract_strided_slice %77 {offsets = [0, 768], sizes = [1, 256], strides = [1, 1]} : vector<1x1024xf32> to vector<1x256xf32>
    %86 = arith.mulf %79, %66 : vector<1x256xf32>
    %87 = arith.mulf %78, %84 : vector<1x256xf32>
    %88 = arith.addf %86, %87 : vector<1x256xf32>
    %89 = math.tanh %88 : vector<1x256xf32>
    %90 = arith.mulf %85, %89 : vector<1x256xf32>
    %91 = vector.extract_strided_slice %22 {offsets = [3, 0], sizes = [1, 1024], strides = [1, 1]} : vector<8x1024xf32> to vector<1x1024xf32>
    %c0_24 = arith.constant 0 : index
    %c0_25 = arith.constant 0 : index
    %92 = vector.load %arg3[%c0_24, %c0_25] : memref<256x1024xf32, #tpu.memory_space<vmem>>, vector<256x1024xf32>
    %cst_26 = arith.constant dense<0.000000e+00> : vector<1x1024xf32>
    %93 = tpu.matmul %90, %92, %cst_26 {dimension_numbers = #tpu.dot_dimension_numbers<[1], [0], [0], [1], [0, 0, 1, 1], [], []>} : vector<1x256xf32>, vector<256x1024xf32>, vector<1x1024xf32> -> vector<1x1024xf32>
    %94 = arith.addf %91, %93 : vector<1x1024xf32>
    %95 = arith.negf %94 : vector<1x1024xf32>
    %96 = math.exp %95 : vector<1x1024xf32>
    %cst_27 = arith.constant 1.000000e+00 : f32
    %97 = vector.broadcast %cst_27 : f32 to vector<1x1024xf32>
    %98 = arith.addf %97, %96 : vector<1x1024xf32>
    %99 = arith.divf %97, %98 : vector<1x1024xf32>
    %100 = vector.extract_strided_slice %99 {offsets = [0, 0], sizes = [1, 256], strides = [1, 1]} : vector<1x1024xf32> to vector<1x256xf32>
    %101 = vector.extract_strided_slice %99 {offsets = [0, 256], sizes = [1, 256], strides = [1, 1]} : vector<1x1024xf32> to vector<1x256xf32>
    %102 = vector.extract_strided_slice %99 {offsets = [0, 512], sizes = [1, 256], strides = [1, 1]} : vector<1x1024xf32> to vector<1x256xf32>
    %cst_28 = arith.constant 2.000000e+00 : f32
    %103 = vector.broadcast %cst_28 : f32 to vector<1x256xf32>
    %104 = arith.mulf %103, %102 : vector<1x256xf32>
    %cst_29 = arith.constant 1.000000e+00 : f32
    %105 = vector.broadcast %cst_29 : f32 to vector<1x256xf32>
    %106 = arith.subf %104, %105 : vector<1x256xf32>
    %107 = vector.extract_strided_slice %99 {offsets = [0, 768], sizes = [1, 256], strides = [1, 1]} : vector<1x1024xf32> to vector<1x256xf32>
    %108 = arith.mulf %101, %88 : vector<1x256xf32>
    %109 = arith.mulf %100, %106 : vector<1x256xf32>
    %110 = arith.addf %108, %109 : vector<1x256xf32>
    %111 = math.tanh %110 : vector<1x256xf32>
    %112 = arith.mulf %107, %111 : vector<1x256xf32>
    %113 = vector.extract_strided_slice %22 {offsets = [4, 0], sizes = [1, 1024], strides = [1, 1]} : vector<8x1024xf32> to vector<1x1024xf32>
    %c0_30 = arith.constant 0 : index
    %c0_31 = arith.constant 0 : index
    %114 = vector.load %arg3[%c0_30, %c0_31] : memref<256x1024xf32, #tpu.memory_space<vmem>>, vector<256x1024xf32>
    %cst_32 = arith.constant dense<0.000000e+00> : vector<1x1024xf32>
    %115 = tpu.matmul %112, %114, %cst_32 {dimension_numbers = #tpu.dot_dimension_numbers<[1], [0], [0], [1], [0, 0, 1, 1], [], []>} : vector<1x256xf32>, vector<256x1024xf32>, vector<1x1024xf32> -> vector<1x1024xf32>
    %116 = arith.addf %113, %115 : vector<1x1024xf32>
    %117 = arith.negf %116 : vector<1x1024xf32>
    %118 = math.exp %117 : vector<1x1024xf32>
    %cst_33 = arith.constant 1.000000e+00 : f32
    %119 = vector.broadcast %cst_33 : f32 to vector<1x1024xf32>
    %120 = arith.addf %119, %118 : vector<1x1024xf32>
    %121 = arith.divf %119, %120 : vector<1x1024xf32>
    %122 = vector.extract_strided_slice %121 {offsets = [0, 0], sizes = [1, 256], strides = [1, 1]} : vector<1x1024xf32> to vector<1x256xf32>
    %123 = vector.extract_strided_slice %121 {offsets = [0, 256], sizes = [1, 256], strides = [1, 1]} : vector<1x1024xf32> to vector<1x256xf32>
    %124 = vector.extract_strided_slice %121 {offsets = [0, 512], sizes = [1, 256], strides = [1, 1]} : vector<1x1024xf32> to vector<1x256xf32>
    %cst_34 = arith.constant 2.000000e+00 : f32
    %125 = vector.broadcast %cst_34 : f32 to vector<1x256xf32>
    %126 = arith.mulf %125, %124 : vector<1x256xf32>
    %cst_35 = arith.constant 1.000000e+00 : f32
    %127 = vector.broadcast %cst_35 : f32 to vector<1x256xf32>
    %128 = arith.subf %126, %127 : vector<1x256xf32>
    %129 = vector.extract_strided_slice %121 {offsets = [0, 768], sizes = [1, 256], strides = [1, 1]} : vector<1x1024xf32> to vector<1x256xf32>
    %130 = arith.mulf %123, %110 : vector<1x256xf32>
    %131 = arith.mulf %122, %128 : vector<1x256xf32>
    %132 = arith.addf %130, %131 : vector<1x256xf32>
    %133 = math.tanh %132 : vector<1x256xf32>
    %134 = arith.mulf %129, %133 : vector<1x256xf32>
    %135 = vector.extract_strided_slice %22 {offsets = [5, 0], sizes = [1, 1024], strides = [1, 1]} : vector<8x1024xf32> to vector<1x1024xf32>
    %c0_36 = arith.constant 0 : index
    %c0_37 = arith.constant 0 : index
    %136 = vector.load %arg3[%c0_36, %c0_37] : memref<256x1024xf32, #tpu.memory_space<vmem>>, vector<256x1024xf32>
    %cst_38 = arith.constant dense<0.000000e+00> : vector<1x1024xf32>
    %137 = tpu.matmul %134, %136, %cst_38 {dimension_numbers = #tpu.dot_dimension_numbers<[1], [0], [0], [1], [0, 0, 1, 1], [], []>} : vector<1x256xf32>, vector<256x1024xf32>, vector<1x1024xf32> -> vector<1x1024xf32>
    %138 = arith.addf %135, %137 : vector<1x1024xf32>
    %139 = arith.negf %138 : vector<1x1024xf32>
    %140 = math.exp %139 : vector<1x1024xf32>
    %cst_39 = arith.constant 1.000000e+00 : f32
    %141 = vector.broadcast %cst_39 : f32 to vector<1x1024xf32>
    %142 = arith.addf %141, %140 : vector<1x1024xf32>
    %143 = arith.divf %141, %142 : vector<1x1024xf32>
    %144 = vector.extract_strided_slice %143 {offsets = [0, 0], sizes = [1, 256], strides = [1, 1]} : vector<1x1024xf32> to vector<1x256xf32>
    %145 = vector.extract_strided_slice %143 {offsets = [0, 256], sizes = [1, 256], strides = [1, 1]} : vector<1x1024xf32> to vector<1x256xf32>
    %146 = vector.extract_strided_slice %143 {offsets = [0, 512], sizes = [1, 256], strides = [1, 1]} : vector<1x1024xf32> to vector<1x256xf32>
    %cst_40 = arith.constant 2.000000e+00 : f32
    %147 = vector.broadcast %cst_40 : f32 to vector<1x256xf32>
    %148 = arith.mulf %147, %146 : vector<1x256xf32>
    %cst_41 = arith.constant 1.000000e+00 : f32
    %149 = vector.broadcast %cst_41 : f32 to vector<1x256xf32>
    %150 = arith.subf %148, %149 : vector<1x256xf32>
    %151 = vector.extract_strided_slice %143 {offsets = [0, 768], sizes = [1, 256], strides = [1, 1]} : vector<1x1024xf32> to vector<1x256xf32>
    %152 = arith.mulf %145, %132 : vector<1x256xf32>
    %153 = arith.mulf %144, %150 : vector<1x256xf32>
    %154 = arith.addf %152, %153 : vector<1x256xf32>
    %155 = math.tanh %154 : vector<1x256xf32>
    %156 = arith.mulf %151, %155 : vector<1x256xf32>
    %157 = vector.extract_strided_slice %22 {offsets = [6, 0], sizes = [1, 1024], strides = [1, 1]} : vector<8x1024xf32> to vector<1x1024xf32>
    %c0_42 = arith.constant 0 : index
    %c0_43 = arith.constant 0 : index
    %158 = vector.load %arg3[%c0_42, %c0_43] : memref<256x1024xf32, #tpu.memory_space<vmem>>, vector<256x1024xf32>
    %cst_44 = arith.constant dense<0.000000e+00> : vector<1x1024xf32>
    %159 = tpu.matmul %156, %158, %cst_44 {dimension_numbers = #tpu.dot_dimension_numbers<[1], [0], [0], [1], [0, 0, 1, 1], [], []>} : vector<1x256xf32>, vector<256x1024xf32>, vector<1x1024xf32> -> vector<1x1024xf32>
    %160 = arith.addf %157, %159 : vector<1x1024xf32>
    %161 = arith.negf %160 : vector<1x1024xf32>
    %162 = math.exp %161 : vector<1x1024xf32>
    %cst_45 = arith.constant 1.000000e+00 : f32
    %163 = vector.broadcast %cst_45 : f32 to vector<1x1024xf32>
    %164 = arith.addf %163, %162 : vector<1x1024xf32>
    %165 = arith.divf %163, %164 : vector<1x1024xf32>
    %166 = vector.extract_strided_slice %165 {offsets = [0, 0], sizes = [1, 256], strides = [1, 1]} : vector<1x1024xf32> to vector<1x256xf32>
    %167 = vector.extract_strided_slice %165 {offsets = [0, 256], sizes = [1, 256], strides = [1, 1]} : vector<1x1024xf32> to vector<1x256xf32>
    %168 = vector.extract_strided_slice %165 {offsets = [0, 512], sizes = [1, 256], strides = [1, 1]} : vector<1x1024xf32> to vector<1x256xf32>
    %cst_46 = arith.constant 2.000000e+00 : f32
    %169 = vector.broadcast %cst_46 : f32 to vector<1x256xf32>
    %170 = arith.mulf %169, %168 : vector<1x256xf32>
    %cst_47 = arith.constant 1.000000e+00 : f32
    %171 = vector.broadcast %cst_47 : f32 to vector<1x256xf32>
    %172 = arith.subf %170, %171 : vector<1x256xf32>
    %173 = vector.extract_strided_slice %165 {offsets = [0, 768], sizes = [1, 256], strides = [1, 1]} : vector<1x1024xf32> to vector<1x256xf32>
    %174 = arith.mulf %167, %154 : vector<1x256xf32>
    %175 = arith.mulf %166, %172 : vector<1x256xf32>
    %176 = arith.addf %174, %175 : vector<1x256xf32>
    %177 = math.tanh %176 : vector<1x256xf32>
    %178 = arith.mulf %173, %177 : vector<1x256xf32>
    %179 = vector.extract_strided_slice %22 {offsets = [7, 0], sizes = [1, 1024], strides = [1, 1]} : vector<8x1024xf32> to vector<1x1024xf32>
    %c0_48 = arith.constant 0 : index
    %c0_49 = arith.constant 0 : index
    %180 = vector.load %arg3[%c0_48, %c0_49] : memref<256x1024xf32, #tpu.memory_space<vmem>>, vector<256x1024xf32>
    %cst_50 = arith.constant dense<0.000000e+00> : vector<1x1024xf32>
    %181 = tpu.matmul %178, %180, %cst_50 {dimension_numbers = #tpu.dot_dimension_numbers<[1], [0], [0], [1], [0, 0, 1, 1], [], []>} : vector<1x256xf32>, vector<256x1024xf32>, vector<1x1024xf32> -> vector<1x1024xf32>
    %182 = arith.addf %179, %181 : vector<1x1024xf32>
    %183 = arith.negf %182 : vector<1x1024xf32>
    %184 = math.exp %183 : vector<1x1024xf32>
    %cst_51 = arith.constant 1.000000e+00 : f32
    %185 = vector.broadcast %cst_51 : f32 to vector<1x1024xf32>
    %186 = arith.addf %185, %184 : vector<1x1024xf32>
    %187 = arith.divf %185, %186 : vector<1x1024xf32>
    %188 = vector.extract_strided_slice %187 {offsets = [0, 0], sizes = [1, 256], strides = [1, 1]} : vector<1x1024xf32> to vector<1x256xf32>
    %189 = vector.extract_strided_slice %187 {offsets = [0, 256], sizes = [1, 256], strides = [1, 1]} : vector<1x1024xf32> to vector<1x256xf32>
    %190 = vector.extract_strided_slice %187 {offsets = [0, 512], sizes = [1, 256], strides = [1, 1]} : vector<1x1024xf32> to vector<1x256xf32>
    %cst_52 = arith.constant 2.000000e+00 : f32
    %191 = vector.broadcast %cst_52 : f32 to vector<1x256xf32>
    %192 = arith.mulf %191, %190 : vector<1x256xf32>
    %cst_53 = arith.constant 1.000000e+00 : f32
    %193 = vector.broadcast %cst_53 : f32 to vector<1x256xf32>
    %194 = arith.subf %192, %193 : vector<1x256xf32>
    %195 = vector.extract_strided_slice %187 {offsets = [0, 768], sizes = [1, 256], strides = [1, 1]} : vector<1x1024xf32> to vector<1x256xf32>
    %196 = arith.mulf %189, %176 : vector<1x256xf32>
    %197 = arith.mulf %188, %194 : vector<1x256xf32>
    %198 = arith.addf %196, %197 : vector<1x256xf32>
    %199 = math.tanh %198 : vector<1x256xf32>
    %200 = arith.mulf %195, %199 : vector<1x256xf32>
    %c0_54 = arith.constant 0 : index
    %c0_55 = arith.constant 0 : index
    %201 = vector.load %arg5[%c0_54, %c0_55] : memref<256x3xf32, #tpu.memory_space<vmem>>, vector<256x3xf32>
    %cst_56 = arith.constant dense<0.000000e+00> : vector<1x3xf32>
    %202 = tpu.matmul %200, %201, %cst_56 {dimension_numbers = #tpu.dot_dimension_numbers<[1], [0], [0], [1], [0, 0, 1, 1], [], []>} : vector<1x256xf32>, vector<256x3xf32>, vector<1x3xf32> -> vector<1x3xf32>
    %c0_57 = arith.constant 0 : index
    %c0_58 = arith.constant 0 : index
    %203 = vector.load %arg6[%c0_57, %c0_58] : memref<1x3xf32, #tpu.memory_space<vmem>>, vector<1x3xf32>
    %204 = arith.addf %202, %203 : vector<1x3xf32>
    %c0_59 = arith.constant 0 : index
    %c0_60 = arith.constant 0 : index
    %205 = vector.load %arg7[%c0_59, %c0_60] : memref<1x3xf32, #tpu.memory_space<vmem>>, vector<1x3xf32>
    tpu.vector_store %arg7[%c0_59, %c0_60], %204 {strides = array<i32>} : memref<1x3xf32, #tpu.memory_space<vmem>>, vector<1x3xf32>,
    return
  }
  func.func @transform_0(%arg0: i32) -> (i32, i32) {
    %c0_i32 = arith.constant 0 : i32
    %c0_i32_0 = arith.constant 0 : i32
    %c0_i32_1 = arith.constant 0 : i32
    return %c0_i32, %c0_i32_0 : i32, i32
  }
  func.func @transform_1(%arg0: i32) -> (i32, i32) {
    %c0_i32 = arith.constant 0 : i32
    %c0_i32_0 = arith.constant 0 : i32
    %c0_i32_1 = arith.constant 0 : i32
    return %c0_i32, %c0_i32_0 : i32, i32
  }
  func.func @transform_2(%arg0: i32) -> (i32, i32) {
    %c0_i32 = arith.constant 0 : i32
    %c0_i32_0 = arith.constant 0 : i32
    %c0_i32_1 = arith.constant 0 : i32
    return %c0_i32, %c0_i32_0 : i32, i32
  }
  func.func @transform_3(%arg0: i32) -> (i32, i32) {
    %c0_i32 = arith.constant 0 : i32
    %c0_i32_0 = arith.constant 0 : i32
    %c0_i32_1 = arith.constant 0 : i32
    return %c0_i32, %c0_i32_0 : i32, i32
  }
  func.func @transform_4(%arg0: i32) -> (i32, i32) {
    %c0_i32 = arith.constant 0 : i32
    %c0_i32_0 = arith.constant 0 : i32
    %c0_i32_1 = arith.constant 0 : i32
    return %c0_i32, %c0_i32_0 : i32, i32
  }
  func.func @transform_5(%arg0: i32) -> (i32, i32) {
    %c0_i32 = arith.constant 0 : i32
    %c0_i32_0 = arith.constant 0 : i32
    %c0_i32_1 = arith.constant 0 : i32
    return %c0_i32, %c0_i32_0 : i32, i32
  }
  func.func @transform_6(%arg0: i32) -> (i32, i32) {
    %c0_i32 = arith.constant 0 : i32
    %c0_i32_0 = arith.constant 0 : i32
    %c0_i32_1 = arith.constant 0 : i32
    return %c0_i32, %c0_i32_0 : i32, i32
  }
}

</mosaic_0001>

<bundles_post_ra>
// kernel: tpu_custom_call.1
= control target key start
LH: loop header
LB: loop body
LE: loop exit
PB: predicated region body
PF: predicated region fallthrough
CT: control target
= control target key end

     0   :  { %11 = vsyncpa [#allocation3], 0  ;;  %s8173_s0 = inlined_call_operand.vmem [shape: f32[8,3], index: 0, kind: input, shape index: {}]   ;;  %s8174_s1 = inlined_call_operand.vmem [shape: f32[3,1024], index: 1, kind: input, shape index: {}]   ;;  %s8175_s2 = inlined_call_operand.hbm [shape: f32[256,1024], index: 2, kind: input, shape index: {}]   ;;  %s8176_s3 = inlined_call_operand.vmem [shape: f32[1,1024], index: 3, kind: input, shape index: {}]   ;;  %s8177_s4 = inlined_call_operand.vmem [shape: f32[256,3], index: 4, kind: input, shape index: {}]   ;;  %s8178_s5 = inlined_call_operand.vmem [shape: f32[1,3], index: 5, kind: input, shape index: {}]   ;;  %s8179_s6 = inlined_call_operand.hbm [shape: f32[1,3], index: 6, kind: output, shape index: {}]  }
   0x1   :  { %12 = vsyncpa [#allocation4], 0  ;;  %s6369_s21 = smov [#allocation2]   ;;  %s6321_s25 = scalar_lea.hbm %s8175_s2, 32768 }
   0x2   :  { %s22_s22 = sshll.u32 %s6369_s21, 4  ;;  %p6322_p0 = scmp.ne.s32.totalorder %s8175_s2, %s6321_s25  ;;  %s23_s22 = int_to_ptr.vmem [resolvable:$true] %s22_s22 }
   0x3   :  { %p6325_p1 = scmp.lt.u32.totalorder %s6321_s25, %s8175_s2 }
   0x5   :  { %p6327_p2 = pnand %p6325_p1, %p6322_p0 }
   0x7   :  { %6330 = shalt.err (!%p6327_p2)
}
   0x8   :  { %s6331_s30 = scalar_lea.vmem %s23_s22, 32768  ;;  %p6336_p4 = scmp.lt.s32.totalorder %s23_s22, %s23_s22 }
   0x9   :  { %p6332_p3 = scmp.ne.s32.totalorder %s23_s22, %s6331_s30  ;;  %p6337_p5 = scmp.lt.s32.totalorder %s6331_s30, %s6331_s30 }
   0xb   :  { %p6338_p6 = por %p6337_p5, %p6336_p4 }
   0xd   :  { %p6339_p7 = pnand %p6338_p6, %p6332_p3 }
   0xf   :  { %6342 = shalt.err (!%p6339_p7)
}
  0x10   :  { %s6370_s7 = smov 1024   ;;  %s6371_s8 = smov 64  }
  0x11   :  { %28 = dma.hbm_to_vmem [thread:$0]  %s8175_s2, 32768, %s23_s22, [#allocation3], %s6370_s7, %s6370_s7, %s6371_s8  }
  0x12   :  { %6365 = dma.done.wait [#allocation3], 32768  }
  0x13   :  { %6366 = vsyncadd [#allocation3], 4294934528  ;;  %v8181_v0 = vmov 0.0   ;;  %v367_v1 = vld [vmem:[#allocation2 + $0x8] sm:$0xff]  ;;  %v369_v3 = vld [vmem:[#allocation2 + $0x18] sm:$0xff]  ;;  %v6373_v26 = vmov 0  }
  0x14   :  { %686 = vmatprep.mubr.f32.mxu0 %v8181_v0  ;;  %757 = vmatprep.mubr.f32.mxu1 %v8181_v0  ;;  %v375_v2 = vld [vmem:[#allocation2 + $0x48] sm:$0xff]  ;;  %v377_v5 = vld [vmem:[#allocation2 + $0x58] sm:$0xff]  ;;  %v366_v6 = vld [vmem:[#allocation2] sm:$0xff]  ;;  %v8180_v36 = vmov 2   ;;  %s6376_s28 = smov [#allocation5]   ;;  %vm3809_vm0 = vcmask 16384  }
  0x15   :  { %v6426_v4 = vpack.c.bf16 %v375_v2, %v367_v1  ;;  %v374_v7 = vld [vmem:[#allocation2 + $0x40] sm:$0xff]  ;;  %v6428_v8 = vpack.c.bf16 %v377_v5, %v369_v3  ;;  %v368_v10 = vld [vmem:[#allocation2 + $0x10] sm:$0xff]  ;;  %v383_v12 = vld [vmem:[#allocation2 + $0x88] sm:$0xff]  ;;  %6029 = vset.pattern.permute.xlu0 %v6373_v26  ;;  %6031 = vset.pattern.permute.xlu1 %v8180_v36  ;;  %s3817_s29 = sshll.u32 %s6376_s28, 4  ;;  %s3818_s29 = int_to_ptr.vmem [resolvable:$true] %s3817_s29 }
  0x16   :  { %v6430_v9 = vpack.c.bf16 %v374_v7, %v366_v6  ;;  %v376_v11 = vld [vmem:[#allocation2 + $0x50] sm:$0xff]  ;;  %v391_v14 = vld [vmem:[#allocation2 + $0xc8] sm:$0xff]  ;;  %v385_v15 = vld [vmem:[#allocation2 + $0x98] sm:$0xff]  ;;  %s6343_s30 = scalar_lea.vmem %s3818_s29, 16  ;;  %s6347_s7 = scalar_lea.vmem %s3818_s29, 32 }
  0x17   :  { %8454 = vst [vmem:[#allocation8_spill] sm:$0xff] %v6426_v4  ;;  %8455 = vst [vmem:[#allocation9_spill] sm:$0xff] %v6428_v8  ;;  %3942 = vmatprep.subr.bf16.mxu0 %v6426_v4  ;;  %v6433_v13 = vpack.c.bf16 %v376_v11, %v368_v10  ;;  %v393_v16 = vld [vmem:[#allocation2 + $0xd8] sm:$0xff]  ;;  %4006 = vmatprep.subr.bf16.mxu1 %v6428_v8  ;;  %v6437_v17 = vpack.c.bf16 %v391_v14, %v383_v12  ;;  %v382_v19 = vld [vmem:[#allocation2 + $0x80] sm:$0xff]  ;;  %p6344_p8 = scmp.ne.s32.totalorder %s3818_s29, %s6343_s30  ;;  %p6348_p9 = scmp.lt.s32.totalorder %s3818_s29, %s3818_s29 }
  0x18   :  { %8456 = vst [vmem:[#allocation10_spill] sm:$0xff] %v6430_v9  ;;  %3944 = vmatpush1.bf16.msra.mxu0 %v6430_v9  ;;  %v6439_v18 = vpack.c.bf16 %v393_v16, %v385_v15  ;;  %v390_v20 = vld [vmem:[#allocation2 + $0xc0] sm:$0xff]  ;;  %v384_v21 = vld [vmem:[#allocation2 + $0x90] sm:$0xff]  ;;  %v399_v24 = vld [vmem:[#allocation2 + $0x108] sm:$0xff]  ;;  %p6349_p10 = scmp.lt.s32.totalorder %s6347_s7, %s6343_s30 }
  0x19   :  { %8457 = vst [vmem:[#allocation11_spill] sm:$0xff] %v6433_v13  ;;  %8458 = vst [vmem:[#allocation12_spill] sm:$0xff] %v6437_v17  ;;  %4008 = vmatpush1.bf16.msra.mxu1 %v6433_v13  ;;  %v6442_v22 = vpack.c.bf16 %v390_v20, %v382_v19  ;;  %v392_v23 = vld [vmem:[#allocation2 + $0xd0] sm:$0xff]  ;;  %v407_v25 = vld [vmem:[#allocation2 + $0x148] sm:$0xff]  ;;  %3946 = vmatprep.subr.bf16.mxu0 %v6437_v17 }
  0x1a   :  { %8459 = vst [vmem:[#allocation13_spill] sm:$0xff] %v6439_v18  ;;  %4010 = vmatprep.subr.bf16.mxu1 %v6439_v18  ;;  %v6446_v27 = vpack.c.bf16 %v392_v23, %v384_v21  ;;  %v6448_v28 = vpack.c.bf16 %v407_v25, %v399_v24  ;;  %v401_v29 = vld [vmem:[#allocation2 + $0x118] sm:$0xff]  ;;  %v398_v31 = vld [vmem:[#allocation2 + $0x100] sm:$0xff]  ;;  %v400_v34 = vld [vmem:[#allocation2 + $0x110] sm:$0xff]  ;;  %p6350_p11 = por %p6349_p10, %p6348_p9 }
  0x1b   :  { %8460 = vst [vmem:[#allocation14_spill] sm:$0xff] %v6442_v22  ;;  %v409_v30 = vld [vmem:[#allocation2 + $0x158] sm:$0xff]  ;;  %v406_v33 = vld [vmem:[#allocation2 + $0x140] sm:$0xff]  ;;  %v408_v35 = vld [vmem:[#allocation2 + $0x150] sm:$0xff] }
  0x1c   :  { %8461 = vst [vmem:[#allocation15_spill] sm:$0xff] %v6446_v27  ;;  %8462 = vst [vmem:[#allocation16_spill] sm:$0xff] %v6448_v28  ;;  %v6450_v32 = vpack.c.bf16 %v409_v30, %v401_v29  ;;  %3948 = vmatpush1.bf16.msra.mxu0 %v6442_v22  ;;  %v6454_v37 = vpack.c.bf16 %v406_v33, %v398_v31  ;;  %v415_v38 = vld [vmem:[#allocation2 + $0x188] sm:$0xff]  ;;  %v417_v40 = vld [vmem:[#allocation2 + $0x198] sm:$0xff]  ;;  %v6458_v41 = vpack.c.bf16 %v408_v35, %v400_v34  ;;  %p6351_p12 = pnand %p6350_p11, %p6344_p8 }
  0x1d   :  { %v423_v39 = vld [vmem:[#allocation2 + $0x1c8] sm:$0xff]  ;;  %4012 = vmatpush1.bf16.msra.mxu1 %v6446_v27  ;;  %3950 = vmatprep.subr.bf16.mxu0 %v6448_v28  ;;  %v425_v43 = vld [vmem:[#allocation2 + $0x1d8] sm:$0xff]  ;;  %v414_v44 = vld [vmem:[#allocation2 + $0x180] sm:$0xff] }
  0x1e   :  { %8463 = vst [vmem:[#allocation17_spill] sm:$0xff] %v6450_v32  ;;  %8464 = vst [vmem:[#allocation18_spill] sm:$0xff] %v6454_v37  ;;  %v6460_v42 = vpack.c.bf16 %v423_v39, %v415_v38  ;;  %v422_v45 = vld [vmem:[#allocation2 + $0x1c0] sm:$0xff]  ;;  %4014 = vmatprep.subr.bf16.mxu1 %v6450_v32  ;;  %v6463_v46 = vpack.c.bf16 %v425_v43, %v417_v40  ;;  %v416_v47 = vld [vmem:[#allocation2 + $0x190] sm:$0xff] }
  0x1f   :  { %8465 = vst [vmem:[#allocation19_spill] sm:$0xff] %v6458_v41  ;;  %v424_v48 = vld [vmem:[#allocation2 + $0x1d0] sm:$0xff]  ;;  %v431_v49 = vld [vmem:[#allocation2 + $0x208] sm:$0xff]  ;;  %v433_v51 = vld [vmem:[#allocation2 + $0x218] sm:$0xff]  ;;  %v6466_v53 = vpack.c.bf16 %v422_v45, %v414_v44 }
  0x20   :  { %8466 = vst [vmem:[#allocation20_spill] sm:$0xff] %v6460_v42  ;;  %8467 = vst [vmem:[#allocation21_spill] sm:$0xff] %v6463_v46  ;;  %v439_v50 = vld [vmem:[#allocation2 + $0x248] sm:$0xff]  ;;  %v441_v52 = vld [vmem:[#allocation2 + $0x258] sm:$0xff]  ;;  %3952 = vmatpush1.bf16.msra.mxu0 %v6454_v37  ;;  %v6470_v54 = vpack.c.bf16 %v424_v48, %v416_v47 }
  0x21   :  { %8468 = vst [vmem:[#allocation22_spill] sm:$0xff] %v6466_v53  ;;  %4016 = vmatpush1.bf16.msra.mxu1 %v6458_v41  ;;  %3954 = vmatprep.subr.bf16.mxu0 %v6460_v42  ;;  %v6472_v55 = vpack.c.bf16 %v439_v50, %v431_v49  ;;  %v430_v56 = vld [vmem:[#allocation2 + $0x200] sm:$0xff]  ;;  %v432_v58 = vld [vmem:[#allocation2 + $0x210] sm:$0xff]  ;;  %v6475_v59 = vpack.c.bf16 %v441_v52, %v433_v51  ;;  %v447_v61 = vld [vmem:[#allocation2 + $0x288] sm:$0xff] }
  0x22   :  { %8469 = vst [vmem:[#allocation23_spill] sm:$0xff] %v6470_v54  ;;  %v438_v57 = vld [vmem:[#allocation2 + $0x240] sm:$0xff]  ;;  %4018 = vmatprep.subr.bf16.mxu1 %v6463_v46  ;;  %v440_v60 = vld [vmem:[#allocation2 + $0x250] sm:$0xff]  ;;  %v455_v62 = vld [vmem:[#allocation2 + $0x2c8] sm:$0xff] }
  0x23   :  { %8470 = vst [vmem:[#allocation24_spill] sm:$0xff] %v6472_v55  ;;  %8471 = vst [vmem:[#allocation25_spill] sm:$0xff] %v6475_v59  ;;  %v449_v63 = vld [vmem:[#allocation2 + $0x298] sm:$0xff]  ;;  %v6478_v2 = vpack.c.bf16 %v438_v57, %v430_v56  ;;  %v6482_v3 = vpack.c.bf16 %v440_v60, %v432_v58  ;;  %v6484_v5 = vpack.c.bf16 %v455_v62, %v447_v61  ;;  %v446_v6 = vld [vmem:[#allocation2 + $0x280] sm:$0xff] }
  0x24   :  { %v457_v1 = vld [vmem:[#allocation2 + $0x2d8] sm:$0xff]  ;;  %3956 = vmatpush1.bf16.msra.mxu0 %v6466_v53  ;;  %v454_v7 = vld [vmem:[#allocation2 + $0x2c0] sm:$0xff]  ;;  %v448_v10 = vld [vmem:[#allocation2 + $0x290] sm:$0xff] }
  0x25   :  { %8472 = vst [vmem:[#allocation26_spill] sm:$0xff] %v6478_v2  ;;  %4020 = vmatpush1.bf16.msra.mxu1 %v6470_v54  ;;  %3958 = vmatprep.subr.bf16.mxu0 %v6472_v55  ;;  %8473 = vst [vmem:[#allocation27_spill] sm:$0xff] %v6482_v3  ;;  %v6487_v11 = vpack.c.bf16 %v457_v1, %v449_v63  ;;  %v456_v12 = vld [vmem:[#allocation2 + $0x2d0] sm:$0xff]  ;;  %v463_v14 = vld [vmem:[#allocation2 + $0x308] sm:$0xff]  ;;  %v6490_v20 = vpack.c.bf16 %v454_v7, %v446_v6 }
  0x26   :  { %8474 = vst [vmem:[#allocation28_spill] sm:$0xff] %v6484_v5  ;;  %4022 = vmatprep.subr.bf16.mxu1 %v6475_v59  ;;  %v471_v15 = vld [vmem:[#allocation2 + $0x348] sm:$0xff]  ;;  %v465_v16 = vld [vmem:[#allocation2 + $0x318] sm:$0xff]  ;;  %v6494_v21 = vpack.c.bf16 %v456_v12, %v448_v10  ;;  %v462_v24 = vld [vmem:[#allocation2 + $0x300] sm:$0xff] }
  0x27   :  { %8475 = vst [vmem:[#allocation29_spill] sm:$0xff] %v6487_v11  ;;  %v473_v19 = vld [vmem:[#allocation2 + $0x358] sm:$0xff]  ;;  %8476 = vst [vmem:[#allocation30_spill] sm:$0xff] %v6490_v20  ;;  %v6496_v23 = vpack.c.bf16 %v471_v15, %v463_v14  ;;  %v470_v25 = vld [vmem:[#allocation2 + $0x340] sm:$0xff] }
  0x28   :  { %3960 = vmatpush1.bf16.msra.mxu0 %v6478_v2  ;;  %8477 = vst [vmem:[#allocation31_spill] sm:$0xff] %v6494_v21  ;;  %v464_v26 = vld [vmem:[#allocation2 + $0x310] sm:$0xff]  ;;  %v6499_v29 = vpack.c.bf16 %v473_v19, %v465_v16  ;;  %v479_v31 = vld [vmem:[#allocation2 + $0x388] sm:$0xff]  ;;  %v481_v34 = vld [vmem:[#allocation2 + $0x398] sm:$0xff]  ;;  %v6502_v38 = vpack.c.bf16 %v470_v25, %v462_v24 }
  0x29   :  { %4024 = vmatpush1.bf16.msra.mxu1 %v6482_v3  ;;  %3962 = vmatprep.subr.bf16.mxu0 %v6484_v5  ;;  %8478 = vst [vmem:[#allocation32_spill] sm:$0xff] %v6496_v23  ;;  %v472_v30 = vld [vmem:[#allocation2 + $0x350] sm:$0xff]  ;;  %v487_v33 = vld [vmem:[#allocation2 + $0x3c8] sm:$0xff]  ;;  %v489_v35 = vld [vmem:[#allocation2 + $0x3d8] sm:$0xff] }
  0x2a   :  { %4026 = vmatprep.subr.bf16.mxu1 %v6487_v11  ;;  %8479 = vst [vmem:[#allocation33_spill] sm:$0xff] %v6499_v29  ;;  %8480 = vst [vmem:[#allocation34_spill] sm:$0xff] %v6502_v38  ;;  %v6506_v39 = vpack.c.bf16 %v472_v30, %v464_v26  ;;  %v6508_v40 = vpack.c.bf16 %v487_v33, %v479_v31  ;;  %v478_v43 = vld [vmem:[#allocation2 + $0x380] sm:$0xff]  ;;  %v480_v45 = vld [vmem:[#allocation2 + $0x390] sm:$0xff]  ;;  %v6511_v47 = vpack.c.bf16 %v489_v35, %v481_v34 }
  0x2b   :  { %v486_v44 = vld [vmem:[#allocation2 + $0x3c0] sm:$0xff]  ;;  %v488_v48 = vld [vmem:[#allocation2 + $0x3d0] sm:$0xff]  ;;  %v495_v49 = vld [vmem:[#allocation2 + $0x408] sm:$0xff] }
  0x2c   :  { %3964 = vmatpush1.bf16.msra.mxu0 %v6490_v20  ;;  %8481 = vst [vmem:[#allocation35_spill] sm:$0xff] %v6506_v39  ;;  %8482 = vst [vmem:[#allocation36_spill] sm:$0xff] %v6508_v40  ;;  %v503_v50 = vld [vmem:[#allocation2 + $0x448] sm:$0xff]  ;;  %v497_v51 = vld [vmem:[#allocation2 + $0x418] sm:$0xff]  ;;  %v6514_v56 = vpack.c.bf16 %v486_v44, %v478_v43  ;;  %v6518_v57 = vpack.c.bf16 %v488_v48, %v480_v45 }
  0x2d   :  { %4028 = vmatpush1.bf16.msra.mxu1 %v6494_v21  ;;  %3966 = vmatprep.subr.bf16.mxu0 %v6496_v23  ;;  %8483 = vst [vmem:[#allocation37_spill] sm:$0xff] %v6511_v47  ;;  %v505_v52 = vld [vmem:[#allocation2 + $0x458] sm:$0xff]  ;;  %v6520_v58 = vpack.c.bf16 %v503_v50, %v495_v49  ;;  %v494_v60 = vld [vmem:[#allocation2 + $0x400] sm:$0xff]  ;;  %v496_v62 = vld [vmem:[#allocation2 + $0x410] sm:$0xff] }
  0x2e   :  { %4030 = vmatprep.subr.bf16.mxu1 %v6499_v29  ;;  %8484 = vst [vmem:[#allocation38_spill] sm:$0xff] %v6514_v56  ;;  %8485 = vst [vmem:[#allocation39_spill] sm:$0xff] %v6518_v57  ;;  %v502_v61 = vld [vmem:[#allocation2 + $0x440] sm:$0xff]  ;;  %v6523_v63 = vpack.c.bf16 %v505_v52, %v497_v51  ;;  %v504_v1 = vld [vmem:[#allocation2 + $0x450] sm:$0xff] }
  0x2f   :  { %8486 = vst [vmem:[#allocation40_spill] sm:$0xff] %v6520_v58  ;;  %v511_v6 = vld [vmem:[#allocation2 + $0x488] sm:$0xff]  ;;  %v513_v10 = vld [vmem:[#allocation2 + $0x498] sm:$0xff]  ;;  %v6526_v14 = vpack.c.bf16 %v502_v61, %v494_v60  ;;  %v6530_v15 = vpack.c.bf16 %v504_v1, %v496_v62  ;;  %v510_v19 = vld [vmem:[#allocation2 + $0x480] sm:$0xff] }
  0x30   :  { %3968 = vmatpush1.bf16.msra.mxu0 %v6502_v38  ;;  %8487 = vst [vmem:[#allocation41_spill] sm:$0xff] %v6523_v63  ;;  %v519_v7 = vld [vmem:[#allocation2 + $0x4c8] sm:$0xff]  ;;  %v521_v12 = vld [vmem:[#allocation2 + $0x4d8] sm:$0xff]  ;;  %v518_v24 = vld [vmem:[#allocation2 + $0x4c0] sm:$0xff] }
  0x31   :  { %4032 = vmatpush1.bf16.msra.mxu1 %v6506_v39  ;;  %3970 = vmatprep.subr.bf16.mxu0 %v6508_v40  ;;  %8488 = vst [vmem:[#allocation42_spill] sm:$0xff] %v6526_v14  ;;  %8489 = vst [vmem:[#allocation43_spill] sm:$0xff] %v6530_v15  ;;  %v6532_v16 = vpack.c.bf16 %v519_v7, %v511_v6  ;;  %v512_v25 = vld [vmem:[#allocation2 + $0x490] sm:$0xff]  ;;  %v6535_v26 = vpack.c.bf16 %v521_v12, %v513_v10  ;;  %v527_v31 = vld [vmem:[#allocation2 + $0x508] sm:$0xff] }
  0x32   :  { %4034 = vmatprep.subr.bf16.mxu1 %v6511_v47  ;;  %v520_v30 = vld [vmem:[#allocation2 + $0x4d0] sm:$0xff]  ;;  %v535_v33 = vld [vmem:[#allocation2 + $0x548] sm:$0xff]  ;;  %v529_v34 = vld [vmem:[#allocation2 + $0x518] sm:$0xff]  ;;  %v6538_v43 = vpack.c.bf16 %v518_v24, %v510_v19 }
  0x33   :  { %8490 = vst [vmem:[#allocation44_spill] sm:$0xff] %v6532_v16  ;;  %8491 = vst [vmem:[#allocation45_spill] sm:$0xff] %v6535_v26  ;;  %v537_v35 = vld [vmem:[#allocation2 + $0x558] sm:$0xff]  ;;  %v6542_v44 = vpack.c.bf16 %v520_v30, %v512_v25  ;;  %v6544_v45 = vpack.c.bf16 %v535_v33, %v527_v31  ;;  %v526_v48 = vld [vmem:[#allocation2 + $0x500] sm:$0xff] }
  0x34   :  { %3972 = vmatpush1.bf16.msra.mxu0 %v6514_v56  ;;  %8492 = vst [vmem:[#allocation46_spill] sm:$0xff] %v6538_v43  ;;  %v534_v49 = vld [vmem:[#allocation2 + $0x540] sm:$0xff]  ;;  %v528_v50 = vld [vmem:[#allocation2 + $0x510] sm:$0xff]  ;;  %v6547_v51 = vpack.c.bf16 %v537_v35, %v529_v34  ;;  %v543_v60 = vld [vmem:[#allocation2 + $0x588] sm:$0xff] }
  0x35   :  { %4036 = vmatpush1.bf16.msra.mxu1 %v6518_v57  ;;  %3974 = vmatprep.subr.bf16.mxu0 %v6520_v58  ;;  %8493 = vst [vmem:[#allocation47_spill] sm:$0xff] %v6542_v44  ;;  %8494 = vst [vmem:[#allocation48_spill] sm:$0xff] %v6544_v45  ;;  %v536_v52 = vld [vmem:[#allocation2 + $0x550] sm:$0xff]  ;;  %v551_v61 = vld [vmem:[#allocation2 + $0x5c8] sm:$0xff]  ;;  %v6550_v6 = vpack.c.bf16 %v534_v49, %v526_v48 }
  0x36   :  { %4038 = vmatprep.subr.bf16.mxu1 %v6523_v63  ;;  %8495 = vst [vmem:[#allocation49_spill] sm:$0xff] %v6547_v51  ;;  %v545_v62 = vld [vmem:[#allocation2 + $0x598] sm:$0xff]  ;;  %v6554_v7 = vpack.c.bf16 %v536_v52, %v528_v50  ;;  %v6556_v10 = vpack.c.bf16 %v551_v61, %v543_v60  ;;  %v542_v12 = vld [vmem:[#allocation2 + $0x580] sm:$0xff]  ;;  %v544_v24 = vld [vmem:[#allocation2 + $0x590] sm:$0xff] }
  0x37   :  { %v553_v1 = vld [vmem:[#allocation2 + $0x5d8] sm:$0xff]  ;;  %8496 = vst [vmem:[#allocation50_spill] sm:$0xff] %v6550_v6  ;;  %v550_v19 = vld [vmem:[#allocation2 + $0x5c0] sm:$0xff]  ;;  %v552_v30 = vld [vmem:[#allocation2 + $0x5d0] sm:$0xff] }
  0x38   :  { %3976 = vmatpush1.bf16.msra.mxu0 %v6526_v14  ;;  %8497 = vst [vmem:[#allocation51_spill] sm:$0xff] %v6554_v7  ;;  %8498 = vst [vmem:[#allocation52_spill] sm:$0xff] %v6556_v10  ;;  %v6559_v25 = vpack.c.bf16 %v553_v1, %v545_v62  ;;  %v559_v31 = vld [vmem:[#allocation2 + $0x608] sm:$0xff]  ;;  %v561_v34 = vld [vmem:[#allocation2 + $0x618] sm:$0xff]  ;;  %v6562_v48 = vpack.c.bf16 %v550_v19, %v542_v12  ;;  %v6566_v49 = vpack.c.bf16 %v552_v30, %v544_v24 }
  0x39   :  { %4040 = vmatpush1.bf16.msra.mxu1 %v6530_v15  ;;  %3978 = vmatprep.subr.bf16.mxu0 %v6532_v16  ;;  %v567_v33 = vld [vmem:[#allocation2 + $0x648] sm:$0xff]  ;;  %v569_v35 = vld [vmem:[#allocation2 + $0x658] sm:$0xff]  ;;  %v558_v52 = vld [vmem:[#allocation2 + $0x600] sm:$0xff] }
  0x3a   :  { %4042 = vmatprep.subr.bf16.mxu1 %v6535_v26  ;;  %8499 = vst [vmem:[#allocation53_spill] sm:$0xff] %v6559_v25  ;;  %8500 = vst [vmem:[#allocation54_spill] sm:$0xff] %v6562_v48  ;;  %v6568_v50 = vpack.c.bf16 %v567_v33, %v559_v31  ;;  %v566_v60 = vld [vmem:[#allocation2 + $0x640] sm:$0xff]  ;;  %v560_v61 = vld [vmem:[#allocation2 + $0x610] sm:$0xff]  ;;  %v6571_v62 = vpack.c.bf16 %v569_v35, %v561_v34 }
  0x3b   :  { %8501 = vst [vmem:[#allocation55_spill] sm:$0xff] %v6566_v49  ;;  %v568_v1 = vld [vmem:[#allocation2 + $0x650] sm:$0xff]  ;;  %v575_v36 = vld [vmem:[#allocation2 + $0x688] sm:$0xff]  ;;  %v577_v12 = vld [vmem:[#allocation2 + $0x698] sm:$0xff] }
  0x3c   :  { %3980 = vmatpush1.bf16.msra.mxu0 %v6538_v43  ;;  %8502 = vst [vmem:[#allocation56_spill] sm:$0xff] %v6568_v50  ;;  %8503 = vst [vmem:[#allocation57_spill] sm:$0xff] %v6571_v62  ;;  %v583_v0 = vld [vmem:[#allocation2 + $0x6c8] sm:$0xff]  ;;  %v585_v19 = vld [vmem:[#allocation2 + $0x6d8] sm:$0xff]  ;;  %v6578_v24 = vpack.c.bf16 %v568_v1, %v560_v61 }
  0x3d   :  { %4044 = vmatpush1.bf16.msra.mxu1 %v6542_v44  ;;  %3982 = vmatprep.subr.bf16.mxu0 %v6544_v45  ;;  %v6580_v30 = vpack.c.bf16 %v583_v0, %v575_v36  ;;  %v574_v31 = vld [vmem:[#allocation2 + $0x680] sm:$0xff]  ;;  %v576_v34 = vld [vmem:[#allocation2 + $0x690] sm:$0xff]  ;;  %v6583_v35 = vpack.c.bf16 %v585_v19, %v577_v12 }
  0x3e   :  { %4046 = vmatprep.subr.bf16.mxu1 %v6547_v51  ;;  %8505 = vst [vmem:[#allocation59_spill] sm:$0xff] %v6578_v24  ;;  %v582_v33 = vld [vmem:[#allocation2 + $0x6c0] sm:$0xff]  ;;  %v592_v12 = vld [vmem:[#allocation2 + $0x710] sm:$0xff]  ;;  %v499_v51 = vld [vmem:[#allocation2 + $0x428] sm:$0xff] }
  0x3f   :  { %8506 = vst [vmem:[#allocation60_spill] sm:$0xff] %v6580_v30  ;;  %8507 = vst [vmem:[#allocation61_spill] sm:$0xff] %v6583_v35  ;;  %v590_v61 = vld [vmem:[#allocation2 + $0x700] sm:$0xff] }
  0x40   :  { %3984 = vmatpush1.bf16.msra.mxu0 %v6550_v6  ;;  %v598_v1 = vld [vmem:[#allocation2 + $0x740] sm:$0xff]  ;;  %v419_v6 = vld [vmem:[#allocation2 + $0x1a8] sm:$0xff] }
  0x41   :  { %4048 = vmatpush1.bf16.msra.mxu1 %v6554_v7  ;;  %3986 = vmatprep.subr.bf16.mxu0 %v6556_v10  ;;  %v6574_v7 = vpack.c.bf16 %v566_v60, %v558_v52  ;;  %v591_v10 = vld [vmem:[#allocation2 + $0x708] sm:$0xff]  ;;  %v593_v52 = vld [vmem:[#allocation2 + $0x718] sm:$0xff] }
  0x42   :  { %4050 = vmatprep.subr.bf16.mxu1 %v6559_v25  ;;  %v584_v25 = vld [vmem:[#allocation2 + $0x6d0] sm:$0xff]  ;;  %v601_v60 = vld [vmem:[#allocation2 + $0x758] sm:$0xff] }
  0x43   :  { %8504 = vst [vmem:[#allocation58_spill] sm:$0xff] %v6574_v7  ;;  %v6590_v0 = vpack.c.bf16 %v584_v25, %v576_v34  ;;  %v6595_v19 = vpack.c.bf16 %v601_v60, %v593_v52  ;;  %v614_v34 = vld [vmem:[#allocation2 + $0x7c0] sm:$0xff]  ;;  %v608_v52 = vld [vmem:[#allocation2 + $0x790] sm:$0xff] }
  0x44   :  { %3988 = vmatpush1.bf16.msra.mxu0 %v6562_v48  ;;  %v599_v48 = vld [vmem:[#allocation2 + $0x748] sm:$0xff] }
  0x45   :  { %4052 = vmatpush1.bf16.msra.mxu1 %v6566_v49  ;;  %3990 = vmatprep.subr.bf16.mxu0 %v6568_v50  ;;  %v6586_v49 = vpack.c.bf16 %v582_v33, %v574_v31  ;;  %8509 = vst [vmem:[#allocation63_spill] sm:$0xff] %v6590_v0  ;;  %v6592_v36 = vpack.c.bf16 %v599_v48, %v591_v10  ;;  %8511 = vst [vmem:[#allocation65_spill] sm:$0xff] %v6595_v19  ;;  %v607_v50 = vld [vmem:[#allocation2 + $0x788] sm:$0xff]  ;;  %v609_v31 = vld [vmem:[#allocation2 + $0x798] sm:$0xff] }
  0x46   :  { %4054 = vmatprep.subr.bf16.mxu1 %v6571_v62  ;;  %v600_v62 = vld [vmem:[#allocation2 + $0x750] sm:$0xff]  ;;  %v617_v33 = vld [vmem:[#allocation2 + $0x7d8] sm:$0xff]  ;;  %v606_v48 = vld [vmem:[#allocation2 + $0x780] sm:$0xff] }
  0x47   :  { %8508 = vst [vmem:[#allocation62_spill] sm:$0xff] %v6586_v49  ;;  %8510 = vst [vmem:[#allocation64_spill] sm:$0xff] %v6592_v36  ;;  %v6602_v10 = vpack.c.bf16 %v600_v62, %v592_v12  ;;  %v6607_v60 = vpack.c.bf16 %v617_v33, %v609_v31  ;;  %v370_v62 = vld [vmem:[#allocation2 + $0x20] sm:$0xff]  ;;  %v372_v31 = vld [vmem:[#allocation2 + $0x30] sm:$0xff] }
  0x48   :  { %3992 = vmatpush1.bf16.msra.mxu0 %v6574_v7  ;;  %v615_v7 = vld [vmem:[#allocation2 + $0x7c8] sm:$0xff]  ;;  %v378_v12 = vld [vmem:[#allocation2 + $0x60] sm:$0xff] }
  0x49   :  { %4056 = vmatpush1.bf16.msra.mxu1 %v6578_v24  ;;  %3994 = vmatprep.subr.bf16.mxu0 %v6580_v30  ;;  %v6598_v24 = vpack.c.bf16 %v598_v1, %v590_v61  ;;  %8513 = vst [vmem:[#allocation67_spill] sm:$0xff] %v6602_v10  ;;  %v6604_v25 = vpack.c.bf16 %v615_v7, %v607_v50  ;;  %8515 = vst [vmem:[#allocation69_spill] sm:$0xff] %v6607_v60  ;;  %v371_v30 = vld [vmem:[#allocation2 + $0x28] sm:$0xff]  ;;  %v373_v61 = vld [vmem:[#allocation2 + $0x38] sm:$0xff] }
  0x4a   :  { %4058 = vmatprep.subr.bf16.mxu1 %v6583_v35  ;;  %v616_v35 = vld [vmem:[#allocation2 + $0x7d0] sm:$0xff]  ;;  %v381_v1 = vld [vmem:[#allocation2 + $0x78] sm:$0xff] }
  0x4b   :  { %8512 = vst [vmem:[#allocation66_spill] sm:$0xff] %v6598_v24  ;;  %8514 = vst [vmem:[#allocation68_spill] sm:$0xff] %v6604_v25  ;;  %v6614_v7 = vpack.c.bf16 %v616_v35, %v608_v52  ;;  %v6619_v33 = vpack.c.bf16 %v381_v1, %v373_v61  ;;  %v386_v35 = vld [vmem:[#allocation2 + $0xa0] sm:$0xff]  ;;  %v388_v61 = vld [vmem:[#allocation2 + $0xb0] sm:$0xff] }
  0x4c   :  { %3996 = vmatpush1.bf16.msra.mxu0 %v6586_v49  ;;  %v379_v49 = vld [vmem:[#allocation2 + $0x68] sm:$0xff]  ;;  %v394_v52 = vld [vmem:[#allocation2 + $0xe0] sm:$0xff] }
  0x4d   :  { %4060 = vmatpush1.bf16.msra.mxu1 %v6590_v0  ;;  %3998 = vmatprep.subr.bf16.mxu0 %v6592_v36  ;;  %v6610_v0 = vpack.c.bf16 %v614_v34, %v606_v48  ;;  %8517 = vst [vmem:[#allocation71_spill] sm:$0xff] %v6614_v7  ;;  %v6616_v50 = vpack.c.bf16 %v379_v49, %v371_v30  ;;  %8519 = vst [vmem:[#allocation73_spill] sm:$0xff] %v6619_v33  ;;  %v387_v36 = vld [vmem:[#allocation2 + $0xa8] sm:$0xff]  ;;  %v389_v48 = vld [vmem:[#allocation2 + $0xb8] sm:$0xff] }
  0x4e   :  { %4062 = vmatprep.subr.bf16.mxu1 %v6595_v19  ;;  %v380_v19 = vld [vmem:[#allocation2 + $0x70] sm:$0xff]  ;;  %v397_v34 = vld [vmem:[#allocation2 + $0xf8] sm:$0xff] }
  0x4f   :  { %8516 = vst [vmem:[#allocation70_spill] sm:$0xff] %v6610_v0  ;;  %8518 = vst [vmem:[#allocation72_spill] sm:$0xff] %v6616_v50  ;;  %v6626_v49 = vpack.c.bf16 %v380_v19, %v372_v31  ;;  %v6631_v1 = vpack.c.bf16 %v397_v34, %v389_v48  ;;  %v402_v31 = vld [vmem:[#allocation2 + $0x120] sm:$0xff]  ;;  %v404_v34 = vld [vmem:[#allocation2 + $0x130] sm:$0xff] }
  0x50   :  { %4000 = vmatpush1.bf16.msra.mxu0 %v6598_v24  ;;  %v395_v24 = vld [vmem:[#allocation2 + $0xe8] sm:$0xff]  ;;  %v410_v48 = vld [vmem:[#allocation2 + $0x160] sm:$0xff] }
  0x51   :  { %4064 = vmatpush1.bf16.msra.mxu1 %v6602_v10  ;;  %4002 = vmatprep.subr.bf16.mxu0 %v6604_v25  ;;  %v6622_v10 = vpack.c.bf16 %v378_v12, %v370_v62  ;;  %8521 = vst [vmem:[#allocation75_spill] sm:$0xff] %v6626_v49  ;;  %v6628_v30 = vpack.c.bf16 %v395_v24, %v387_v36  ;;  %8523 = vst [vmem:[#allocation77_spill] sm:$0xff] %v6631_v1  ;;  %v403_v25 = vld [vmem:[#allocation2 + $0x128] sm:$0xff]  ;;  %v8524_v62 = vmov 0.0   ;;  %v405_v12 = vld [vmem:[#allocation2 + $0x138] sm:$0xff] }
  0x52   :  { %4066 = vmatprep.subr.bf16.mxu1 %v6607_v60  ;;  %v396_v60 = vld [vmem:[#allocation2 + $0xf0] sm:$0xff]  ;;  %v6636_v24 = vpack.c.bf16 %v394_v52, %v386_v35  ;;  %v421_v35 = vld [vmem:[#allocation2 + $0x1b8] sm:$0xff] }
  0x53   :  { %8520 = vst [vmem:[#allocation74_spill] sm:$0xff] %v6622_v10  ;;  %8522 = vst [vmem:[#allocation76_spill] sm:$0xff] %v6628_v30  ;;  %v6640_v36 = vpack.c.bf16 %v396_v60, %v388_v61  ;;  %v429_v52 = vld [vmem:[#allocation2 + $0x1f8] sm:$0xff]  ;;  %v426_v61 = vld [vmem:[#allocation2 + $0x1e0] sm:$0xff] }
  0x54   :  { %4004 = vmatpush1.bf16.msra.mxu0 %v6610_v0  ;;  %v411_v0 = vld [vmem:[#allocation2 + $0x168] sm:$0xff]  ;;  %8525 = vst [vmem:[#allocation78_spill] sm:$0xff] %v6636_v24 }
  0x55   :  { %4068 = vmatpush1.bf16.msra.mxu1 %v6614_v7  ;;  %4070 = vmatprep.subr.bf16.mxu0 %v6616_v50  ;;  %v413_v7 = vld [vmem:[#allocation2 + $0x178] sm:$0xff]  ;;  %8526 = vst [vmem:[#allocation79_spill] sm:$0xff] %v6640_v36  ;;  %v6642_v19 = vpack.c.bf16 %v411_v0, %v403_v25  ;;  %v412_v50 = vld [vmem:[#allocation2 + $0x170] sm:$0xff]  ;;  %v6650_v0 = vpack.c.bf16 %v410_v48, %v402_v31 }
  0x56   :  { %4134 = vmatprep.subr.bf16.mxu1 %v6619_v33  ;;  %v6645_v33 = vpack.c.bf16 %v413_v7, %v405_v12  ;;  %v6654_v25 = vpack.c.bf16 %v412_v50, %v404_v34  ;;  %v418_v7 = vld [vmem:[#allocation2 + $0x1a0] sm:$0xff]  ;;  %v420_v12 = vld [vmem:[#allocation2 + $0x1b0] sm:$0xff]  ;;  %v437_v31 = vld [vmem:[#allocation2 + $0x238] sm:$0xff] }
  0x57   :  { %687 = vmatmul.mubr.f32.vlgmr.msra.gmra.mrb[0].mxu0 %v8524_v62  ;;  %8527 = vst [vmem:[#allocation80_spill] sm:$0xff] %v6642_v19  ;;  %8529 = vst [vmem:[#allocation82_spill] sm:$0xff] %v6650_v0  ;;  %v445_v48 = vld [vmem:[#allocation2 + $0x278] sm:$0xff]  ;;  %v434_v50 = vld [vmem:[#allocation2 + $0x220] sm:$0xff] }
  0x58   :  { %758 = vmatmul.mubr.f32.vlgmr.msra.gmra.mrb[0].mxu1 %v8524_v62  ;;  %4072 = vmatpush1.bf16.msra.mxu0 %v6622_v10  ;;  %8528 = vst [vmem:[#allocation81_spill] sm:$0xff] %v6645_v33  ;;  %v427_v10 = vld [vmem:[#allocation2 + $0x1e8] sm:$0xff]  ;;  %8530 = vst [vmem:[#allocation83_spill] sm:$0xff] %v6654_v25  ;;  %v442_v34 = vld [vmem:[#allocation2 + $0x260] sm:$0xff] }
  0x59   :  { %4136 = vmatpush1.bf16.msra.mxu1 %v6626_v49  ;;  %4074 = vmatprep.subr.bf16.mxu0 %v6628_v30  ;;  %v6656_v60 = vpack.c.bf16 %v427_v10, %v419_v6  ;;  %v428_v30 = vld [vmem:[#allocation2 + $0x1f0] sm:$0xff]  ;;  %v435_v49 = vld [vmem:[#allocation2 + $0x228] sm:$0xff] }
  0x5a   :  { %4138 = vmatprep.subr.bf16.mxu1 %v6631_v1  ;;  %828 = vmatprep.mubr.f32.mxu0 %v8524_v62  ;;  %v6659_v1 = vpack.c.bf16 %v429_v52, %v421_v35  ;;  %v6666_v6 = vpack.c.bf16 %v428_v30, %v420_v12  ;;  %v436_v35 = vld [vmem:[#allocation2 + $0x230] sm:$0xff]  ;;  %v6671_v52 = vpack.c.bf16 %v445_v48, %v437_v31  ;;  %v458_v12 = vld [vmem:[#allocation2 + $0x2e0] sm:$0xff] }
  0x5b   :  { %899 = vmatprep.mubr.f32.mxu1 %v8524_v62  ;;  %8531 = vst [vmem:[#allocation84_spill] sm:$0xff] %v6656_v60  ;;  %v452_v31 = vld [vmem:[#allocation2 + $0x2b0] sm:$0xff] }
  0x5c   :  { %4076 = vmatpush1.bf16.msra.mxu0 %v6636_v24  ;;  %8532 = vst [vmem:[#allocation85_spill] sm:$0xff] %v6659_v1  ;;  %v443_v24 = vld [vmem:[#allocation2 + $0x268] sm:$0xff]  ;;  %8534 = vst [vmem:[#allocation87_spill] sm:$0xff] %v6666_v6 }
  0x5d   :  { %4140 = vmatpush1.bf16.msra.mxu1 %v6640_v36  ;;  %4078 = vmatprep.subr.bf16.mxu0 %v6642_v19  ;;  %v6662_v36 = vpack.c.bf16 %v426_v61, %v418_v7  ;;  %v6668_v10 = vpack.c.bf16 %v443_v24, %v435_v49  ;;  %8536 = vst [vmem:[#allocation89_spill] sm:$0xff] %v6671_v52  ;;  %v451_v19 = vld [vmem:[#allocation2 + $0x2a8] sm:$0xff]  ;;  %v453_v7 = vld [vmem:[#allocation2 + $0x2b8] sm:$0xff]  ;;  %v450_v24 = vld [vmem:[#allocation2 + $0x2a0] sm:$0xff] }
  0x5e   :  { %4142 = vmatprep.subr.bf16.mxu1 %v6645_v33  ;;  %v444_v33 = vld [vmem:[#allocation2 + $0x270] sm:$0xff]  ;;  %v461_v61 = vld [vmem:[#allocation2 + $0x2f8] sm:$0xff] }
  0x5f   :  { %8533 = vst [vmem:[#allocation86_spill] sm:$0xff] %v6662_v36  ;;  %8535 = vst [vmem:[#allocation88_spill] sm:$0xff] %v6668_v10  ;;  %v6678_v49 = vpack.c.bf16 %v444_v33, %v436_v35  ;;  %v6683_v48 = vpack.c.bf16 %v461_v61, %v453_v7  ;;  %v466_v33 = vld [vmem:[#allocation2 + $0x320] sm:$0xff]  ;;  %v468_v7 = vld [vmem:[#allocation2 + $0x330] sm:$0xff] }
  0x60   :  { %4080 = vmatpush1.bf16.msra.mxu0 %v6650_v0  ;;  %v459_v0 = vld [vmem:[#allocation2 + $0x2e8] sm:$0xff]  ;;  %v474_v35 = vld [vmem:[#allocation2 + $0x360] sm:$0xff]  ;;  %v38_v61 = vld [vmem:[%s8173_s0] sm:$0xff] }
  0x61   :  { %4144 = vmatpush1.bf16.msra.mxu1 %v6654_v25  ;;  %4082 = vmatprep.subr.bf16.mxu0 %v6656_v60  ;;  %v6674_v25 = vpack.c.bf16 %v442_v34, %v434_v50  ;;  %8538 = vst [vmem:[#allocation91_spill] sm:$0xff] %v6678_v49  ;;  %v6680_v30 = vpack.c.bf16 %v459_v0, %v451_v19  ;;  %8540 = vst [vmem:[#allocation93_spill] sm:$0xff] %v6683_v48  ;;  %v467_v60 = vld [vmem:[#allocation2 + $0x328] sm:$0xff]  ;;  %v469_v50 = vld [vmem:[#allocation2 + $0x338] sm:$0xff] }
  0x62   :  { %4146 = vmatprep.subr.bf16.mxu1 %v6659_v1  ;;  %v460_v1 = vld [vmem:[#allocation2 + $0x2f0] sm:$0xff]  ;;  %v477_v34 = vld [vmem:[#allocation2 + $0x378] sm:$0xff]  ;;  %87 = vperm.xlu0 %6029, %v38_v61  }
  0x63   :  { %8537 = vst [vmem:[#allocation90_spill] sm:$0xff] %v6674_v25  ;;  %8539 = vst [vmem:[#allocation92_spill] sm:$0xff] %v6680_v30  ;;  %v6690_v19 = vpack.c.bf16 %v460_v1, %v452_v31  ;;  %275 = vperm.xlu1 %6031, %v38_v61   ;;  %v6701_v1 = vpack.c.bf16 %v474_v35, %v466_v33  ;;  %v482_v31 = vld [vmem:[#allocation2 + $0x3a0] sm:$0xff]  ;;  %v6375_v33 = vmov 1   ;;  %v501_v35 = vld [vmem:[#allocation2 + $0x438] sm:$0xff] }
  0x64   :  { %4084 = vmatpush1.bf16.msra.mxu0 %v6662_v36  ;;  %v475_v36 = vld [vmem:[#allocation2 + $0x368] sm:$0xff] }
  0x65   :  { %4148 = vmatpush1.bf16.msra.mxu1 %v6666_v6  ;;  %4086 = vmatprep.subr.bf16.mxu0 %v6668_v10  ;;  %v6686_v6 = vpack.c.bf16 %v458_v12, %v450_v24  ;;  %8542 = vst [vmem:[#allocation95_spill] sm:$0xff] %v6690_v19  ;;  %v6692_v0 = vpack.c.bf16 %v475_v36, %v467_v60  ;;  %v476_v24 = vld [vmem:[#allocation2 + $0x370] sm:$0xff]  ;;  %v483_v12 = vld [vmem:[#allocation2 + $0x3a8] sm:$0xff]  ;;  %8545 = vst [vmem:[#allocation98_spill] sm:$0xff] %v6701_v1 }
  0x66   :  { %4150 = vmatprep.subr.bf16.mxu1 %v6671_v52  ;;  %v491_v52 = vld [vmem:[#allocation2 + $0x3e8] sm:$0xff]  ;;  %v6705_v36 = vpack.c.bf16 %v476_v24, %v468_v7  ;;  %v492_v10 = vld [vmem:[#allocation2 + $0x3f0] sm:$0xff]  ;;  %6030 = vset.pattern.permute.xlu0 %v6375_v33  ;;  %v506_v24 = vld [vmem:[#allocation2 + $0x460] sm:$0xff] }
  0x67   :  { %8541 = vst [vmem:[#allocation94_spill] sm:$0xff] %v6686_v6  ;;  %8543 = vst [vmem:[#allocation96_spill] sm:$0xff] %v6692_v0  ;;  %v6707_v60 = vpack.c.bf16 %v491_v52, %v483_v12  ;;  %183 = vperm.xlu0 %6030, %v38_v61   ;;  %v500_v12 = vld [vmem:[#allocation2 + $0x430] sm:$0xff] }
  0x68   :  { %4088 = vmatpush1.bf16.msra.mxu0 %v6674_v25  ;;  %v6698_v25 = vpack.c.bf16 %v477_v34, %v469_v50  ;;  %8546 = vst [vmem:[#allocation99_spill] sm:$0xff] %v6705_v36  ;;  %v490_v50 = vld [vmem:[#allocation2 + $0x3e0] sm:$0xff]  ;;  %v484_v34 = vld [vmem:[#allocation2 + $0x3b0] sm:$0xff] }
  0x69   :  { %4152 = vmatpush1.bf16.msra.mxu1 %v6678_v49  ;;  %4090 = vmatprep.subr.bf16.mxu0 %v6680_v30  ;;  %v485_v49 = vld [vmem:[#allocation2 + $0x3b8] sm:$0xff]  ;;  %8547 = vst [vmem:[#allocation100_spill] sm:$0xff] %v6707_v60  ;;  %v6713_v7 = vpack.c.bf16 %v490_v50, %v482_v31  ;;  %v6717_v52 = vpack.c.bf16 %v492_v10, %v484_v34  ;;  %v508_v61 = vld [vmem:[#allocation2 + $0x470] sm:$0xff]  ;;  %v522_v34 = vld [vmem:[#allocation2 + $0x4e0] sm:$0xff] }
  0x6a   :  { %4154 = vmatprep.subr.bf16.mxu1 %v6683_v48  ;;  %8544 = vst [vmem:[#allocation97_spill] sm:$0xff] %v6698_v25  ;;  %v493_v30 = vld [vmem:[#allocation2 + $0x3f8] sm:$0xff] }
  0x6b   :  { %v6710_v48 = vpack.c.bf16 %v493_v30, %v485_v49  ;;  %8549 = vst [vmem:[#allocation102_spill] sm:$0xff] %v6713_v7  ;;  %8550 = vst [vmem:[#allocation103_spill] sm:$0xff] %v6717_v52  ;;  %v498_v30 = vld [vmem:[#allocation2 + $0x420] sm:$0xff]  ;;  %v517_v31 = vld [vmem:[#allocation2 + $0x4b8] sm:$0xff] }
  0x6c   :  { %4092 = vmatpush1.bf16.msra.mxu0 %v6686_v6  ;;  %v507_v6 = vld [vmem:[#allocation2 + $0x468] sm:$0xff]  ;;  %v525_v50 = vld [vmem:[#allocation2 + $0x4f8] sm:$0xff]  ;;  %v6726_v10 = vpack.c.bf16 %v506_v24, %v498_v30 }
  0x6d   :  { %4156 = vmatpush1.bf16.msra.mxu1 %v6690_v19  ;;  %4094 = vmatprep.subr.bf16.mxu0 %v6692_v0  ;;  %8548 = vst [vmem:[#allocation101_spill] sm:$0xff] %v6710_v48  ;;  %v509_v19 = vld [vmem:[#allocation2 + $0x478] sm:$0xff]  ;;  %v6719_v49 = vpack.c.bf16 %v507_v6, %v499_v51  ;;  %v8553_v0 = vmov 2   ;;  %v6730_v51 = vpack.c.bf16 %v508_v61, %v500_v12  ;;  %v530_v12 = vld [vmem:[#allocation2 + $0x520] sm:$0xff] }
  0x6e   :  { %4158 = vmatprep.subr.bf16.mxu1 %v6698_v25  ;;  %v6722_v33 = vpack.c.bf16 %v509_v19, %v501_v35  ;;  %v515_v25 = vld [vmem:[#allocation2 + $0x4a8] sm:$0xff]  ;;  %6032 = vset.pattern.permute.xlu0 %v8553_v0  ;;  %8554 = vst [vmem:[#allocation106_spill] sm:$0xff] %v6726_v10  ;;  %v514_v19 = vld [vmem:[#allocation2 + $0x4a0] sm:$0xff]  ;;  %v516_v35 = vld [vmem:[#allocation2 + $0x4b0] sm:$0xff] }
  0x6f   :  { %8551 = vst [vmem:[#allocation104_spill] sm:$0xff] %v6719_v49  ;;  %8555 = vst [vmem:[#allocation107_spill] sm:$0xff] %v6730_v51  ;;  %v524_v0 = vld [vmem:[#allocation2 + $0x4f0] sm:$0xff]  ;;  %v533_v30 = vld [vmem:[#allocation2 + $0x538] sm:$0xff] }
  0x70   :  { %4096 = vmatpush1.bf16.msra.mxu0 %v6701_v1  ;;  %8552 = vst [vmem:[#allocation105_spill] sm:$0xff] %v6722_v33  ;;  %v523_v1 = vld [vmem:[#allocation2 + $0x4e8] sm:$0xff]  ;;  %v541_v24 = vld [vmem:[#allocation2 + $0x578] sm:$0xff]  ;;  %v538_v61 = vld [vmem:[#allocation2 + $0x560] sm:$0xff] }
  0x71   :  { %4160 = vmatpush1.bf16.msra.mxu1 %v6705_v36  ;;  %4098 = vmatprep.subr.bf16.mxu0 %v6707_v60  ;;  %v6732_v6 = vpack.c.bf16 %v523_v1, %v515_v25  ;;  %v531_v60 = vld [vmem:[#allocation2 + $0x528] sm:$0xff]  ;;  %v6742_v25 = vpack.c.bf16 %v524_v0, %v516_v35  ;;  %v546_v35 = vld [vmem:[#allocation2 + $0x5a0] sm:$0xff] }
  0x72   :  { %4162 = vmatprep.subr.bf16.mxu1 %v6710_v48  ;;  %v6735_v48 = vpack.c.bf16 %v525_v50, %v517_v31  ;;  %v532_v31 = vld [vmem:[#allocation2 + $0x530] sm:$0xff]  ;;  %v6747_v50 = vpack.c.bf16 %v541_v24, %v533_v30  ;;  %v554_v0 = vld [vmem:[#allocation2 + $0x5e0] sm:$0xff] }
  0x73   :  { %8556 = vst [vmem:[#allocation108_spill] sm:$0xff] %v6732_v6  ;;  %8559 = vst [vmem:[#allocation111_spill] sm:$0xff] %v6742_v25  ;;  %v548_v30 = vld [vmem:[#allocation2 + $0x5b0] sm:$0xff] }
  0x74   :  { %4100 = vmatpush1.bf16.msra.mxu0 %v6713_v7  ;;  %8557 = vst [vmem:[#allocation109_spill] sm:$0xff] %v6735_v48  ;;  %v539_v7 = vld [vmem:[#allocation2 + $0x568] sm:$0xff]  ;;  %8561 = vst [vmem:[#allocation113_spill] sm:$0xff] %v6747_v50 }
  0x75   :  { %4164 = vmatpush1.bf16.msra.mxu1 %v6717_v52  ;;  %4102 = vmatprep.subr.bf16.mxu0 %v6719_v49  ;;  %v6738_v52 = vpack.c.bf16 %v522_v34, %v514_v19  ;;  %v6744_v1 = vpack.c.bf16 %v539_v7, %v531_v60  ;;  %v547_v49 = vld [vmem:[#allocation2 + $0x5a8] sm:$0xff]  ;;  %v549_v19 = vld [vmem:[#allocation2 + $0x5b8] sm:$0xff] }
  0x76   :  { %4166 = vmatprep.subr.bf16.mxu1 %v6722_v33  ;;  %v540_v33 = vld [vmem:[#allocation2 + $0x570] sm:$0xff]  ;;  %v557_v34 = vld [vmem:[#allocation2 + $0x5f8] sm:$0xff] }
  0x77   :  { %8558 = vst [vmem:[#allocation110_spill] sm:$0xff] %v6738_v52  ;;  %8560 = vst [vmem:[#allocation112_spill] sm:$0xff] %v6744_v1  ;;  %v6754_v60 = vpack.c.bf16 %v540_v33, %v532_v31  ;;  %v6759_v24 = vpack.c.bf16 %v557_v34, %v549_v19  ;;  %v570_v31 = vld [vmem:[#allocation2 + $0x660] sm:$0xff]  ;;  %v564_v19 = vld [vmem:[#allocation2 + $0x630] sm:$0xff] }
  0x78   :  { %4104 = vmatpush1.bf16.msra.mxu0 %v6726_v10  ;;  %v555_v10 = vld [vmem:[#allocation2 + $0x5e8] sm:$0xff] }
  0x79   :  { %4168 = vmatpush1.bf16.msra.mxu1 %v6730_v51  ;;  %4106 = vmatprep.subr.bf16.mxu0 %v6732_v6  ;;  %v6750_v51 = vpack.c.bf16 %v538_v61, %v530_v12  ;;  %8563 = vst [vmem:[#allocation115_spill] sm:$0xff] %v6754_v60  ;;  %v6756_v7 = vpack.c.bf16 %v555_v10, %v547_v49  ;;  %8565 = vst [vmem:[#allocation117_spill] sm:$0xff] %v6759_v24  ;;  %v563_v6 = vld [vmem:[#allocation2 + $0x628] sm:$0xff]  ;;  %v565_v12 = vld [vmem:[#allocation2 + $0x638] sm:$0xff] }
  0x7a   :  { %4170 = vmatprep.subr.bf16.mxu1 %v6735_v48  ;;  %v556_v48 = vld [vmem:[#allocation2 + $0x5f0] sm:$0xff]  ;;  %v573_v61 = vld [vmem:[#allocation2 + $0x678] sm:$0xff]  ;;  %v562_v10 = vld [vmem:[#allocation2 + $0x620] sm:$0xff] }
  0x7b   :  { %8562 = vst [vmem:[#allocation114_spill] sm:$0xff] %v6750_v51  ;;  %8564 = vst [vmem:[#allocation116_spill] sm:$0xff] %v6756_v7  ;;  %v6766_v49 = vpack.c.bf16 %v556_v48, %v548_v30  ;;  %v6771_v34 = vpack.c.bf16 %v573_v61, %v565_v12  ;;  %v586_v30 = vld [vmem:[#allocation2 + $0x6e0] sm:$0xff]  ;;  %v580_v12 = vld [vmem:[#allocation2 + $0x6b0] sm:$0xff] }
  0x7c   :  { %4108 = vmatpush1.bf16.msra.mxu0 %v6738_v52  ;;  %v571_v52 = vld [vmem:[#allocation2 + $0x668] sm:$0xff] }
  0x7d   :  { %4172 = vmatpush1.bf16.msra.mxu1 %v6742_v25  ;;  %4110 = vmatprep.subr.bf16.mxu0 %v6744_v1  ;;  %v6762_v25 = vpack.c.bf16 %v554_v0, %v546_v35  ;;  %8567 = vst [vmem:[#allocation119_spill] sm:$0xff] %v6766_v49  ;;  %v6768_v33 = vpack.c.bf16 %v571_v52, %v563_v6  ;;  %8569 = vst [vmem:[#allocation121_spill] sm:$0xff] %v6771_v34  ;;  %v579_v1 = vld [vmem:[#allocation2 + $0x6a8] sm:$0xff]  ;;  %v581_v35 = vld [vmem:[#allocation2 + $0x6b8] sm:$0xff] }
  0x7e   :  { %4174 = vmatprep.subr.bf16.mxu1 %v6747_v50  ;;  %v572_v50 = vld [vmem:[#allocation2 + $0x670] sm:$0xff]  ;;  %v589_v0 = vld [vmem:[#allocation2 + $0x6f8] sm:$0xff]  ;;  %v578_v6 = vld [vmem:[#allocation2 + $0x6a0] sm:$0xff] }
  0x7f   :  { %8566 = vst [vmem:[#allocation118_spill] sm:$0xff] %v6762_v25  ;;  %8568 = vst [vmem:[#allocation120_spill] sm:$0xff] %v6768_v33  ;;  %v6778_v48 = vpack.c.bf16 %v572_v50, %v564_v19  ;;  %v6783_v61 = vpack.c.bf16 %v589_v0, %v581_v35  ;;  %v594_v50 = vld [vmem:[#allocation2 + $0x720] sm:$0xff]  ;;  %v596_v35 = vld [vmem:[#allocation2 + $0x730] sm:$0xff] }
  0x80   :  { %4112 = vmatpush1.bf16.msra.mxu0 %v6750_v51  ;;  %v587_v51 = vld [vmem:[#allocation2 + $0x6e8] sm:$0xff]  ;;  %v602_v19 = vld [vmem:[#allocation2 + $0x760] sm:$0xff] }
  0x81   :  { %4176 = vmatpush1.bf16.msra.mxu1 %v6754_v60  ;;  %4114 = vmatprep.subr.bf16.mxu0 %v6756_v7  ;;  %v6774_v60 = vpack.c.bf16 %v570_v31, %v562_v10  ;;  %8571 = vst [vmem:[#allocation123_spill] sm:$0xff] %v6778_v48  ;;  %v6780_v52 = vpack.c.bf16 %v587_v51, %v579_v1  ;;  %8573 = vst [vmem:[#allocation125_spill] sm:$0xff] %v6783_v61  ;;  %v595_v7 = vld [vmem:[#allocation2 + $0x728] sm:$0xff]  ;;  %v597_v10 = vld [vmem:[#allocation2 + $0x738] sm:$0xff] }
  0x82   :  { %4178 = vmatprep.subr.bf16.mxu1 %v6759_v24  ;;  %v588_v24 = vld [vmem:[#allocation2 + $0x6f0] sm:$0xff]  ;;  %v605_v31 = vld [vmem:[#allocation2 + $0x778] sm:$0xff] }
  0x83   :  { %8570 = vst [vmem:[#allocation122_spill] sm:$0xff] %v6774_v60  ;;  %8572 = vst [vmem:[#allocation124_spill] sm:$0xff] %v6780_v52  ;;  %v6790_v51 = vpack.c.bf16 %v588_v24, %v580_v12  ;;  %v6795_v0 = vpack.c.bf16 %v605_v31, %v597_v10  ;;  %v610_v24 = vld [vmem:[#allocation2 + $0x7a0] sm:$0xff]  ;;  %v612_v31 = vld [vmem:[#allocation2 + $0x7b0] sm:$0xff] }
  0x84   :  { %4116 = vmatpush1.bf16.msra.mxu0 %v6762_v25  ;;  %v603_v25 = vld [vmem:[#allocation2 + $0x768] sm:$0xff]  ;;  %v618_v12 = vld [vmem:[#allocation2 + $0x7e0] sm:$0xff] }
  0x85   :  { %4180 = vmatpush1.bf16.msra.mxu1 %v6766_v49  ;;  %4118 = vmatprep.subr.bf16.mxu0 %v6768_v33  ;;  %v6786_v49 = vpack.c.bf16 %v586_v30, %v578_v6  ;;  %8575 = vst [vmem:[#allocation127_spill] sm:$0xff] %v6790_v51  ;;  %v6792_v1 = vpack.c.bf16 %v603_v25, %v595_v7  ;;  %8577 = vst [vmem:[#allocation129_spill] sm:$0xff] %v6795_v0  ;;  %v611_v33 = vld [vmem:[#allocation2 + $0x7a8] sm:$0xff]  ;;  %v613_v6 = vld [vmem:[#allocation2 + $0x7b8] sm:$0xff] }
  0x86   :  { %4182 = vmatprep.subr.bf16.mxu1 %v6771_v34  ;;  %v604_v34 = vld [vmem:[#allocation2 + $0x770] sm:$0xff]  ;;  %v621_v30 = vld [vmem:[#allocation2 + $0x7f8] sm:$0xff] }
  0x87   :  { %8574 = vst [vmem:[#allocation126_spill] sm:$0xff] %v6786_v49  ;;  %8576 = vst [vmem:[#allocation128_spill] sm:$0xff] %v6792_v1  ;;  %v6802_v25 = vpack.c.bf16 %v604_v34, %v596_v35  ;;  %v6807_v10 = vpack.c.bf16 %v621_v30, %v613_v6  ;;  %v8589_v35 = vld [vmem:[#allocation54_spill] sm:$0xff]  ;;  %v8590_v6 = vld [vmem:[#allocation55_spill] sm:$0xff] }
  0x88   :  { %4120 = vmatpush1.bf16.msra.mxu0 %v6774_v60  ;;  %v619_v60 = vld [vmem:[#allocation2 + $0x7e8] sm:$0xff] }
  0x89   :  { %4184 = vmatpush1.bf16.msra.mxu1 %v6778_v48  ;;  %4122 = vmatprep.subr.bf16.mxu0 %v6780_v52  ;;  %v6798_v48 = vpack.c.bf16 %v602_v19, %v594_v50  ;;  %8579 = vst [vmem:[#allocation131_spill] sm:$0xff] %v6802_v25  ;;  %v6804_v7 = vpack.c.bf16 %v619_v60, %v611_v33  ;;  %8581 = vst [vmem:[#allocation133_spill] sm:$0xff] %v6807_v10  ;;  %v8585_v60 = vld [vmem:[#allocation50_spill] sm:$0xff]  ;;  %v8586_v33 = vld [vmem:[#allocation51_spill] sm:$0xff] }
  0x8a   :  { %4186 = vmatprep.subr.bf16.mxu1 %v6783_v61  ;;  %v620_v61 = vld [vmem:[#allocation2 + $0x7f0] sm:$0xff]  ;;  %v6810_v50 = vpack.c.bf16 %v618_v12, %v610_v24  ;;  %v8591_v30 = vld [vmem:[#allocation56_spill] sm:$0xff] }
  0x8b   :  { %8578 = vst [vmem:[#allocation130_spill] sm:$0xff] %v6798_v48  ;;  %8580 = vst [vmem:[#allocation132_spill] sm:$0xff] %v6804_v7  ;;  %v6814_v34 = vpack.c.bf16 %v620_v61, %v612_v31  ;;  %v8587_v61 = vld [vmem:[#allocation52_spill] sm:$0xff]  ;;  %v8588_v19 = vld [vmem:[#allocation53_spill] sm:$0xff] }
  0x8c   :  { %4124 = vmatpush1.bf16.msra.mxu0 %v6786_v49  ;;  %8582 = vst [vmem:[#allocation134_spill] sm:$0xff] %v6810_v50  ;;  %v8592_v24 = vld [vmem:[#allocation57_spill] sm:$0xff]  ;;  %v8593_v12 = vld [vmem:[#allocation58_spill] sm:$0xff]  ;;  %v8594_v31 = vld [vmem:[#allocation59_spill] sm:$0xff] }
  0x8d   :  { %4188 = vmatpush1.bf16.msra.mxu1 %v6790_v51  ;;  %4126 = vmatprep.subr.bf16.mxu0 %v6792_v1  ;;  %8583 = vst [vmem:[#allocation135_spill] sm:$0xff] %v6814_v34 }
  0x8e   :  { %4190 = vmatprep.subr.bf16.mxu1 %v6795_v0 }
  0x90   :  { %4128 = vmatpush1.bf16.msra.mxu0 %v6798_v48 }
  0x91   :  { %4192 = vmatpush1.bf16.msra.mxu1 %v6802_v25  ;;  %4130 = vmatprep.subr.bf16.mxu0 %v6804_v7 }
  0x92   :  { %4194 = vmatprep.subr.bf16.mxu1 %v6807_v10 }
  0x94   :  { %4132 = vmatpush1.bf16.msra.mxu0 %v6810_v50 }
  0x95   :  { %4196 = vmatpush1.bf16.msra.mxu1 %v6814_v34  ;;  %4198 = vmatprep.subr.bf16.mxu0 %v6426_v4 }
  0x96   :  { %4262 = vmatprep.subr.bf16.mxu1 %v6428_v8 }
  0x97   :  { %829 = vmatmul.mubr.f32.vlgmr.msra.gmra.mrb[2].mxu0 %v8524_v62 }
  0x98   :  { %900 = vmatmul.mubr.f32.vlgmr.msra.gmra.mrb[2].mxu1 %v8524_v62  ;;  %4200 = vmatpush1.bf16.msra.mxu0 %v6430_v9  ;;  %v8584_v62 = vld [vmem:[#allocation49_spill] sm:$0xff] }
  0x99   :  { %4264 = vmatpush1.bf16.msra.mxu1 %v6433_v13  ;;  %4202 = vmatprep.subr.bf16.mxu0 %v6437_v17 }
  0x9a   :  { %4266 = vmatprep.subr.bf16.mxu1 %v6439_v18 }
  0x9c   :  { %4204 = vmatpush1.bf16.msra.mxu0 %v6442_v22 }
  0x9d   :  { %4268 = vmatpush1.bf16.msra.mxu1 %v6446_v27  ;;  %4206 = vmatprep.subr.bf16.mxu0 %v6448_v28 }
  0x9e   :  { %4270 = vmatprep.subr.bf16.mxu1 %v6450_v32 }
  0xa0   :  { %4208 = vmatpush1.bf16.msra.mxu0 %v6454_v37 }
  0xa1   :  { %4272 = vmatpush1.bf16.msra.mxu1 %v6458_v41  ;;  %4210 = vmatprep.subr.bf16.mxu0 %v6460_v42 }
  0xa2   :  { %4274 = vmatprep.subr.bf16.mxu1 %v6463_v46 }
  0xa4   :  { %4212 = vmatpush1.bf16.msra.mxu0 %v6466_v53 }
  0xa5   :  { %4276 = vmatpush1.bf16.msra.mxu1 %v6470_v54  ;;  %4214 = vmatprep.subr.bf16.mxu0 %v6472_v55 }
  0xa6   :  { %4278 = vmatprep.subr.bf16.mxu1 %v6475_v59 }
  0xa8   :  { %4216 = vmatpush1.bf16.msra.mxu0 %v6478_v2 }
  0xa9   :  { %4280 = vmatpush1.bf16.msra.mxu1 %v6482_v3  ;;  %4218 = vmatprep.subr.bf16.mxu0 %v6484_v5 }
  0xaa   :  { %4282 = vmatprep.subr.bf16.mxu1 %v6487_v11 }
  0xac   :  { %4220 = vmatpush1.bf16.msra.mxu0 %v6490_v20 }
  0xad   :  { %4284 = vmatpush1.bf16.msra.mxu1 %v6494_v21  ;;  %4222 = vmatprep.subr.bf16.mxu0 %v6496_v23 }
  0xae   :  { %4286 = vmatprep.subr.bf16.mxu1 %v6499_v29 }
  0xb0   :  { %4224 = vmatpush1.bf16.msra.mxu0 %v6502_v38 }
  0xb1   :  { %4288 = vmatpush1.bf16.msra.mxu1 %v6506_v39  ;;  %4226 = vmatprep.subr.bf16.mxu0 %v6508_v40 }
  0xb2   :  { %4290 = vmatprep.subr.bf16.mxu1 %v6511_v47 }
  0xb4   :  { %4228 = vmatpush1.bf16.msra.mxu0 %v6514_v56 }
  0xb5   :  { %4292 = vmatpush1.bf16.msra.mxu1 %v6518_v57  ;;  %4230 = vmatprep.subr.bf16.mxu0 %v6520_v58 }
  0xb6   :  { %4294 = vmatprep.subr.bf16.mxu1 %v6523_v63  ;;  %v6930_v63 = vld [vmem:[%s8176_s3] sm:$0xff] }
  0xb8   :  { %4232 = vmatpush1.bf16.msra.mxu0 %v6526_v14 }
  0xb9   :  { %4296 = vmatpush1.bf16.msra.mxu1 %v6530_v15  ;;  %4234 = vmatprep.subr.bf16.mxu0 %v6532_v16 }
  0xba   :  { %4298 = vmatprep.subr.bf16.mxu1 %v6535_v26 }
  0xbc   :  { %4236 = vmatpush1.bf16.msra.mxu0 %v6538_v43 }
  0xbd   :  { %4300 = vmatpush1.bf16.msra.mxu1 %v6542_v44  ;;  %4238 = vmatprep.subr.bf16.mxu0 %v6544_v45 }
  0xbe   :  { %4302 = vmatprep.subr.bf16.mxu1 %v8584_v62  ;;  %v8595_v62 = vld [vmem:[#allocation60_spill] sm:$0xff] }
  0xc0   :  { %4240 = vmatpush1.bf16.msra.mxu0 %v8585_v60  ;;  %v8596_v60 = vld [vmem:[#allocation61_spill] sm:$0xff] }
  0xc1   :  { %4304 = vmatpush1.bf16.msra.mxu1 %v8586_v33  ;;  %4242 = vmatprep.subr.bf16.mxu0 %v8587_v61  ;;  %v8597_v33 = vld [vmem:[#allocation62_spill] sm:$0xff]  ;;  %v8598_v61 = vld [vmem:[#allocation63_spill] sm:$0xff] }
  0xc2   :  { %4306 = vmatprep.subr.bf16.mxu1 %v8588_v19  ;;  %v8599_v19 = vld [vmem:[#allocation64_spill] sm:$0xff] }
  0xc4   :  { %4244 = vmatpush1.bf16.msra.mxu0 %v8589_v35  ;;  %v8600_v35 = vld [vmem:[#allocation65_spill] sm:$0xff] }
  0xc5   :  { %4308 = vmatpush1.bf16.msra.mxu1 %v8590_v6  ;;  %4246 = vmatprep.subr.bf16.mxu0 %v8591_v30  ;;  %v8601_v6 = vld [vmem:[#allocation66_spill] sm:$0xff]  ;;  %v8602_v30 = vld [vmem:[#allocation67_spill] sm:$0xff] }
  0xc6   :  { %4310 = vmatprep.subr.bf16.mxu1 %v8592_v24  ;;  %v8603_v24 = vld [vmem:[#allocation68_spill] sm:$0xff] }
  0xc8   :  { %4248 = vmatpush1.bf16.msra.mxu0 %v8593_v12  ;;  %v8604_v12 = vld [vmem:[#allocation69_spill] sm:$0xff] }
  0xc9   :  { %4312 = vmatpush1.bf16.msra.mxu1 %v8594_v31  ;;  %4250 = vmatprep.subr.bf16.mxu0 %v8595_v62  ;;  %v8605_v31 = vld [vmem:[#allocation70_spill] sm:$0xff]  ;;  %v8606_v62 = vld [vmem:[#allocation71_spill] sm:$0xff] }
  0xca   :  { %4314 = vmatprep.subr.bf16.mxu1 %v8596_v60  ;;  %v8607_v60 = vld [vmem:[#allocation72_spill] sm:$0xff] }
  0xcc   :  { %4252 = vmatpush1.bf16.msra.mxu0 %v8597_v33  ;;  %v8608_v33 = vld [vmem:[#allocation73_spill] sm:$0xff] }
  0xcd   :  { %4316 = vmatpush1.bf16.msra.mxu1 %v8598_v61  ;;  %4254 = vmatprep.subr.bf16.mxu0 %v8599_v19 }
  0xce   :  { %4318 = vmatprep.subr.bf16.mxu1 %v8600_v35 }
  0xd0   :  { %4256 = vmatpush1.bf16.msra.mxu0 %v8601_v6 }
  0xd1   :  { %4320 = vmatpush1.bf16.msra.mxu1 %v8602_v30  ;;  %4258 = vmatprep.subr.bf16.mxu0 %v8603_v24  ;;  %v45_v30 = vlaneseq }
  0xd2   :  { %4322 = vmatprep.subr.bf16.mxu1 %v8604_v12 }
  0xd3   :  { %v6895_v24 = vshrl.u32 %v45_v30, 7 }
  0xd4   :  { %4260 = vmatpush1.bf16.msra.mxu0 %v8605_v31 }
  0xd5   :  { %4324 = vmatpush1.bf16.msra.mxu1 %v8606_v62  ;;  %4326 = vmatprep.subr.bf16.mxu0 %v8607_v60  ;;  %v6898_v12 = vsub.s32 0, %v6895_v24  ;;  %v6903_v60 = vld [vmem:[%s8174_s1] sm:$0x77]  ;;  %v6911_v31 = vsub.s32 1, %v6895_v24  ;;  %v6914_v30 = vsub.s32 4, %v6895_v24  ;;  %v6922_v16 = vsub.s32 2, %v6895_v24 }
  0xd6   :  { %4390 = vmatprep.subr.bf16.mxu1 %v8608_v33  ;;  %v40_v33 = vld [vmem:[%s8174_s1 + $0x8] sm:$0x77]  ;;  %v6933_v58 = vsub.s32 5, %v6895_v24  ;;  %v59_v47 = vsub.s32 3, %v6895_v24  ;;  %v6964_v3 = vsub.s32 6, %v6895_v24 }
  0xd7   :  { %v97_v62 = vrot.slane %v6903_v60, %v6898_v12  ;;  %v105_v45 = vrot.slane %v40_v33, %v6898_v12  ;;  %v109_v44 = vrot.slane %v40_v33, %v6914_v30  ;;  %v189_v15 = vrot.slane %v6903_v60, %v6911_v31 }
  0xd8   :  { %v197_v57 = vrot.slane %v40_v33, %v6911_v31  ;;  %v101_v56 = vrot.slane %v6903_v60, %v6914_v30  ;;  %v201_v40 = vrot.slane %v40_v33, %v6933_v58  ;;  %v48_v38 = vrot.slane %v6930_v63, %v6898_v12 }
  0xd9   :  { %v137_v26 = vrot.slane %v97_v62, %v6898_v12  ;;  %v145_v14 = vrot.slane %v105_v45, %v6898_v12  ;;  %v6939_v62 = vld [vmem:[%s8174_s1 + $0x10] sm:$0x77]  ;;  %v149_v45 = vrot.slane %v109_v44, %v6898_v12  ;;  %v229_v29 = vrot.slane %v189_v15, %v6911_v31 }
  0xda   :  { %v281_v23 = vrot.slane %v6903_v60, %v6922_v16  ;;  %v56_v20 = vrot.slane %v6930_v63, %v6922_v16  ;;  %v237_v44 = vrot.slane %v197_v57, %v6911_v31  ;;  %v289_v5 = vrot.slane %v40_v33, %v6922_v16 }
  0xdb   :  { %v117_v15 = vrot.slane %v6939_v62, %v6914_v30  ;;  %v60_v2 = vrot.slane %v6930_v63, %v59_v47  ;;  %v193_v57 = vrot.slane %v6903_v60, %v6933_v58  ;;  %v241_v59 = vrot.slane %v201_v40, %v6911_v31 }
  0xdc   :  { %v293_v53 = vrot.slane %v40_v33, %v6964_v3  ;;  %v321_v46 = vrot.slane %v281_v23, %v6922_v16  ;;  %v52_v23 = vrot.slane %v6930_v63, %v6911_v31 }
  0xdd   :  { %v157_v40 = vrot.slane %v117_v15, %v6898_v12 }
  0xde   :  { %v333_v33 = vrot.slane %v293_v53, %v6922_v16  ;;  %v7003_v53 = vld [vmem:[%s8174_s1 + $0x18] sm:$0x77] }
  0xe1   :  { %v6918_v43 = vpop.permute.xlu0 %87 }
  0xe2   :  { %v166_v39 = vmul.f32 %v137_v26, %v6918_v43  ;;  %v168_v21 = vmul.f32 %v145_v14, %v6918_v43  ;;  %v113_v26 = vrot.slane %v6939_v62, %v6898_v12  ;;  %v141_v14 = vrot.slane %v101_v56, %v6898_v12  ;;  %v6977_v47 = vpop.permute.xlu1 %275 }
  0xe3   :  { %v169_v42 = vmul.f32 %v149_v45, %v6918_v43  ;;  %v329_v56 = vrot.slane %v289_v5, %v6922_v16  ;;  %v209_v5 = vrot.slane %v6939_v62, %v6933_v58  ;;  %v350_v45 = vmul.f32 %v321_v46, %v6977_v47 }
  0xe4   :  { %v174_v55 = vadd.f32 %v166_v39, %v48_v38  ;;  %v176_v41 = vadd.f32 %v168_v21, %v56_v20  ;;  %v153_v32 = vrot.slane %v113_v26, %v6898_v12  ;;  %v167_v38 = vmul.f32 %v141_v14, %v6918_v43 }
  0xe5   :  { %v233_v20 = vrot.slane %v193_v57, %v6911_v31  ;;  %v285_v21 = vrot.slane %v6903_v60, %v6964_v3  ;;  %v352_v14 = vmul.f32 %v329_v56, %v6977_v47  ;;  %v64_v57 = vrot.slane %v6930_v63, %v6914_v30 }
  0xe6   :  { %v6956_v11 = vpop.permute.xlu0 %183  ;;  %v68_v60 = vrot.slane %v6930_v63, %v6933_v58  ;;  %v175_v46 = vadd.f32 %v167_v38, %v52_v23  ;;  %v171_v56 = vmul.f32 %v157_v40, %v6918_v43  ;;  %v353_v38 = vmul.f32 %v333_v33, %v6977_v47 }
  0xe7   :  { %v258_v54 = vmul.f32 %v229_v29, %v6956_v11  ;;  %v260_v37 = vmul.f32 %v237_v44, %v6956_v11  ;;  %v205_v29 = vrot.slane %v6939_v62, %v6911_v31  ;;  %v177_v44 = vadd.f32 %v169_v42, %v60_v2 }
  0xe8   :  { %v261_v26 = vmul.f32 %v241_v59, %v6956_v11  ;;  %v259_v42 = vmul.f32 %v233_v20, %v6956_v11  ;;  %v301_v59 = vrot.slane %v6939_v62, %v6964_v3  ;;  %v121_v20 = vrot.slane %v7003_v53, %v6898_v12 }
  0xe9   :  { %v266_v39 = vadd.f32 %v258_v54, %v174_v55  ;;  %v268_v15 = vadd.f32 %v260_v37, %v176_v41  ;;  %v245_v28 = vrot.slane %v205_v29, %v6911_v31  ;;  %v297_v37 = vrot.slane %v6939_v62, %v6922_v16 }
  0xea   :  { %v325_v41 = vrot.slane %v285_v21, %v6922_v16  ;;  %v170_v54 = vmul.f32 %v153_v32, %v6918_v43  ;;  %v249_v55 = vrot.slane %v209_v5, %v6911_v31  ;;  %v269_v29 = vadd.f32 %v261_v26, %v177_v44 }
  0xeb   :  { %v7013_v2 = vadd.f32 %v350_v45, %v266_v39  ;;  %v7017_v23 = vadd.f32 %v352_v14, %v268_v15  ;;  %v125_v32 = vrot.slane %v7003_v53, %v6914_v30  ;;  %v267_v21 = vadd.f32 %v259_v42, %v175_v46 }
  0xec   :  { %v337_v5 = vrot.slane %v297_v37, %v6922_v16  ;;  %v351_v62 = vmul.f32 %v325_v41, %v6977_v47  ;;  %v178_v39 = vadd.f32 %v170_v54, %v64_v57  ;;  %v262_v45 = vmul.f32 %v245_v28, %v6956_v11 }
  0xed   :  { %8609 = vst [vmem:[#allocation136_spill] sm:$0xff] %v7017_v23  ;;  %v341_v40 = vrot.slane %v301_v59, %v6922_v16  ;;  %v179_v44 = vadd.f32 %v171_v56, %v68_v60  ;;  %v263_v26 = vmul.f32 %v249_v55, %v6956_v11  ;;  %v7030_v15 = vadd.f32 %v353_v38, %v269_v29 }
  0xee   :  { %v161_v14 = vrot.slane %v121_v20, %v6898_v12  ;;  %v213_v57 = vrot.slane %v7003_v53, %v6911_v31  ;;  %v75_v28 = vsub.s32 7, %v6895_v24  ;;  %v217_v46 = vrot.slane %v7003_v53, %v6933_v58 }
  0xef   :  { %8610 = vst [vmem:[#allocation137_spill] sm:$0xff] %v7030_v15  ;;  %v7040_v42 = vadd.f32 %v351_v62, %v267_v21  ;;  %v270_v60 = vadd.f32 %v262_v45, %v178_v39  ;;  %v354_v37 = vmul.f32 %v337_v5, %v6977_v47  ;;  %v271_v54 = vadd.f32 %v263_v26, %v179_v44 }
  0xf0   :  { %v172_v24 = vmul.f32 %v161_v14, %v6918_v43  ;;  %v72_v58 = vrot.slane %v6930_v63, %v6964_v3  ;;  %v253_v56 = vrot.slane %v213_v57, %v6911_v31  ;;  %v76_v29 = vrot.slane %v6930_v63, %v75_v28 }
  0xf1   :  { %v257_v38 = vrot.slane %v217_v46, %v6911_v31  ;;  %v7060_v21 = vadd.f32 %v354_v37, %v270_v60 }
  0xf2   :  { %v180_v45 = vadd.f32 %v172_v24, %v72_v58  ;;  %v264_v63 = vmul.f32 %v253_v56, %v6956_v11 }
  0xf3   :  { %v265_v26 = vmul.f32 %v257_v38, %v6956_v11 }
  0xf4   :  { %v272_v28 = vadd.f32 %v264_v63, %v180_v45 }
 0x12a   :  { %v6887_v61 = vpop.f32.mrb[0].mxu0 }
 0x12b   :  { %v6889_v19 = vpop.f32.mrb[1].mxu0  ;;  %v6891_v35 = vpop.f32.mrb[0].mxu1  ;;  %v906_v33 = vadd.f32 %v6887_v61, %v7013_v2  ;;  %v165_v61 = vrot.slane %v125_v32, %v6898_v12  ;;  %v305_v12 = vrot.slane %v7003_v53, %v6922_v16 }
 0x12c   :  { %v6893_v6 = vpop.f32.mrb[1].mxu1  ;;  %v908_v30 = vadd.f32 %v6891_v35, %v7017_v23  ;;  %v355_v35 = vmul.f32 %v341_v40, %v6977_v47  ;;  %v907_v20 = vadd.f32 %v6889_v19, %v7040_v42 }
 0x12d   :  { %v3826_v41 = vmul.f32 -1.442695, %v906_v33  ;;  %v909_v59 = vadd.f32 %v6893_v6, %v7030_v15  ;;  %v173_v32 = vmul.f32 %v165_v61, %v6918_v43  ;;  %v309_v6 = vrot.slane %v7003_v53, %v6964_v3 }
 0x12e   :  { %v3828_v55 = vmul.f32 -1.442695, %v908_v30  ;;  %v7062_v5 = vadd.f32 %v355_v35, %v271_v54  ;;  %v345_v31 = vrot.slane %v305_v12, %v6922_v16  ;;  %v3827_v33 = vmul.f32 -1.442695, %v907_v20 }
 0x12f   :  { %6033 = vpow2.f32 %v3826_v41  ;;  %v3829_v62 = vmul.f32 -1.442695, %v909_v59  ;;  %v181_v44 = vadd.f32 %v173_v32, %v76_v29  ;;  %v349_v30 = vrot.slane %v309_v6, %v6922_v16 }
 0x130   :  { %6035 = vpow2.f32 %v3828_v55  ;;  %v356_v46 = vmul.f32 %v345_v31, %v6977_v47 }
 0x131   :  { %6037 = vpow2.f32 %v3829_v62  ;;  %v273_v61 = vadd.f32 %v265_v26, %v181_v44  ;;  %v357_v60 = vmul.f32 %v349_v30, %v6977_v47 }
 0x132   :  { %v7072_v41 = vadd.f32 %v356_v46, %v272_v28 }
 0x133   :  { %v7074_v35 = vadd.f32 %v357_v60, %v273_v61 }
 0x139   :  { %v6034_v37 = vpop.eup %6033 }
 0x13a   :  { %v6036_v54 = vpop.eup %6035  ;;  %v938_v16 = vadd.f32 1.0, %v6034_v37 }
 0x13b   :  { %v940_v55 = vadd.f32 1.0, %v6036_v54  ;;  %v6038_v24 = vpop.eup %6037 }
 0x13c   :  { %v941_v20 = vadd.f32 1.0, %v6038_v24  ;;  %v8611_v24 = vld [vmem:[#allocation74_spill] sm:$0xff] }
 0x16a   :  { %v830_v39 = vpop.f32.mrb[2].mxu0 }
 0x16b   :  { %v910_v19 = vadd.f32 %v830_v39, %v7060_v21  ;;  %v901_v40 = vpop.f32.mrb[2].mxu1  ;;  %v832_v43 = vpop.f32.mrb[3].mxu0 }
 0x16c   :  { %v911_v3 = vadd.f32 %v832_v43, %v7062_v5  ;;  %v903_v53 = vpop.f32.mrb[3].mxu1  ;;  %v912_v11 = vadd.f32 %v901_v40, %v7072_v41 }
 0x16d   :  { %v3830_v14 = vmul.f32 -1.442695, %v910_v19  ;;  %v913_v59 = vadd.f32 %v903_v53, %v7074_v35 }
 0x16e   :  { %v3831_v57 = vmul.f32 -1.442695, %v911_v3  ;;  %v3832_v56 = vmul.f32 -1.442695, %v912_v11 }
 0x16f   :  { %6039 = vpow2.f32 %v3830_v14  ;;  %v3833_v38 = vmul.f32 -1.442695, %v913_v59 }
 0x170   :  { %6041 = vpow2.f32 %v3827_v33 }
 0x171   :  { %6043 = vpow2.f32 %v3831_v57 }
 0x172   :  { %6045 = vrcp.f32 %v938_v16 }
 0x173   :  { %6047 = vrcp.f32 %v940_v55 }
 0x179   :  { %v6040_v58 = vpop.eup %6039 }
 0x17a   :  { %v6042_v12 = vpop.eup %6041  ;;  %v942_v29 = vadd.f32 1.0, %v6040_v58  ;;  %v8612_v58 = vld [vmem:[#allocation75_spill] sm:$0xff] }
 0x17b   :  { %v6044_v47 = vpop.eup %6043  ;;  %v939_v6 = vadd.f32 1.0, %v6042_v12  ;;  %v8614_v12 = vld [vmem:[#allocation77_spill] sm:$0xff] }
 0x17c   :  { %6049 = vrcp.f32 %v942_v29  ;;  %v943_v32 = vadd.f32 1.0, %v6044_v47  ;;  %v6046_v62 = vpop.eup %6045  ;;  %v8615_v29 = vld [vmem:[#allocation78_spill] sm:$0xff]  ;;  %v8616_v47 = vld [vmem:[#allocation79_spill] sm:$0xff] }
 0x17d   :  { %6051 = vpow2.f32 %v3832_v56  ;;  %v6048_v39 = vpop.eup %6047  ;;  %v8613_v56 = vld [vmem:[#allocation76_spill] sm:$0xff] }
 0x17e   :  { %6053 = vrcp.f32 %v943_v32  ;;  %v966_v44 = vmul.f32 0.0, %v6048_v39  ;;  %v8619_v32 = vld [vmem:[#allocation82_spill] sm:$0xff]  ;;  %v8622_v39 = vld [vmem:[#allocation85_spill] sm:$0xff] }
 0x17f   :  { %6055 = vpow2.f32 %v3833_v38  ;;  %v8617_v38 = vld [vmem:[#allocation80_spill] sm:$0xff] }
 0x180   :  { %6057 = vrcp.f32 %v941_v20  ;;  %v8618_v20 = vld [vmem:[#allocation81_spill] sm:$0xff] }
 0x181   :  { %6059 = vrcp.f32 %v939_v6  ;;  %v8620_v6 = vld [vmem:[#allocation83_spill] sm:$0xff] }
 0x186   :  { %v6050_v45 = vpop.eup %6049 }
 0x187   :  { %v6052_v63 = vpop.eup %6051  ;;  %v962_v31 = vmul.f32 2.0, %v6050_v45  ;;  %v8623_v45 = vld [vmem:[#allocation86_spill] sm:$0xff] }
 0x188   :  { %v6054_v19 = vpop.eup %6053  ;;  %v944_v53 = vadd.f32 1.0, %v6052_v63  ;;  %v8624_v63 = vld [vmem:[#allocation87_spill] sm:$0xff] }
 0x189   :  { %v6056_v40 = vpop.eup %6055  ;;  %v3834_v43 = vadd.f32 -1.0, %v962_v31  ;;  %v963_v33 = vmul.f32 2.0, %v6054_v19  ;;  %v8625_v31 = vld [vmem:[#allocation88_spill] sm:$0xff]  ;;  %v8626_v19 = vld [vmem:[#allocation89_spill] sm:$0xff] }
 0x18a   :  { %v6058_v3 = vpop.eup %6057  ;;  %v945_v57 = vadd.f32 1.0, %v6056_v40  ;;  %6061 = vrcp.f32 %v944_v53  ;;  %v8627_v40 = vld [vmem:[#allocation90_spill] sm:$0xff] }
 0x18b   :  { %v968_v26 = vmul.f32 %v6046_v62, %v3834_v43  ;;  %v3835_v30 = vadd.f32 -1.0, %v963_v33  ;;  %v6060_v14 = vpop.eup %6059  ;;  %v967_v28 = vmul.f32 0.0, %v6058_v3  ;;  %v8621_v62 = vld [vmem:[#allocation84_spill] sm:$0xff]  ;;  %v8628_v43 = vld [vmem:[#allocation91_spill] sm:$0xff]  ;;  %v8630_v3 = vld [vmem:[#allocation93_spill] sm:$0xff] }
 0x18c   :  { %v8629_v33 = vld [vmem:[#allocation92_spill] sm:$0xff]  ;;  %v8631_v53 = vld [vmem:[#allocation94_spill] sm:$0xff] }
 0x18d   :  { %v7078_v46 = vadd.f32 %v968_v26, %v966_v44  ;;  %v969_v61 = vmul.f32 %v6060_v14, %v3835_v30  ;;  %v8632_v44 = vld [vmem:[#allocation95_spill] sm:$0xff]  ;;  %v8633_v26 = vld [vmem:[#allocation96_spill] sm:$0xff]  ;;  %v8634_v30 = vld [vmem:[#allocation97_spill] sm:$0xff] }
 0x18e   :  { %v8635_v14 = vld [vmem:[#allocation98_spill] sm:$0xff] }
 0x18f   :  { %6063 = vtanh.f32 %v7078_v46  ;;  %v7081_v60 = vadd.f32 %v969_v61, %v967_v28  ;;  %v8637_v28 = vld [vmem:[#allocation101_spill] sm:$0xff]  ;;  %v8638_v61 = vld [vmem:[#allocation102_spill] sm:$0xff] }
 0x190   :  { %6065 = vrcp.f32 %v945_v57  ;;  %v8636_v57 = vld [vmem:[#allocation100_spill] sm:$0xff] }
 0x191   :  { %6067 = vtanh.f32 %v7081_v60 }
 0x194   :  { %v6062_v37 = vpop.eup %6061 }
 0x199   :  { %v6064_v54 = vpop.eup %6063 }
 0x19a   :  { %v6066_v11 = vpop.eup %6065  ;;  %v7084_v16 = vmul.f32 %v6064_v54, %v6062_v37  ;;  %v8639_v37 = vld [vmem:[#allocation103_spill] sm:$0xff]  ;;  %v8640_v54 = vld [vmem:[#allocation104_spill] sm:$0xff] }
 0x19b   :  { %v6068_v55 = vpop.eup %6067 }
 0x19c   :  { %v975_v59 = vmul.f32 %v6068_v55, %v6066_v11  ;;  %v8641_v11 = vld [vmem:[#allocation105_spill] sm:$0xff]  ;;  %v8642_v55 = vld [vmem:[#allocation106_spill] sm:$0xff] }
 0x19e   :  { %1040 = vmatprep.mubr.f32.mxu0 %v975_v59  ;;  %1111 = vmatprep.mubr.f32.mxu1 %v975_v59 }
 0x19f   :  { %1041 = vmatmul.mubr.f32.vlgmr.msra.gmra.mrb[4].mxu0 %v7084_v16  ;;  %1112 = vmatmul.mubr.f32.vlgmr.msra.gmra.mrb[4].mxu1 %v7084_v16 }
 0x1a0   :  { %4328 = vmatpush1.bf16.msra.mxu0 %v8611_v24  ;;  %4392 = vmatpush1.bf16.msra.mxu1 %v8612_v58 }
 0x1a1   :  { %1182 = vmatprep.mubr.f32.mxu0 %v975_v59  ;;  %1253 = vmatprep.mubr.f32.mxu1 %v975_v59  ;;  %v8643_v59 = vld [vmem:[#allocation107_spill] sm:$0xff] }
 0x1a2   :  { %4330 = vmatprep.subr.bf16.mxu0 %v8613_v56  ;;  %4394 = vmatprep.subr.bf16.mxu1 %v8614_v12 }
 0x1a4   :  { %4332 = vmatpush1.bf16.msra.mxu0 %v8615_v29  ;;  %4396 = vmatpush1.bf16.msra.mxu1 %v8616_v47 }
 0x1a5   :  { %4334 = vmatprep.subr.bf16.mxu0 %v8617_v38  ;;  %4398 = vmatprep.subr.bf16.mxu1 %v8618_v20 }
 0x1a8   :  { %4336 = vmatpush1.bf16.msra.mxu0 %v8619_v32  ;;  %4400 = vmatpush1.bf16.msra.mxu1 %v8620_v6 }
 0x1a9   :  { %4338 = vmatprep.subr.bf16.mxu0 %v8621_v62  ;;  %4402 = vmatprep.subr.bf16.mxu1 %v8622_v39 }
 0x1ac   :  { %4340 = vmatpush1.bf16.msra.mxu0 %v8623_v45  ;;  %4404 = vmatpush1.bf16.msra.mxu1 %v8624_v63 }
 0x1ad   :  { %4342 = vmatprep.subr.bf16.mxu0 %v8625_v31  ;;  %4406 = vmatprep.subr.bf16.mxu1 %v8626_v19 }
 0x1b0   :  { %4344 = vmatpush1.bf16.msra.mxu0 %v8627_v40  ;;  %4408 = vmatpush1.bf16.msra.mxu1 %v8628_v43 }
 0x1b1   :  { %4346 = vmatprep.subr.bf16.mxu0 %v8629_v33  ;;  %4410 = vmatprep.subr.bf16.mxu1 %v8630_v3 }
 0x1b4   :  { %4348 = vmatpush1.bf16.msra.mxu0 %v8631_v53  ;;  %4412 = vmatpush1.bf16.msra.mxu1 %v8632_v44 }
 0x1b5   :  { %4350 = vmatprep.subr.bf16.mxu0 %v8633_v26  ;;  %4414 = vmatprep.subr.bf16.mxu1 %v8634_v30  ;;  %v8644_v30 = vld [vmem:[#allocation108_spill] sm:$0xff] }
 0x1b8   :  { %4352 = vmatpush1.bf16.msra.mxu0 %v8635_v14  ;;  %4416 = vmatpush1.bf16.msra.mxu1 %v6705_v36  ;;  %v8645_v14 = vld [vmem:[#allocation109_spill] sm:$0xff]  ;;  %v8646_v36 = vld [vmem:[#allocation110_spill] sm:$0xff] }
 0x1b9   :  { %4354 = vmatprep.subr.bf16.mxu0 %v8636_v57  ;;  %4418 = vmatprep.subr.bf16.mxu1 %v8637_v28  ;;  %v8647_v57 = vld [vmem:[#allocation111_spill] sm:$0xff]  ;;  %v8648_v28 = vld [vmem:[#allocation112_spill] sm:$0xff] }
 0x1bc   :  { %4356 = vmatpush1.bf16.msra.mxu0 %v8638_v61  ;;  %4420 = vmatpush1.bf16.msra.mxu1 %v8639_v37  ;;  %v8649_v61 = vld [vmem:[#allocation113_spill] sm:$0xff]  ;;  %v8650_v37 = vld [vmem:[#allocation114_spill] sm:$0xff] }
 0x1bd   :  { %4358 = vmatprep.subr.bf16.mxu0 %v8640_v54  ;;  %4422 = vmatprep.subr.bf16.mxu1 %v8641_v11  ;;  %v8651_v54 = vld [vmem:[#allocation115_spill] sm:$0xff]  ;;  %v8652_v11 = vld [vmem:[#allocation116_spill] sm:$0xff] }
 0x1c0   :  { %4360 = vmatpush1.bf16.msra.mxu0 %v8642_v55  ;;  %4424 = vmatpush1.bf16.msra.mxu1 %v8643_v59  ;;  %v8653_v55 = vld [vmem:[#allocation117_spill] sm:$0xff]  ;;  %v8654_v59 = vld [vmem:[#allocation118_spill] sm:$0xff] }
 0x1c1   :  { %4362 = vmatprep.subr.bf16.mxu0 %v8644_v30  ;;  %4426 = vmatprep.subr.bf16.mxu1 %v8645_v14  ;;  %v8655_v30 = vld [vmem:[#allocation119_spill] sm:$0xff]  ;;  %v8656_v14 = vld [vmem:[#allocation120_spill] sm:$0xff] }
 0x1c4   :  { %4364 = vmatpush1.bf16.msra.mxu0 %v8646_v36  ;;  %4428 = vmatpush1.bf16.msra.mxu1 %v8647_v57  ;;  %v8657_v36 = vld [vmem:[#allocation121_spill] sm:$0xff]  ;;  %v8658_v57 = vld [vmem:[#allocation122_spill] sm:$0xff] }
 0x1c5   :  { %4366 = vmatprep.subr.bf16.mxu0 %v8648_v28  ;;  %4430 = vmatprep.subr.bf16.mxu1 %v8649_v61  ;;  %v8659_v28 = vld [vmem:[#allocation123_spill] sm:$0xff] }
 0x1c8   :  { %4368 = vmatpush1.bf16.msra.mxu0 %v8650_v37  ;;  %4432 = vmatpush1.bf16.msra.mxu1 %v8651_v54  ;;  %v8660_v37 = vld [vmem:[#allocation125_spill] sm:$0xff] }
 0x1c9   :  { %4370 = vmatprep.subr.bf16.mxu0 %v8652_v11  ;;  %4434 = vmatprep.subr.bf16.mxu1 %v8653_v55 }
 0x1cc   :  { %4372 = vmatpush1.bf16.msra.mxu0 %v8654_v59  ;;  %4436 = vmatpush1.bf16.msra.mxu1 %v8655_v30 }
 0x1cd   :  { %4374 = vmatprep.subr.bf16.mxu0 %v8656_v14  ;;  %4438 = vmatprep.subr.bf16.mxu1 %v8657_v36 }
 0x1d0   :  { %4376 = vmatpush1.bf16.msra.mxu0 %v8658_v57  ;;  %4440 = vmatpush1.bf16.msra.mxu1 %v8659_v28 }
 0x1d1   :  { %4378 = vmatprep.subr.bf16.mxu0 %v6780_v52  ;;  %4442 = vmatprep.subr.bf16.mxu1 %v8660_v37 }
 0x1d4   :  { %4380 = vmatpush1.bf16.msra.mxu0 %v6786_v49  ;;  %4444 = vmatpush1.bf16.msra.mxu1 %v6790_v51 }
 0x1d5   :  { %4382 = vmatprep.subr.bf16.mxu0 %v6792_v1  ;;  %4446 = vmatprep.subr.bf16.mxu1 %v6795_v0  ;;  %v1347_v0 = vrot.slane %v7081_v60, 7 }
 0x1d8   :  { %4384 = vmatpush1.bf16.msra.mxu0 %v6798_v48  ;;  %4448 = vmatpush1.bf16.msra.mxu1 %v6802_v25 }
 0x1d9   :  { %4386 = vmatprep.subr.bf16.mxu0 %v6804_v7  ;;  %4450 = vmatprep.subr.bf16.mxu1 %v6807_v10 }
 0x1dc   :  { %4388 = vmatpush1.bf16.msra.mxu0 %v6810_v50  ;;  %4452 = vmatpush1.bf16.msra.mxu1 %v6814_v34  ;;  %v8661_v34 = vld [vmem:[#allocation16_spill] sm:$0xff]  ;;  %v8664_v50 = vld [vmem:[#allocation19_spill] sm:$0xff] }
 0x1dd   :  { %4454 = vmatprep.subr.bf16.mxu0 %v6426_v4  ;;  %4518 = vmatprep.subr.bf16.mxu1 %v6428_v8  ;;  %v8662_v4 = vld [vmem:[#allocation17_spill] sm:$0xff]  ;;  %v8663_v8 = vld [vmem:[#allocation18_spill] sm:$0xff] }
 0x1df   :  { %1183 = vmatmul.mubr.f32.vlgmr.msra.gmra.mrb[6].mxu0 %v7084_v16  ;;  %1254 = vmatmul.mubr.f32.vlgmr.msra.gmra.mrb[6].mxu1 %v7084_v16  ;;  %v8665_v16 = vld [vmem:[#allocation20_spill] sm:$0xff] }
 0x1e0   :  { %4456 = vmatpush1.bf16.msra.mxu0 %v6430_v9  ;;  %4520 = vmatpush1.bf16.msra.mxu1 %v6433_v13  ;;  %v8666_v9 = vld [vmem:[#allocation21_spill] sm:$0xff]  ;;  %v8667_v13 = vld [vmem:[#allocation22_spill] sm:$0xff] }
 0x1e1   :  { %4458 = vmatprep.subr.bf16.mxu0 %v6437_v17  ;;  %4522 = vmatprep.subr.bf16.mxu1 %v6439_v18  ;;  %v8668_v17 = vld [vmem:[#allocation23_spill] sm:$0xff]  ;;  %v8669_v18 = vld [vmem:[#allocation24_spill] sm:$0xff] }
 0x1e4   :  { %4460 = vmatpush1.bf16.msra.mxu0 %v6442_v22  ;;  %4524 = vmatpush1.bf16.msra.mxu1 %v6446_v27  ;;  %v8670_v22 = vld [vmem:[#allocation25_spill] sm:$0xff]  ;;  %v8671_v27 = vld [vmem:[#allocation26_spill] sm:$0xff] }
 0x1e5   :  { %4462 = vmatprep.subr.bf16.mxu0 %v8661_v34  ;;  %4526 = vmatprep.subr.bf16.mxu1 %v8662_v4  ;;  %v8672_v34 = vld [vmem:[#allocation27_spill] sm:$0xff]  ;;  %v8673_v4 = vld [vmem:[#allocation28_spill] sm:$0xff] }
 0x1e8   :  { %4464 = vmatpush1.bf16.msra.mxu0 %v8663_v8  ;;  %4528 = vmatpush1.bf16.msra.mxu1 %v8664_v50  ;;  %v8674_v8 = vld [vmem:[#allocation29_spill] sm:$0xff]  ;;  %v8675_v50 = vld [vmem:[#allocation30_spill] sm:$0xff] }
 0x1e9   :  { %4466 = vmatprep.subr.bf16.mxu0 %v8665_v16  ;;  %4530 = vmatprep.subr.bf16.mxu1 %v8666_v9  ;;  %v8676_v16 = vld [vmem:[#allocation31_spill] sm:$0xff]  ;;  %v8677_v9 = vld [vmem:[#allocation32_spill] sm:$0xff] }
 0x1ec   :  { %4468 = vmatpush1.bf16.msra.mxu0 %v8667_v13  ;;  %4532 = vmatpush1.bf16.msra.mxu1 %v8668_v17  ;;  %v8678_v13 = vld [vmem:[#allocation33_spill] sm:$0xff]  ;;  %v8679_v17 = vld [vmem:[#allocation34_spill] sm:$0xff] }
 0x1ed   :  { %4470 = vmatprep.subr.bf16.mxu0 %v8669_v18  ;;  %4534 = vmatprep.subr.bf16.mxu1 %v8670_v22  ;;  %v8680_v18 = vld [vmem:[#allocation35_spill] sm:$0xff]  ;;  %v8681_v22 = vld [vmem:[#allocation36_spill] sm:$0xff] }
 0x1f0   :  { %4472 = vmatpush1.bf16.msra.mxu0 %v8671_v27  ;;  %4536 = vmatpush1.bf16.msra.mxu1 %v8672_v34  ;;  %v8682_v27 = vld [vmem:[#allocation37_spill] sm:$0xff]  ;;  %v8683_v34 = vld [vmem:[#allocation38_spill] sm:$0xff] }
 0x1f1   :  { %4474 = vmatprep.subr.bf16.mxu0 %v8673_v4  ;;  %4538 = vmatprep.subr.bf16.mxu1 %v8674_v8  ;;  %v8684_v4 = vld [vmem:[#allocation39_spill] sm:$0xff]  ;;  %v8685_v8 = vld [vmem:[#allocation40_spill] sm:$0xff] }
 0x1f4   :  { %4476 = vmatpush1.bf16.msra.mxu0 %v8675_v50  ;;  %4540 = vmatpush1.bf16.msra.mxu1 %v8676_v16  ;;  %v8686_v50 = vld [vmem:[#allocation41_spill] sm:$0xff]  ;;  %v8687_v16 = vld [vmem:[#allocation42_spill] sm:$0xff] }
 0x1f5   :  { %4478 = vmatprep.subr.bf16.mxu0 %v8677_v9  ;;  %4542 = vmatprep.subr.bf16.mxu1 %v8678_v13  ;;  %v8688_v9 = vld [vmem:[#allocation43_spill] sm:$0xff]  ;;  %v8689_v13 = vld [vmem:[#allocation44_spill] sm:$0xff] }
 0x1f8   :  { %4480 = vmatpush1.bf16.msra.mxu0 %v8679_v17  ;;  %4544 = vmatpush1.bf16.msra.mxu1 %v8680_v18  ;;  %v8690_v17 = vld [vmem:[#allocation45_spill] sm:$0xff]  ;;  %v8691_v18 = vld [vmem:[#allocation46_spill] sm:$0xff] }
 0x1f9   :  { %4482 = vmatprep.subr.bf16.mxu0 %v8681_v22  ;;  %4546 = vmatprep.subr.bf16.mxu1 %v8682_v27  ;;  %v8692_v22 = vld [vmem:[#allocation47_spill] sm:$0xff]  ;;  %v8693_v27 = vld [vmem:[#allocation48_spill] sm:$0xff] }
 0x1fc   :  { %4484 = vmatpush1.bf16.msra.mxu0 %v8683_v34  ;;  %4548 = vmatpush1.bf16.msra.mxu1 %v8684_v4  ;;  %v8694_v34 = vld [vmem:[#allocation49_spill] sm:$0xff]  ;;  %v8695_v4 = vld [vmem:[#allocation50_spill] sm:$0xff] }
 0x1fd   :  { %4486 = vmatprep.subr.bf16.mxu0 %v8685_v8  ;;  %4550 = vmatprep.subr.bf16.mxu1 %v8686_v50  ;;  %v8696_v8 = vld [vmem:[#allocation51_spill] sm:$0xff]  ;;  %v8697_v50 = vld [vmem:[#allocation52_spill] sm:$0xff] }
 0x200   :  { %4488 = vmatpush1.bf16.msra.mxu0 %v8687_v16  ;;  %4552 = vmatpush1.bf16.msra.mxu1 %v8688_v9  ;;  %v8698_v16 = vld [vmem:[#allocation53_spill] sm:$0xff]  ;;  %v8699_v9 = vld [vmem:[#allocation54_spill] sm:$0xff] }
 0x201   :  { %4490 = vmatprep.subr.bf16.mxu0 %v8689_v13  ;;  %4554 = vmatprep.subr.bf16.mxu1 %v8690_v17  ;;  %v8700_v13 = vld [vmem:[#allocation55_spill] sm:$0xff]  ;;  %v8701_v17 = vld [vmem:[#allocation56_spill] sm:$0xff] }
 0x204   :  { %4492 = vmatpush1.bf16.msra.mxu0 %v8691_v18  ;;  %4556 = vmatpush1.bf16.msra.mxu1 %v8692_v22  ;;  %v8702_v18 = vld [vmem:[#allocation57_spill] sm:$0xff]  ;;  %v8703_v22 = vld [vmem:[#allocation58_spill] sm:$0xff] }
 0x205   :  { %4494 = vmatprep.subr.bf16.mxu0 %v8693_v27  ;;  %4558 = vmatprep.subr.bf16.mxu1 %v8694_v34  ;;  %v8704_v27 = vld [vmem:[#allocation59_spill] sm:$0xff]  ;;  %v8705_v34 = vld [vmem:[#allocation60_spill] sm:$0xff] }
 0x208   :  { %4496 = vmatpush1.bf16.msra.mxu0 %v8695_v4  ;;  %4560 = vmatpush1.bf16.msra.mxu1 %v8696_v8  ;;  %v8706_v4 = vld [vmem:[#allocation61_spill] sm:$0xff]  ;;  %v8707_v8 = vld [vmem:[#allocation62_spill] sm:$0xff] }
 0x209   :  { %4498 = vmatprep.subr.bf16.mxu0 %v8697_v50  ;;  %4562 = vmatprep.subr.bf16.mxu1 %v8698_v16  ;;  %v8708_v50 = vld [vmem:[#allocation63_spill] sm:$0xff]  ;;  %v8709_v16 = vld [vmem:[#allocation64_spill] sm:$0xff] }
 0x20c   :  { %4500 = vmatpush1.bf16.msra.mxu0 %v8699_v9  ;;  %4564 = vmatpush1.bf16.msra.mxu1 %v8700_v13  ;;  %v8710_v9 = vld [vmem:[#allocation65_spill] sm:$0xff]  ;;  %v8711_v13 = vld [vmem:[#allocation66_spill] sm:$0xff] }
 0x20d   :  { %4502 = vmatprep.subr.bf16.mxu0 %v8701_v17  ;;  %4566 = vmatprep.subr.bf16.mxu1 %v8702_v18  ;;  %v8712_v17 = vld [vmem:[#allocation67_spill] sm:$0xff]  ;;  %v8713_v18 = vld [vmem:[#allocation68_spill] sm:$0xff] }
 0x210   :  { %4504 = vmatpush1.bf16.msra.mxu0 %v8703_v22  ;;  %4568 = vmatpush1.bf16.msra.mxu1 %v8704_v27  ;;  %v8714_v22 = vld [vmem:[#allocation69_spill] sm:$0xff]  ;;  %v8715_v27 = vld [vmem:[#allocation70_spill] sm:$0xff] }
 0x211   :  { %4506 = vmatprep.subr.bf16.mxu0 %v8705_v34  ;;  %4570 = vmatprep.subr.bf16.mxu1 %v8706_v4  ;;  %v8716_v34 = vld [vmem:[#allocation71_spill] sm:$0xff]  ;;  %v8717_v4 = vld [vmem:[#allocation72_spill] sm:$0xff] }
 0x214   :  { %4508 = vmatpush1.bf16.msra.mxu0 %v8707_v8  ;;  %4572 = vmatpush1.bf16.msra.mxu1 %v8708_v50  ;;  %v8718_v8 = vld [vmem:[#allocation73_spill] sm:$0xff] }
 0x215   :  { %4510 = vmatprep.subr.bf16.mxu0 %v8709_v16  ;;  %4574 = vmatprep.subr.bf16.mxu1 %v8710_v9 }
 0x218   :  { %4512 = vmatpush1.bf16.msra.mxu0 %v8711_v13  ;;  %4576 = vmatpush1.bf16.msra.mxu1 %v8712_v17 }
 0x219   :  { %4514 = vmatprep.subr.bf16.mxu0 %v8713_v18  ;;  %4578 = vmatprep.subr.bf16.mxu1 %v8714_v22 }
 0x21c   :  { %4516 = vmatpush1.bf16.msra.mxu0 %v8715_v27  ;;  %4580 = vmatpush1.bf16.msra.mxu1 %v8716_v34 }
 0x21d   :  { %4582 = vmatprep.subr.bf16.mxu0 %v8717_v4  ;;  %4646 = vmatprep.subr.bf16.mxu1 %v8718_v8  ;;  %v1346_v8 = vrot.slane %v7078_v46, 7 }
 0x272   :  { %v1042_v50 = vpop.f32.mrb[4].mxu0  ;;  %v1113_v16 = vpop.f32.mrb[4].mxu1 }
 0x273   :  { %v1270_v10 = vrot.slane %v1113_v16, 7  ;;  %v1044_v9 = vpop.f32.mrb[5].mxu0  ;;  %v1115_v7 = vpop.f32.mrb[5].mxu1 }
 0x274   :  { %v1271_v13 = vrot.slane %v1115_v7, 7 }
 0x275   :  { %v1286_v17 = vadd.f32 %v1270_v10, %v7017_v23  ;;  %v1268_v23 = vrot.slane %v1042_v50, 7 }
 0x276   :  { %v1287_v18 = vadd.f32 %v1271_v13, %v7030_v15  ;;  %v1269_v13 = vrot.slane %v1044_v9, 7 }
 0x277   :  { %v3838_v25 = vmul.f32 -1.442695, %v1286_v17  ;;  %v1284_v17 = vadd.f32 %v1268_v23, %v7013_v2 }
 0x278   :  { %v3839_v22 = vmul.f32 -1.442695, %v1287_v18  ;;  %v1285_v18 = vadd.f32 %v1269_v13, %v7040_v42 }
 0x279   :  { %6069 = vpow2.f32 %v3838_v25 }
 0x27a   :  { %6071 = vpow2.f32 %v3839_v22  ;;  %v3837_v51 = vmul.f32 -1.442695, %v1285_v18 }
 0x283   :  { %v6070_v27 = vpop.eup %6069 }
 0x284   :  { %v1318_v34 = vadd.f32 1.0, %v6070_v27  ;;  %v6072_v48 = vpop.eup %6071 }
 0x285   :  { %v1319_v4 = vadd.f32 1.0, %v6072_v48 }
 0x286   :  { %6073 = vrcp.f32 %v1318_v34 }
 0x287   :  { %6075 = vrcp.f32 %v1319_v4  ;;  %v3836_v4 = vmul.f32 -1.442695, %v1284_v17 }
 0x289   :  { %6077 = vpow2.f32 %v3836_v4 }
 0x290   :  { %v6074_v16 = vpop.eup %6073 }
 0x291   :  { %v1350_v7 = vmul.f32 %v6074_v16, %v1346_v8  ;;  %v6076_v1 = vpop.eup %6075 }
 0x292   :  { %v1351_v10 = vmul.f32 %v6076_v1, %v1347_v0 }
 0x293   :  { %v6078_v16 = vpop.eup %6077 }
 0x2b2   :  { %v1184_v22 = vpop.f32.mrb[6].mxu0  ;;  %v1255_v27 = vpop.f32.mrb[6].mxu1 }
 0x2b3   :  { %v1272_v25 = vrot.slane %v1184_v22, 7  ;;  %v1186_v34 = vpop.f32.mrb[7].mxu0  ;;  %v1257_v48 = vpop.f32.mrb[7].mxu1  ;;  %v1274_v9 = vrot.slane %v1255_v27, 7 }
 0x2b4   :  { %v1273_v15 = vrot.slane %v1186_v34, 7  ;;  %v1275_v0 = vrot.slane %v1257_v48, 7 }
 0x2b5   :  { %v1288_v46 = vadd.f32 %v1272_v25, %v7060_v21  ;;  %v1290_v50 = vadd.f32 %v1274_v9, %v7072_v41 }
 0x2b6   :  { %v1289_v8 = vadd.f32 %v1273_v15, %v7062_v5  ;;  %v1291_v23 = vadd.f32 %v1275_v0, %v7074_v35  ;;  %v1316_v15 = vadd.f32 1.0, %v6078_v16 }
 0x2b7   :  { %v3840_v60 = vmul.f32 -1.442695, %v1288_v46  ;;  %v3842_v17 = vmul.f32 -1.442695, %v1290_v50 }
 0x2b8   :  { %v3841_v1 = vmul.f32 -1.442695, %v1289_v8  ;;  %v3843_v34 = vmul.f32 -1.442695, %v1291_v23 }
 0x2b9   :  { %6079 = vpow2.f32 %v3840_v60 }
 0x2ba   :  { %6081 = vpow2.f32 %v3837_v51 }
 0x2bb   :  { %6083 = vpow2.f32 %v3841_v1 }
 0x2c3   :  { %v6080_v13 = vpop.eup %6079 }
 0x2c4   :  { %v6082_v22 = vpop.eup %6081  ;;  %v1320_v25 = vadd.f32 1.0, %v6080_v13 }
 0x2c5   :  { %v6084_v18 = vpop.eup %6083  ;;  %v1317_v46 = vadd.f32 1.0, %v6082_v22 }
 0x2c6   :  { %6085 = vrcp.f32 %v1320_v25  ;;  %v1321_v4 = vadd.f32 1.0, %v6084_v18 }
 0x2c7   :  { %6087 = vpow2.f32 %v3842_v17 }
 0x2c8   :  { %6089 = vrcp.f32 %v1321_v4 }
 0x2c9   :  { %6091 = vpow2.f32 %v3843_v34 }
 0x2ca   :  { %6093 = vrcp.f32 %v1316_v15 }
 0x2cb   :  { %6095 = vrcp.f32 %v1317_v46 }
 0x2d0   :  { %v6086_v51 = vpop.eup %6085 }
 0x2d1   :  { %v6088_v27 = vpop.eup %6087  ;;  %v1340_v48 = vmul.f32 2.0, %v6086_v51 }
 0x2d2   :  { %v6090_v8 = vpop.eup %6089  ;;  %v1322_v50 = vadd.f32 1.0, %v6088_v27 }
 0x2d3   :  { %v6092_v60 = vpop.eup %6091  ;;  %v3844_v1 = vadd.f32 -1.0, %v1340_v48  ;;  %v1341_v9 = vmul.f32 2.0, %v6090_v8 }
 0x2d4   :  { %v6094_v0 = vpop.eup %6093  ;;  %v1323_v25 = vadd.f32 1.0, %v6092_v60  ;;  %6097 = vrcp.f32 %v1322_v50  ;;  %v8721_v60 = vld [vmem:[#allocation99_spill] sm:$0xff] }
 0x2d5   :  { %v1352_v13 = vmul.f32 %v6094_v0, %v3844_v1  ;;  %v3845_v23 = vadd.f32 -1.0, %v1341_v9  ;;  %v6096_v16 = vpop.eup %6095  ;;  %v8722_v1 = vld [vmem:[#allocation100_spill] sm:$0xff]  ;;  %v8723_v9 = vld [vmem:[#allocation101_spill] sm:$0xff]  ;;  %v8724_v0 = vld [vmem:[#allocation102_spill] sm:$0xff] }
 0x2d6   :  { %v8725_v50 = vld [vmem:[#allocation103_spill] sm:$0xff] }
 0x2d7   :  { %v7228_v18 = vadd.f32 %v1352_v13, %v1350_v7  ;;  %v1353_v17 = vmul.f32 %v6096_v16, %v3845_v23  ;;  %v8719_v7 = vld [vmem:[#allocation97_spill] sm:$0xff]  ;;  %v8726_v13 = vld [vmem:[#allocation104_spill] sm:$0xff]  ;;  %v8728_v16 = vld [vmem:[#allocation106_spill] sm:$0xff] }
 0x2d8   :  { %v8727_v23 = vld [vmem:[#allocation105_spill] sm:$0xff] }
 0x2d9   :  { %6099 = vtanh.f32 %v7228_v18  ;;  %v7231_v22 = vadd.f32 %v1353_v17, %v1351_v10  ;;  %v8720_v10 = vld [vmem:[#allocation98_spill] sm:$0xff]  ;;  %v8730_v17 = vld [vmem:[#allocation108_spill] sm:$0xff] }
 0x2da   :  { %6101 = vrcp.f32 %v1323_v25  ;;  %v8729_v25 = vld [vmem:[#allocation107_spill] sm:$0xff] }
 0x2db   :  { %6103 = vtanh.f32 %v7231_v22 }
 0x2de   :  { %v6098_v34 = vpop.eup %6097 }
 0x2e3   :  { %v6100_v15 = vpop.eup %6099 }
 0x2e4   :  { %v6102_v4 = vpop.eup %6101  ;;  %v1358_v46 = vmul.f32 %v6100_v15, %v6098_v34  ;;  %v8731_v34 = vld [vmem:[#allocation109_spill] sm:$0xff]  ;;  %v8732_v15 = vld [vmem:[#allocation110_spill] sm:$0xff] }
 0x2e5   :  { %v6104_v51 = vpop.eup %6103 }
 0x2e6   :  { %v1359_v27 = vmul.f32 %v6104_v51, %v6102_v4  ;;  %v7234_v8 = vrot.slane %v1358_v46, 1  ;;  %v8733_v4 = vld [vmem:[#allocation111_spill] sm:$0xff]  ;;  %v8734_v46 = vld [vmem:[#allocation112_spill] sm:$0xff]  ;;  %v8735_v51 = vld [vmem:[#allocation114_spill] sm:$0xff] }
 0x2e8   :  { %v1363_v48 = vrot.slane %v1359_v27, 1  ;;  %v8736_v27 = vld [vmem:[#allocation127_spill] sm:$0xff] }
 0x2ea   :  { %1430 = vmatprep.mubr.f32.mxu0 %v1363_v48  ;;  %1501 = vmatprep.mubr.f32.mxu1 %v1363_v48 }
 0x2eb   :  { %1431 = vmatmul.mubr.f32.vlgmr.msra.gmra.mrb[8].mxu0 %v7234_v8  ;;  %1502 = vmatmul.mubr.f32.vlgmr.msra.gmra.mrb[8].mxu1 %v7234_v8 }
 0x2ec   :  { %4584 = vmatpush1.bf16.msra.mxu0 %v8611_v24  ;;  %4648 = vmatpush1.bf16.msra.mxu1 %v8612_v58 }
 0x2ed   :  { %1572 = vmatprep.mubr.f32.mxu0 %v1363_v48  ;;  %1643 = vmatprep.mubr.f32.mxu1 %v1363_v48  ;;  %v8737_v48 = vld [vmem:[#allocation128_spill] sm:$0xff] }
 0x2ee   :  { %4586 = vmatprep.subr.bf16.mxu0 %v8613_v56  ;;  %4650 = vmatprep.subr.bf16.mxu1 %v8614_v12 }
 0x2f0   :  { %4588 = vmatpush1.bf16.msra.mxu0 %v8615_v29  ;;  %4652 = vmatpush1.bf16.msra.mxu1 %v8616_v47 }
 0x2f1   :  { %4590 = vmatprep.subr.bf16.mxu0 %v8617_v38  ;;  %4654 = vmatprep.subr.bf16.mxu1 %v8618_v20 }
 0x2f4   :  { %4592 = vmatpush1.bf16.msra.mxu0 %v8619_v32  ;;  %4656 = vmatpush1.bf16.msra.mxu1 %v8620_v6 }
 0x2f5   :  { %4594 = vmatprep.subr.bf16.mxu0 %v8621_v62  ;;  %4658 = vmatprep.subr.bf16.mxu1 %v8622_v39 }
 0x2f8   :  { %4596 = vmatpush1.bf16.msra.mxu0 %v8623_v45  ;;  %4660 = vmatpush1.bf16.msra.mxu1 %v8624_v63 }
 0x2f9   :  { %4598 = vmatprep.subr.bf16.mxu0 %v8625_v31  ;;  %4662 = vmatprep.subr.bf16.mxu1 %v8626_v19 }
 0x2fc   :  { %4600 = vmatpush1.bf16.msra.mxu0 %v8627_v40  ;;  %4664 = vmatpush1.bf16.msra.mxu1 %v8628_v43 }
 0x2fd   :  { %4602 = vmatprep.subr.bf16.mxu0 %v8629_v33  ;;  %4666 = vmatprep.subr.bf16.mxu1 %v8630_v3 }
 0x300   :  { %4604 = vmatpush1.bf16.msra.mxu0 %v8631_v53  ;;  %4668 = vmatpush1.bf16.msra.mxu1 %v8632_v44 }
 0x301   :  { %4606 = vmatprep.subr.bf16.mxu0 %v8633_v26  ;;  %4670 = vmatprep.subr.bf16.mxu1 %v8719_v7 }
 0x304   :  { %4608 = vmatpush1.bf16.msra.mxu0 %v8720_v10  ;;  %4672 = vmatpush1.bf16.msra.mxu1 %v8721_v60 }
 0x305   :  { %4610 = vmatprep.subr.bf16.mxu0 %v8722_v1  ;;  %4674 = vmatprep.subr.bf16.mxu1 %v8723_v9 }
 0x308   :  { %4612 = vmatpush1.bf16.msra.mxu0 %v8724_v0  ;;  %4676 = vmatpush1.bf16.msra.mxu1 %v8725_v50 }
 0x309   :  { %4614 = vmatprep.subr.bf16.mxu0 %v8726_v13  ;;  %4678 = vmatprep.subr.bf16.mxu1 %v8727_v23 }
 0x30c   :  { %4616 = vmatpush1.bf16.msra.mxu0 %v8728_v16  ;;  %4680 = vmatpush1.bf16.msra.mxu1 %v8729_v25 }
 0x30d   :  { %4618 = vmatprep.subr.bf16.mxu0 %v8730_v17  ;;  %4682 = vmatprep.subr.bf16.mxu1 %v8731_v34 }
 0x310   :  { %4620 = vmatpush1.bf16.msra.mxu0 %v8732_v15  ;;  %4684 = vmatpush1.bf16.msra.mxu1 %v8733_v4 }
 0x311   :  { %4622 = vmatprep.subr.bf16.mxu0 %v8734_v46  ;;  %4686 = vmatprep.subr.bf16.mxu1 %v8649_v61  ;;  %v1737_v46 = vrot.slane %v7231_v22, 7 }
 0x314   :  { %4624 = vmatpush1.bf16.msra.mxu0 %v8735_v51  ;;  %4688 = vmatpush1.bf16.msra.mxu1 %v8651_v54  ;;  %v8812_v54 = vld [vmem:[#allocation137_spill] sm:$0xff] }
 0x315   :  { %4626 = vmatprep.subr.bf16.mxu0 %v8652_v11  ;;  %4690 = vmatprep.subr.bf16.mxu1 %v8653_v55  ;;  %v8811_v11 = vld [vmem:[#allocation136_spill] sm:$0xff] }
 0x318   :  { %4628 = vmatpush1.bf16.msra.mxu0 %v8654_v59  ;;  %4692 = vmatpush1.bf16.msra.mxu1 %v8655_v30  ;;  %v8738_v59 = vld [vmem:[#allocation129_spill] sm:$0xff]  ;;  %v8739_v30 = vld [vmem:[#allocation130_spill] sm:$0xff] }
 0x319   :  { %4630 = vmatprep.subr.bf16.mxu0 %v8656_v14  ;;  %4694 = vmatprep.subr.bf16.mxu1 %v8657_v36  ;;  %v8740_v14 = vld [vmem:[#allocation131_spill] sm:$0xff]  ;;  %v8741_v36 = vld [vmem:[#allocation132_spill] sm:$0xff] }
 0x31c   :  { %4632 = vmatpush1.bf16.msra.mxu0 %v8658_v57  ;;  %4696 = vmatpush1.bf16.msra.mxu1 %v8659_v28  ;;  %v8742_v57 = vld [vmem:[#allocation133_spill] sm:$0xff]  ;;  %v8743_v28 = vld [vmem:[#allocation134_spill] sm:$0xff] }
 0x31d   :  { %4634 = vmatprep.subr.bf16.mxu0 %v6780_v52  ;;  %4698 = vmatprep.subr.bf16.mxu1 %v8660_v37  ;;  %v8744_v52 = vld [vmem:[#allocation135_spill] sm:$0xff]  ;;  %v8745_v37 = vld [vmem:[#allocation8_spill] sm:$0xff] }
 0x320   :  { %4636 = vmatpush1.bf16.msra.mxu0 %v6786_v49  ;;  %4700 = vmatpush1.bf16.msra.mxu1 %v8736_v27  ;;  %v8746_v49 = vld [vmem:[#allocation9_spill] sm:$0xff] }
 0x321   :  { %4638 = vmatprep.subr.bf16.mxu0 %v8737_v48  ;;  %4702 = vmatprep.subr.bf16.mxu1 %v8738_v59  ;;  %v8747_v59 = vld [vmem:[#allocation10_spill] sm:$0xff]  ;;  %v8756_v48 = vld [vmem:[#allocation19_spill] sm:$0xff] }
 0x324   :  { %4640 = vmatpush1.bf16.msra.mxu0 %v8739_v30  ;;  %4704 = vmatpush1.bf16.msra.mxu1 %v8740_v14  ;;  %v8748_v30 = vld [vmem:[#allocation11_spill] sm:$0xff]  ;;  %v8749_v14 = vld [vmem:[#allocation12_spill] sm:$0xff] }
 0x325   :  { %4642 = vmatprep.subr.bf16.mxu0 %v8741_v36  ;;  %4706 = vmatprep.subr.bf16.mxu1 %v8742_v57  ;;  %v8750_v36 = vld [vmem:[#allocation13_spill] sm:$0xff]  ;;  %v8751_v57 = vld [vmem:[#allocation14_spill] sm:$0xff] }
 0x328   :  { %4644 = vmatpush1.bf16.msra.mxu0 %v8743_v28  ;;  %4708 = vmatpush1.bf16.msra.mxu1 %v8744_v52  ;;  %v8752_v28 = vld [vmem:[#allocation15_spill] sm:$0xff]  ;;  %v8753_v52 = vld [vmem:[#allocation16_spill] sm:$0xff] }
 0x329   :  { %4710 = vmatprep.subr.bf16.mxu0 %v8745_v37  ;;  %4774 = vmatprep.subr.bf16.mxu1 %v8746_v49  ;;  %v8754_v37 = vld [vmem:[#allocation17_spill] sm:$0xff]  ;;  %v8755_v49 = vld [vmem:[#allocation18_spill] sm:$0xff] }
 0x32b   :  { %1573 = vmatmul.mubr.f32.vlgmr.msra.gmra.mrb[10].mxu0 %v7234_v8  ;;  %1644 = vmatmul.mubr.f32.vlgmr.msra.gmra.mrb[10].mxu1 %v7234_v8  ;;  %v8757_v8 = vld [vmem:[#allocation20_spill] sm:$0xff] }
 0x32c   :  { %4712 = vmatpush1.bf16.msra.mxu0 %v8747_v59  ;;  %4776 = vmatpush1.bf16.msra.mxu1 %v8748_v30  ;;  %v8758_v59 = vld [vmem:[#allocation21_spill] sm:$0xff]  ;;  %v8759_v30 = vld [vmem:[#allocation22_spill] sm:$0xff] }
 0x32d   :  { %4714 = vmatprep.subr.bf16.mxu0 %v8749_v14  ;;  %4778 = vmatprep.subr.bf16.mxu1 %v8750_v36  ;;  %v8760_v14 = vld [vmem:[#allocation23_spill] sm:$0xff]  ;;  %v8761_v36 = vld [vmem:[#allocation24_spill] sm:$0xff] }
 0x330   :  { %4716 = vmatpush1.bf16.msra.mxu0 %v8751_v57  ;;  %4780 = vmatpush1.bf16.msra.mxu1 %v8752_v28  ;;  %v8762_v57 = vld [vmem:[#allocation25_spill] sm:$0xff]  ;;  %v8763_v28 = vld [vmem:[#allocation26_spill] sm:$0xff] }
 0x331   :  { %4718 = vmatprep.subr.bf16.mxu0 %v8753_v52  ;;  %4782 = vmatprep.subr.bf16.mxu1 %v8754_v37  ;;  %v8764_v52 = vld [vmem:[#allocation27_spill] sm:$0xff]  ;;  %v8765_v37 = vld [vmem:[#allocation28_spill] sm:$0xff] }
 0x334   :  { %4720 = vmatpush1.bf16.msra.mxu0 %v8755_v49  ;;  %4784 = vmatpush1.bf16.msra.mxu1 %v8756_v48  ;;  %v8766_v49 = vld [vmem:[#allocation29_spill] sm:$0xff]  ;;  %v8767_v48 = vld [vmem:[#allocation30_spill] sm:$0xff] }
 0x335   :  { %4722 = vmatprep.subr.bf16.mxu0 %v8757_v8  ;;  %4786 = vmatprep.subr.bf16.mxu1 %v8758_v59  ;;  %v8768_v8 = vld [vmem:[#allocation31_spill] sm:$0xff]  ;;  %v8769_v59 = vld [vmem:[#allocation32_spill] sm:$0xff] }
 0x338   :  { %4724 = vmatpush1.bf16.msra.mxu0 %v8759_v30  ;;  %4788 = vmatpush1.bf16.msra.mxu1 %v8760_v14  ;;  %v8770_v30 = vld [vmem:[#allocation33_spill] sm:$0xff]  ;;  %v8771_v14 = vld [vmem:[#allocation34_spill] sm:$0xff] }
 0x339   :  { %4726 = vmatprep.subr.bf16.mxu0 %v8761_v36  ;;  %4790 = vmatprep.subr.bf16.mxu1 %v8762_v57  ;;  %v8772_v36 = vld [vmem:[#allocation35_spill] sm:$0xff]  ;;  %v8773_v57 = vld [vmem:[#allocation36_spill] sm:$0xff] }
 0x33c   :  { %4728 = vmatpush1.bf16.msra.mxu0 %v8763_v28  ;;  %4792 = vmatpush1.bf16.msra.mxu1 %v8764_v52  ;;  %v8774_v28 = vld [vmem:[#allocation37_spill] sm:$0xff]  ;;  %v8775_v52 = vld [vmem:[#allocation38_spill] sm:$0xff] }
 0x33d   :  { %4730 = vmatprep.subr.bf16.mxu0 %v8765_v37  ;;  %4794 = vmatprep.subr.bf16.mxu1 %v8766_v49  ;;  %v8776_v37 = vld [vmem:[#allocation39_spill] sm:$0xff]  ;;  %v8777_v49 = vld [vmem:[#allocation40_spill] sm:$0xff] }
 0x340   :  { %4732 = vmatpush1.bf16.msra.mxu0 %v8767_v48  ;;  %4796 = vmatpush1.bf16.msra.mxu1 %v8768_v8  ;;  %v8778_v48 = vld [vmem:[#allocation41_spill] sm:$0xff]  ;;  %v8779_v8 = vld [vmem:[#allocation42_spill] sm:$0xff] }
 0x341   :  { %4734 = vmatprep.subr.bf16.mxu0 %v8769_v59  ;;  %4798 = vmatprep.subr.bf16.mxu1 %v8770_v30  ;;  %v8780_v59 = vld [vmem:[#allocation43_spill] sm:$0xff]  ;;  %v8781_v30 = vld [vmem:[#allocation44_spill] sm:$0xff] }
 0x344   :  { %4736 = vmatpush1.bf16.msra.mxu0 %v8771_v14  ;;  %4800 = vmatpush1.bf16.msra.mxu1 %v8772_v36  ;;  %v8782_v14 = vld [vmem:[#allocation45_spill] sm:$0xff]  ;;  %v8783_v36 = vld [vmem:[#allocation46_spill] sm:$0xff] }
 0x345   :  { %4738 = vmatprep.subr.bf16.mxu0 %v8773_v57  ;;  %4802 = vmatprep.subr.bf16.mxu1 %v8774_v28  ;;  %v8784_v57 = vld [vmem:[#allocation47_spill] sm:$0xff]  ;;  %v8785_v28 = vld [vmem:[#allocation48_spill] sm:$0xff] }
 0x348   :  { %4740 = vmatpush1.bf16.msra.mxu0 %v8775_v52  ;;  %4804 = vmatpush1.bf16.msra.mxu1 %v8776_v37  ;;  %v8786_v52 = vld [vmem:[#allocation49_spill] sm:$0xff]  ;;  %v8787_v37 = vld [vmem:[#allocation50_spill] sm:$0xff] }
 0x349   :  { %4742 = vmatprep.subr.bf16.mxu0 %v8777_v49  ;;  %4806 = vmatprep.subr.bf16.mxu1 %v8778_v48  ;;  %v8788_v49 = vld [vmem:[#allocation51_spill] sm:$0xff]  ;;  %v8789_v48 = vld [vmem:[#allocation52_spill] sm:$0xff] }
 0x34c   :  { %4744 = vmatpush1.bf16.msra.mxu0 %v8779_v8  ;;  %4808 = vmatpush1.bf16.msra.mxu1 %v8780_v59  ;;  %v8790_v8 = vld [vmem:[#allocation53_spill] sm:$0xff]  ;;  %v8791_v59 = vld [vmem:[#allocation54_spill] sm:$0xff] }
 0x34d   :  { %4746 = vmatprep.subr.bf16.mxu0 %v8781_v30  ;;  %4810 = vmatprep.subr.bf16.mxu1 %v8782_v14  ;;  %v8792_v30 = vld [vmem:[#allocation55_spill] sm:$0xff]  ;;  %v8793_v14 = vld [vmem:[#allocation56_spill] sm:$0xff] }
 0x350   :  { %4748 = vmatpush1.bf16.msra.mxu0 %v8783_v36  ;;  %4812 = vmatpush1.bf16.msra.mxu1 %v8784_v57  ;;  %v8794_v36 = vld [vmem:[#allocation57_spill] sm:$0xff]  ;;  %v8795_v57 = vld [vmem:[#allocation58_spill] sm:$0xff] }
 0x351   :  { %4750 = vmatprep.subr.bf16.mxu0 %v8785_v28  ;;  %4814 = vmatprep.subr.bf16.mxu1 %v8786_v52  ;;  %v8796_v28 = vld [vmem:[#allocation59_spill] sm:$0xff]  ;;  %v8797_v52 = vld [vmem:[#allocation60_spill] sm:$0xff] }
 0x354   :  { %4752 = vmatpush1.bf16.msra.mxu0 %v8787_v37  ;;  %4816 = vmatpush1.bf16.msra.mxu1 %v8788_v49  ;;  %v8798_v37 = vld [vmem:[#allocation61_spill] sm:$0xff]  ;;  %v8799_v49 = vld [vmem:[#allocation62_spill] sm:$0xff] }
 0x355   :  { %4754 = vmatprep.subr.bf16.mxu0 %v8789_v48  ;;  %4818 = vmatprep.subr.bf16.mxu1 %v8790_v8  ;;  %v8800_v48 = vld [vmem:[#allocation63_spill] sm:$0xff]  ;;  %v8801_v8 = vld [vmem:[#allocation64_spill] sm:$0xff] }
 0x358   :  { %4756 = vmatpush1.bf16.msra.mxu0 %v8791_v59  ;;  %4820 = vmatpush1.bf16.msra.mxu1 %v8792_v30  ;;  %v8802_v59 = vld [vmem:[#allocation65_spill] sm:$0xff]  ;;  %v8803_v30 = vld [vmem:[#allocation66_spill] sm:$0xff] }
 0x359   :  { %4758 = vmatprep.subr.bf16.mxu0 %v8793_v14  ;;  %4822 = vmatprep.subr.bf16.mxu1 %v8794_v36  ;;  %v8804_v14 = vld [vmem:[#allocation67_spill] sm:$0xff]  ;;  %v8805_v36 = vld [vmem:[#allocation68_spill] sm:$0xff] }
 0x35c   :  { %4760 = vmatpush1.bf16.msra.mxu0 %v8795_v57  ;;  %4824 = vmatpush1.bf16.msra.mxu1 %v8796_v28  ;;  %v8806_v57 = vld [vmem:[#allocation69_spill] sm:$0xff]  ;;  %v8807_v28 = vld [vmem:[#allocation70_spill] sm:$0xff] }
 0x35d   :  { %4762 = vmatprep.subr.bf16.mxu0 %v8797_v52  ;;  %4826 = vmatprep.subr.bf16.mxu1 %v8798_v37  ;;  %v8808_v52 = vld [vmem:[#allocation71_spill] sm:$0xff]  ;;  %v8809_v37 = vld [vmem:[#allocation72_spill] sm:$0xff] }
 0x360   :  { %4764 = vmatpush1.bf16.msra.mxu0 %v8799_v49  ;;  %4828 = vmatpush1.bf16.msra.mxu1 %v8800_v48  ;;  %v8810_v49 = vld [vmem:[#allocation73_spill] sm:$0xff] }
 0x361   :  { %4766 = vmatprep.subr.bf16.mxu0 %v8801_v8  ;;  %4830 = vmatprep.subr.bf16.mxu1 %v8802_v59 }
 0x364   :  { %4768 = vmatpush1.bf16.msra.mxu0 %v8803_v30  ;;  %4832 = vmatpush1.bf16.msra.mxu1 %v8804_v14 }
 0x365   :  { %4770 = vmatprep.subr.bf16.mxu0 %v8805_v36  ;;  %4834 = vmatprep.subr.bf16.mxu1 %v8806_v57 }
 0x368   :  { %4772 = vmatpush1.bf16.msra.mxu0 %v8807_v28  ;;  %4836 = vmatpush1.bf16.msra.mxu1 %v8808_v52 }
 0x369   :  { %4838 = vmatprep.subr.bf16.mxu0 %v8809_v37  ;;  %4902 = vmatprep.subr.bf16.mxu1 %v8810_v49  ;;  %v1736_v49 = vrot.slane %v7228_v18, 7 }
 0x3be   :  { %v1432_v48 = vpop.f32.mrb[8].mxu0  ;;  %v1503_v8 = vpop.f32.mrb[8].mxu1 }
 0x3bf   :  { %v1660_v27 = vrot.slane %v1503_v8, 6  ;;  %v1434_v59 = vpop.f32.mrb[9].mxu0  ;;  %v1505_v55 = vpop.f32.mrb[9].mxu1 }
 0x3c0   :  { %v1661_v30 = vrot.slane %v1505_v55, 6 }
 0x3c1   :  { %v1676_v14 = vadd.f32 %v1660_v27, %v8811_v11  ;;  %v1658_v11 = vrot.slane %v1432_v48, 6 }
 0x3c2   :  { %v1677_v36 = vadd.f32 %v1661_v30, %v8812_v54  ;;  %v1659_v30 = vrot.slane %v1434_v59, 6 }
 0x3c3   :  { %v3848_v51 = vmul.f32 -1.442695, %v1676_v14 }
 0x3c4   :  { %v3849_v57 = vmul.f32 -1.442695, %v1677_v36  ;;  %v1674_v36 = vadd.f32 %v1658_v11, %v7013_v2  ;;  %v1675_v14 = vadd.f32 %v1659_v30, %v7040_v42 }
 0x3c5   :  { %6105 = vpow2.f32 %v3848_v51 }
 0x3c6   :  { %6107 = vpow2.f32 %v3849_v57  ;;  %v3847_v15 = vmul.f32 -1.442695, %v1675_v14 }
 0x3cf   :  { %v6106_v28 = vpop.eup %6105 }
 0x3d0   :  { %v1708_v52 = vadd.f32 1.0, %v6106_v28  ;;  %v6108_v61 = vpop.eup %6107 }
 0x3d1   :  { %v1709_v37 = vadd.f32 1.0, %v6108_v61 }
 0x3d2   :  { %6109 = vrcp.f32 %v1708_v52 }
 0x3d3   :  { %6111 = vrcp.f32 %v1709_v37  ;;  %v3846_v37 = vmul.f32 -1.442695, %v1674_v36 }
 0x3d5   :  { %6113 = vpow2.f32 %v3846_v37 }
 0x3dc   :  { %v6110_v8 = vpop.eup %6109 }
 0x3dd   :  { %v1740_v55 = vmul.f32 %v6110_v8, %v1736_v49  ;;  %v6112_v4 = vpop.eup %6111 }
 0x3de   :  { %v1741_v27 = vmul.f32 %v6112_v4, %v1737_v46 }
 0x3df   :  { %v6114_v8 = vpop.eup %6113 }
 0x3fe   :  { %v1574_v57 = vpop.f32.mrb[10].mxu0  ;;  %v1645_v28 = vpop.f32.mrb[10].mxu1 }
 0x3ff   :  { %v1662_v51 = vrot.slane %v1574_v57, 6  ;;  %v1576_v52 = vpop.f32.mrb[11].mxu0  ;;  %v1647_v61 = vpop.f32.mrb[11].mxu1  ;;  %v1664_v11 = vrot.slane %v1645_v28, 6 }
 0x400   :  { %v1663_v54 = vrot.slane %v1576_v52, 6  ;;  %v1665_v59 = vrot.slane %v1647_v61, 6 }
 0x401   :  { %v1678_v18 = vadd.f32 %v1662_v51, %v7060_v21  ;;  %v1680_v46 = vadd.f32 %v1664_v11, %v7072_v41 }
 0x402   :  { %v1679_v49 = vadd.f32 %v1663_v54, %v7062_v5  ;;  %v1681_v48 = vadd.f32 %v1665_v59, %v7074_v35  ;;  %v1706_v54 = vadd.f32 1.0, %v6114_v8 }
 0x403   :  { %v3850_v22 = vmul.f32 -1.442695, %v1678_v18  ;;  %v3852_v36 = vmul.f32 -1.442695, %v1680_v46 }
 0x404   :  { %v3851_v4 = vmul.f32 -1.442695, %v1679_v49  ;;  %v3853_v52 = vmul.f32 -1.442695, %v1681_v48 }
 0x405   :  { %6115 = vpow2.f32 %v3850_v22 }
 0x406   :  { %6117 = vpow2.f32 %v3847_v15 }
 0x407   :  { %6119 = vpow2.f32 %v3851_v4 }
 0x40f   :  { %v6116_v30 = vpop.eup %6115 }
 0x410   :  { %v6118_v57 = vpop.eup %6117  ;;  %v1710_v51 = vadd.f32 1.0, %v6116_v30 }
 0x411   :  { %v6120_v14 = vpop.eup %6119  ;;  %v1707_v18 = vadd.f32 1.0, %v6118_v57 }
 0x412   :  { %6121 = vrcp.f32 %v1710_v51  ;;  %v1711_v37 = vadd.f32 1.0, %v6120_v14 }
 0x413   :  { %6123 = vpow2.f32 %v3852_v36 }
 0x414   :  { %6125 = vrcp.f32 %v1711_v37 }
 0x415   :  { %6127 = vpow2.f32 %v3853_v52 }
 0x416   :  { %6129 = vrcp.f32 %v1706_v54 }
 0x417   :  { %6131 = vrcp.f32 %v1707_v18 }
 0x41c   :  { %v6122_v15 = vpop.eup %6121 }
 0x41d   :  { %v6124_v28 = vpop.eup %6123  ;;  %v1730_v61 = vmul.f32 2.0, %v6122_v15 }
 0x41e   :  { %v6126_v49 = vpop.eup %6125  ;;  %v1712_v46 = vadd.f32 1.0, %v6124_v28 }
 0x41f   :  { %v6128_v22 = vpop.eup %6127  ;;  %v3854_v4 = vadd.f32 -1.0, %v1730_v61  ;;  %v1731_v11 = vmul.f32 2.0, %v6126_v49 }
 0x420   :  { %v6130_v59 = vpop.eup %6129  ;;  %v1713_v51 = vadd.f32 1.0, %v6128_v22  ;;  %6133 = vrcp.f32 %v1712_v46  ;;  %v8815_v22 = vld [vmem:[#allocation112_spill] sm:$0xff] }
 0x421   :  { %v1742_v30 = vmul.f32 %v6130_v59, %v3854_v4  ;;  %v3855_v48 = vadd.f32 -1.0, %v1731_v11  ;;  %v6132_v8 = vpop.eup %6131  ;;  %v8816_v4 = vld [vmem:[#allocation113_spill] sm:$0xff]  ;;  %v8817_v11 = vld [vmem:[#allocation114_spill] sm:$0xff]  ;;  %v8818_v59 = vld [vmem:[#allocation115_spill] sm:$0xff] }
 0x422   :  { %v8819_v46 = vld [vmem:[#allocation116_spill] sm:$0xff] }
 0x423   :  { %v7378_v14 = vadd.f32 %v1742_v30, %v1740_v55  ;;  %v1743_v36 = vmul.f32 %v6132_v8, %v3855_v48  ;;  %v8813_v55 = vld [vmem:[#allocation110_spill] sm:$0xff]  ;;  %v8820_v30 = vld [vmem:[#allocation117_spill] sm:$0xff]  ;;  %v8822_v8 = vld [vmem:[#allocation119_spill] sm:$0xff] }
 0x424   :  { %v8821_v48 = vld [vmem:[#allocation118_spill] sm:$0xff] }
 0x425   :  { %6135 = vtanh.f32 %v7378_v14  ;;  %v7381_v57 = vadd.f32 %v1743_v36, %v1741_v27  ;;  %v8814_v27 = vld [vmem:[#allocation111_spill] sm:$0xff]  ;;  %v8824_v36 = vld [vmem:[#allocation121_spill] sm:$0xff] }
 0x426   :  { %6137 = vrcp.f32 %v1713_v51  ;;  %v8823_v51 = vld [vmem:[#allocation120_spill] sm:$0xff] }
 0x427   :  { %6139 = vtanh.f32 %v7381_v57 }
 0x42a   :  { %v6134_v52 = vpop.eup %6133 }
 0x42f   :  { %v6136_v54 = vpop.eup %6135 }
 0x430   :  { %v6138_v37 = vpop.eup %6137  ;;  %v1748_v18 = vmul.f32 %v6136_v54, %v6134_v52  ;;  %v8825_v52 = vld [vmem:[#allocation122_spill] sm:$0xff]  ;;  %v8826_v54 = vld [vmem:[#allocation123_spill] sm:$0xff] }
 0x431   :  { %v6140_v15 = vpop.eup %6139 }
 0x432   :  { %v1749_v28 = vmul.f32 %v6140_v15, %v6138_v37  ;;  %v7384_v49 = vrot.slane %v1748_v18, 2  ;;  %v8827_v37 = vld [vmem:[#allocation124_spill] sm:$0xff]  ;;  %v8828_v18 = vld [vmem:[#allocation125_spill] sm:$0xff]  ;;  %v8829_v15 = vld [vmem:[#allocation126_spill] sm:$0xff] }
 0x434   :  { %v1753_v61 = vrot.slane %v1749_v28, 2  ;;  %v8830_v28 = vld [vmem:[#allocation127_spill] sm:$0xff] }
 0x436   :  { %1820 = vmatprep.mubr.f32.mxu0 %v1753_v61  ;;  %1891 = vmatprep.mubr.f32.mxu1 %v1753_v61 }
 0x437   :  { %1821 = vmatmul.mubr.f32.vlgmr.msra.gmra.mrb[12].mxu0 %v7384_v49  ;;  %1892 = vmatmul.mubr.f32.vlgmr.msra.gmra.mrb[12].mxu1 %v7384_v49 }
 0x438   :  { %4840 = vmatpush1.bf16.msra.mxu0 %v8611_v24  ;;  %4904 = vmatpush1.bf16.msra.mxu1 %v8612_v58 }
 0x439   :  { %1962 = vmatprep.mubr.f32.mxu0 %v1753_v61  ;;  %2033 = vmatprep.mubr.f32.mxu1 %v1753_v61  ;;  %v8831_v61 = vld [vmem:[#allocation128_spill] sm:$0xff] }
 0x43a   :  { %4842 = vmatprep.subr.bf16.mxu0 %v8613_v56  ;;  %4906 = vmatprep.subr.bf16.mxu1 %v8614_v12 }
 0x43c   :  { %4844 = vmatpush1.bf16.msra.mxu0 %v8615_v29  ;;  %4908 = vmatpush1.bf16.msra.mxu1 %v8616_v47 }
 0x43d   :  { %4846 = vmatprep.subr.bf16.mxu0 %v8617_v38  ;;  %4910 = vmatprep.subr.bf16.mxu1 %v8618_v20 }
 0x440   :  { %4848 = vmatpush1.bf16.msra.mxu0 %v8619_v32  ;;  %4912 = vmatpush1.bf16.msra.mxu1 %v8620_v6 }
 0x441   :  { %4850 = vmatprep.subr.bf16.mxu0 %v8621_v62  ;;  %4914 = vmatprep.subr.bf16.mxu1 %v8622_v39 }
 0x444   :  { %4852 = vmatpush1.bf16.msra.mxu0 %v8623_v45  ;;  %4916 = vmatpush1.bf16.msra.mxu1 %v8624_v63 }
 0x445   :  { %4854 = vmatprep.subr.bf16.mxu0 %v8625_v31  ;;  %4918 = vmatprep.subr.bf16.mxu1 %v8626_v19 }
 0x448   :  { %4856 = vmatpush1.bf16.msra.mxu0 %v8627_v40  ;;  %4920 = vmatpush1.bf16.msra.mxu1 %v8628_v43 }
 0x449   :  { %4858 = vmatprep.subr.bf16.mxu0 %v8629_v33  ;;  %4922 = vmatprep.subr.bf16.mxu1 %v8630_v3 }
 0x44c   :  { %4860 = vmatpush1.bf16.msra.mxu0 %v8631_v53  ;;  %4924 = vmatpush1.bf16.msra.mxu1 %v8632_v44 }
 0x44d   :  { %4862 = vmatprep.subr.bf16.mxu0 %v8633_v26  ;;  %4926 = vmatprep.subr.bf16.mxu1 %v8719_v7 }
 0x450   :  { %4864 = vmatpush1.bf16.msra.mxu0 %v8720_v10  ;;  %4928 = vmatpush1.bf16.msra.mxu1 %v8721_v60 }
 0x451   :  { %4866 = vmatprep.subr.bf16.mxu0 %v8722_v1  ;;  %4930 = vmatprep.subr.bf16.mxu1 %v8723_v9 }
 0x454   :  { %4868 = vmatpush1.bf16.msra.mxu0 %v8724_v0  ;;  %4932 = vmatpush1.bf16.msra.mxu1 %v8725_v50 }
 0x455   :  { %4870 = vmatprep.subr.bf16.mxu0 %v8726_v13  ;;  %4934 = vmatprep.subr.bf16.mxu1 %v8727_v23 }
 0x458   :  { %4872 = vmatpush1.bf16.msra.mxu0 %v8728_v16  ;;  %4936 = vmatpush1.bf16.msra.mxu1 %v8729_v25 }
 0x459   :  { %4874 = vmatprep.subr.bf16.mxu0 %v8730_v17  ;;  %4938 = vmatprep.subr.bf16.mxu1 %v8731_v34 }
 0x45c   :  { %4876 = vmatpush1.bf16.msra.mxu0 %v8813_v55  ;;  %4940 = vmatpush1.bf16.msra.mxu1 %v8814_v27 }
 0x45d   :  { %4878 = vmatprep.subr.bf16.mxu0 %v8815_v22  ;;  %4942 = vmatprep.subr.bf16.mxu1 %v8816_v4  ;;  %v2127_v22 = vrot.slane %v7381_v57, 7 }
 0x460   :  { %4880 = vmatpush1.bf16.msra.mxu0 %v8817_v11  ;;  %4944 = vmatpush1.bf16.msra.mxu1 %v8818_v59  ;;  %v8906_v59 = vld [vmem:[#allocation137_spill] sm:$0xff] }
 0x461   :  { %4882 = vmatprep.subr.bf16.mxu0 %v8819_v46  ;;  %4946 = vmatprep.subr.bf16.mxu1 %v8820_v30  ;;  %v8905_v46 = vld [vmem:[#allocation136_spill] sm:$0xff] }
 0x464   :  { %4884 = vmatpush1.bf16.msra.mxu0 %v8821_v48  ;;  %4948 = vmatpush1.bf16.msra.mxu1 %v8822_v8  ;;  %v8832_v48 = vld [vmem:[#allocation129_spill] sm:$0xff]  ;;  %v8833_v8 = vld [vmem:[#allocation130_spill] sm:$0xff] }
 0x465   :  { %4886 = vmatprep.subr.bf16.mxu0 %v8823_v51  ;;  %4950 = vmatprep.subr.bf16.mxu1 %v8824_v36  ;;  %v8834_v51 = vld [vmem:[#allocation131_spill] sm:$0xff]  ;;  %v8835_v36 = vld [vmem:[#allocation132_spill] sm:$0xff] }
 0x468   :  { %4888 = vmatpush1.bf16.msra.mxu0 %v8825_v52  ;;  %4952 = vmatpush1.bf16.msra.mxu1 %v8826_v54  ;;  %v8836_v52 = vld [vmem:[#allocation133_spill] sm:$0xff]  ;;  %v8837_v54 = vld [vmem:[#allocation134_spill] sm:$0xff] }
 0x469   :  { %4890 = vmatprep.subr.bf16.mxu0 %v8827_v37  ;;  %4954 = vmatprep.subr.bf16.mxu1 %v8828_v18  ;;  %v8838_v37 = vld [vmem:[#allocation135_spill] sm:$0xff]  ;;  %v8839_v18 = vld [vmem:[#allocation8_spill] sm:$0xff] }
 0x46c   :  { %4892 = vmatpush1.bf16.msra.mxu0 %v8829_v15  ;;  %4956 = vmatpush1.bf16.msra.mxu1 %v8830_v28  ;;  %v8840_v15 = vld [vmem:[#allocation9_spill] sm:$0xff] }
 0x46d   :  { %4894 = vmatprep.subr.bf16.mxu0 %v8831_v61  ;;  %4958 = vmatprep.subr.bf16.mxu1 %v8832_v48  ;;  %v8841_v48 = vld [vmem:[#allocation10_spill] sm:$0xff]  ;;  %v8850_v61 = vld [vmem:[#allocation19_spill] sm:$0xff] }
 0x470   :  { %4896 = vmatpush1.bf16.msra.mxu0 %v8833_v8  ;;  %4960 = vmatpush1.bf16.msra.mxu1 %v8834_v51  ;;  %v8842_v8 = vld [vmem:[#allocation11_spill] sm:$0xff]  ;;  %v8843_v51 = vld [vmem:[#allocation12_spill] sm:$0xff] }
 0x471   :  { %4898 = vmatprep.subr.bf16.mxu0 %v8835_v36  ;;  %4962 = vmatprep.subr.bf16.mxu1 %v8836_v52  ;;  %v8844_v36 = vld [vmem:[#allocation13_spill] sm:$0xff]  ;;  %v8845_v52 = vld [vmem:[#allocation14_spill] sm:$0xff] }
 0x474   :  { %4900 = vmatpush1.bf16.msra.mxu0 %v8837_v54  ;;  %4964 = vmatpush1.bf16.msra.mxu1 %v8838_v37  ;;  %v8846_v54 = vld [vmem:[#allocation15_spill] sm:$0xff]  ;;  %v8847_v37 = vld [vmem:[#allocation16_spill] sm:$0xff] }
 0x475   :  { %4966 = vmatprep.subr.bf16.mxu0 %v8839_v18  ;;  %5030 = vmatprep.subr.bf16.mxu1 %v8840_v15  ;;  %v8848_v18 = vld [vmem:[#allocation17_spill] sm:$0xff]  ;;  %v8849_v15 = vld [vmem:[#allocation18_spill] sm:$0xff] }
 0x477   :  { %1963 = vmatmul.mubr.f32.vlgmr.msra.gmra.mrb[14].mxu0 %v7384_v49  ;;  %2034 = vmatmul.mubr.f32.vlgmr.msra.gmra.mrb[14].mxu1 %v7384_v49  ;;  %v8851_v49 = vld [vmem:[#allocation20_spill] sm:$0xff] }
 0x478   :  { %4968 = vmatpush1.bf16.msra.mxu0 %v8841_v48  ;;  %5032 = vmatpush1.bf16.msra.mxu1 %v8842_v8  ;;  %v8852_v48 = vld [vmem:[#allocation21_spill] sm:$0xff]  ;;  %v8853_v8 = vld [vmem:[#allocation22_spill] sm:$0xff] }
 0x479   :  { %4970 = vmatprep.subr.bf16.mxu0 %v8843_v51  ;;  %5034 = vmatprep.subr.bf16.mxu1 %v8844_v36  ;;  %v8854_v51 = vld [vmem:[#allocation23_spill] sm:$0xff]  ;;  %v8855_v36 = vld [vmem:[#allocation24_spill] sm:$0xff] }
 0x47c   :  { %4972 = vmatpush1.bf16.msra.mxu0 %v8845_v52  ;;  %5036 = vmatpush1.bf16.msra.mxu1 %v8846_v54  ;;  %v8856_v52 = vld [vmem:[#allocation25_spill] sm:$0xff]  ;;  %v8857_v54 = vld [vmem:[#allocation26_spill] sm:$0xff] }
 0x47d   :  { %4974 = vmatprep.subr.bf16.mxu0 %v8847_v37  ;;  %5038 = vmatprep.subr.bf16.mxu1 %v8848_v18  ;;  %v8858_v37 = vld [vmem:[#allocation27_spill] sm:$0xff]  ;;  %v8859_v18 = vld [vmem:[#allocation28_spill] sm:$0xff] }
 0x480   :  { %4976 = vmatpush1.bf16.msra.mxu0 %v8849_v15  ;;  %5040 = vmatpush1.bf16.msra.mxu1 %v8850_v61  ;;  %v8860_v15 = vld [vmem:[#allocation29_spill] sm:$0xff]  ;;  %v8861_v61 = vld [vmem:[#allocation30_spill] sm:$0xff] }
 0x481   :  { %4978 = vmatprep.subr.bf16.mxu0 %v8851_v49  ;;  %5042 = vmatprep.subr.bf16.mxu1 %v8852_v48  ;;  %v8862_v49 = vld [vmem:[#allocation31_spill] sm:$0xff]  ;;  %v8863_v48 = vld [vmem:[#allocation32_spill] sm:$0xff] }
 0x484   :  { %4980 = vmatpush1.bf16.msra.mxu0 %v8853_v8  ;;  %5044 = vmatpush1.bf16.msra.mxu1 %v8854_v51  ;;  %v8864_v8 = vld [vmem:[#allocation33_spill] sm:$0xff]  ;;  %v8865_v51 = vld [vmem:[#allocation34_spill] sm:$0xff] }
 0x485   :  { %4982 = vmatprep.subr.bf16.mxu0 %v8855_v36  ;;  %5046 = vmatprep.subr.bf16.mxu1 %v8856_v52  ;;  %v8866_v36 = vld [vmem:[#allocation35_spill] sm:$0xff]  ;;  %v8867_v52 = vld [vmem:[#allocation36_spill] sm:$0xff] }
 0x488   :  { %4984 = vmatpush1.bf16.msra.mxu0 %v8857_v54  ;;  %5048 = vmatpush1.bf16.msra.mxu1 %v8858_v37  ;;  %v8868_v54 = vld [vmem:[#allocation37_spill] sm:$0xff]  ;;  %v8869_v37 = vld [vmem:[#allocation38_spill] sm:$0xff] }
 0x489   :  { %4986 = vmatprep.subr.bf16.mxu0 %v8859_v18  ;;  %5050 = vmatprep.subr.bf16.mxu1 %v8860_v15  ;;  %v8870_v18 = vld [vmem:[#allocation39_spill] sm:$0xff]  ;;  %v8871_v15 = vld [vmem:[#allocation40_spill] sm:$0xff] }
 0x48c   :  { %4988 = vmatpush1.bf16.msra.mxu0 %v8861_v61  ;;  %5052 = vmatpush1.bf16.msra.mxu1 %v8862_v49  ;;  %v8872_v61 = vld [vmem:[#allocation41_spill] sm:$0xff]  ;;  %v8873_v49 = vld [vmem:[#allocation42_spill] sm:$0xff] }
 0x48d   :  { %4990 = vmatprep.subr.bf16.mxu0 %v8863_v48  ;;  %5054 = vmatprep.subr.bf16.mxu1 %v8864_v8  ;;  %v8874_v48 = vld [vmem:[#allocation43_spill] sm:$0xff]  ;;  %v8875_v8 = vld [vmem:[#allocation44_spill] sm:$0xff] }
 0x490   :  { %4992 = vmatpush1.bf16.msra.mxu0 %v8865_v51  ;;  %5056 = vmatpush1.bf16.msra.mxu1 %v8866_v36  ;;  %v8876_v51 = vld [vmem:[#allocation45_spill] sm:$0xff]  ;;  %v8877_v36 = vld [vmem:[#allocation46_spill] sm:$0xff] }
 0x491   :  { %4994 = vmatprep.subr.bf16.mxu0 %v8867_v52  ;;  %5058 = vmatprep.subr.bf16.mxu1 %v8868_v54  ;;  %v8878_v52 = vld [vmem:[#allocation47_spill] sm:$0xff]  ;;  %v8879_v54 = vld [vmem:[#allocation48_spill] sm:$0xff] }
 0x494   :  { %4996 = vmatpush1.bf16.msra.mxu0 %v8869_v37  ;;  %5060 = vmatpush1.bf16.msra.mxu1 %v8870_v18  ;;  %v8880_v37 = vld [vmem:[#allocation49_spill] sm:$0xff]  ;;  %v8881_v18 = vld [vmem:[#allocation50_spill] sm:$0xff] }
 0x495   :  { %4998 = vmatprep.subr.bf16.mxu0 %v8871_v15  ;;  %5062 = vmatprep.subr.bf16.mxu1 %v8872_v61  ;;  %v8882_v15 = vld [vmem:[#allocation51_spill] sm:$0xff]  ;;  %v8883_v61 = vld [vmem:[#allocation52_spill] sm:$0xff] }
 0x498   :  { %5000 = vmatpush1.bf16.msra.mxu0 %v8873_v49  ;;  %5064 = vmatpush1.bf16.msra.mxu1 %v8874_v48  ;;  %v8884_v49 = vld [vmem:[#allocation53_spill] sm:$0xff]  ;;  %v8885_v48 = vld [vmem:[#allocation54_spill] sm:$0xff] }
 0x499   :  { %5002 = vmatprep.subr.bf16.mxu0 %v8875_v8  ;;  %5066 = vmatprep.subr.bf16.mxu1 %v8876_v51  ;;  %v8886_v8 = vld [vmem:[#allocation55_spill] sm:$0xff]  ;;  %v8887_v51 = vld [vmem:[#allocation56_spill] sm:$0xff] }
 0x49c   :  { %5004 = vmatpush1.bf16.msra.mxu0 %v8877_v36  ;;  %5068 = vmatpush1.bf16.msra.mxu1 %v8878_v52  ;;  %v8888_v36 = vld [vmem:[#allocation57_spill] sm:$0xff]  ;;  %v8889_v52 = vld [vmem:[#allocation58_spill] sm:$0xff] }
 0x49d   :  { %5006 = vmatprep.subr.bf16.mxu0 %v8879_v54  ;;  %5070 = vmatprep.subr.bf16.mxu1 %v8880_v37  ;;  %v8890_v54 = vld [vmem:[#allocation59_spill] sm:$0xff]  ;;  %v8891_v37 = vld [vmem:[#allocation60_spill] sm:$0xff] }
 0x4a0   :  { %5008 = vmatpush1.bf16.msra.mxu0 %v8881_v18  ;;  %5072 = vmatpush1.bf16.msra.mxu1 %v8882_v15  ;;  %v8892_v18 = vld [vmem:[#allocation61_spill] sm:$0xff]  ;;  %v8893_v15 = vld [vmem:[#allocation62_spill] sm:$0xff] }
 0x4a1   :  { %5010 = vmatprep.subr.bf16.mxu0 %v8883_v61  ;;  %5074 = vmatprep.subr.bf16.mxu1 %v8884_v49  ;;  %v8894_v61 = vld [vmem:[#allocation63_spill] sm:$0xff]  ;;  %v8895_v49 = vld [vmem:[#allocation64_spill] sm:$0xff] }
 0x4a4   :  { %5012 = vmatpush1.bf16.msra.mxu0 %v8885_v48  ;;  %5076 = vmatpush1.bf16.msra.mxu1 %v8886_v8  ;;  %v8896_v48 = vld [vmem:[#allocation65_spill] sm:$0xff]  ;;  %v8897_v8 = vld [vmem:[#allocation66_spill] sm:$0xff] }
 0x4a5   :  { %5014 = vmatprep.subr.bf16.mxu0 %v8887_v51  ;;  %5078 = vmatprep.subr.bf16.mxu1 %v8888_v36  ;;  %v8898_v51 = vld [vmem:[#allocation67_spill] sm:$0xff]  ;;  %v8899_v36 = vld [vmem:[#allocation68_spill] sm:$0xff] }
 0x4a8   :  { %5016 = vmatpush1.bf16.msra.mxu0 %v8889_v52  ;;  %5080 = vmatpush1.bf16.msra.mxu1 %v8890_v54  ;;  %v8900_v52 = vld [vmem:[#allocation69_spill] sm:$0xff]  ;;  %v8901_v54 = vld [vmem:[#allocation70_spill] sm:$0xff] }
 0x4a9   :  { %5018 = vmatprep.subr.bf16.mxu0 %v8891_v37  ;;  %5082 = vmatprep.subr.bf16.mxu1 %v8892_v18  ;;  %v8902_v37 = vld [vmem:[#allocation71_spill] sm:$0xff]  ;;  %v8903_v18 = vld [vmem:[#allocation72_spill] sm:$0xff] }
 0x4ac   :  { %5020 = vmatpush1.bf16.msra.mxu0 %v8893_v15  ;;  %5084 = vmatpush1.bf16.msra.mxu1 %v8894_v61  ;;  %v8904_v15 = vld [vmem:[#allocation73_spill] sm:$0xff] }
 0x4ad   :  { %5022 = vmatprep.subr.bf16.mxu0 %v8895_v49  ;;  %5086 = vmatprep.subr.bf16.mxu1 %v8896_v48 }
 0x4b0   :  { %5024 = vmatpush1.bf16.msra.mxu0 %v8897_v8  ;;  %5088 = vmatpush1.bf16.msra.mxu1 %v8898_v51 }
 0x4b1   :  { %5026 = vmatprep.subr.bf16.mxu0 %v8899_v36  ;;  %5090 = vmatprep.subr.bf16.mxu1 %v8900_v52 }
 0x4b4   :  { %5028 = vmatpush1.bf16.msra.mxu0 %v8901_v54  ;;  %5092 = vmatpush1.bf16.msra.mxu1 %v8902_v37 }
 0x4b5   :  { %5094 = vmatprep.subr.bf16.mxu0 %v8903_v18  ;;  %5158 = vmatprep.subr.bf16.mxu1 %v8904_v15  ;;  %v2126_v15 = vrot.slane %v7378_v14, 7 }
 0x50a   :  { %v1822_v61 = vpop.f32.mrb[12].mxu0  ;;  %v1893_v49 = vpop.f32.mrb[12].mxu1 }
 0x50b   :  { %v2050_v28 = vrot.slane %v1893_v49, 5  ;;  %v1824_v48 = vpop.f32.mrb[13].mxu0  ;;  %v1895_v30 = vpop.f32.mrb[13].mxu1 }
 0x50c   :  { %v2051_v8 = vrot.slane %v1895_v30, 5 }
 0x50d   :  { %v2066_v51 = vadd.f32 %v2050_v28, %v8905_v46  ;;  %v2048_v46 = vrot.slane %v1822_v61, 5 }
 0x50e   :  { %v2067_v36 = vadd.f32 %v2051_v8, %v8906_v59  ;;  %v2049_v8 = vrot.slane %v1824_v48, 5 }
 0x50f   :  { %v3858_v11 = vmul.f32 -1.442695, %v2066_v51  ;;  %v2064_v51 = vadd.f32 %v2048_v46, %v7013_v2 }
 0x510   :  { %v3859_v52 = vmul.f32 -1.442695, %v2067_v36 }
 0x511   :  { %6141 = vpow2.f32 %v3858_v11  ;;  %v2065_v11 = vadd.f32 %v2049_v8, %v7040_v42 }
 0x512   :  { %6143 = vpow2.f32 %v3859_v52 }
 0x513   :  { %v3857_v55 = vmul.f32 -1.442695, %v2065_v11 }
 0x51b   :  { %v6142_v54 = vpop.eup %6141 }
 0x51c   :  { %v2098_v37 = vadd.f32 1.0, %v6142_v54  ;;  %v6144_v4 = vpop.eup %6143 }
 0x51d   :  { %v2099_v18 = vadd.f32 1.0, %v6144_v4 }
 0x51e   :  { %6145 = vrcp.f32 %v2098_v37 }
 0x51f   :  { %6147 = vrcp.f32 %v2099_v18  ;;  %v3856_v18 = vmul.f32 -1.442695, %v2064_v51 }
 0x521   :  { %6149 = vpow2.f32 %v3856_v18 }
 0x528   :  { %v6146_v49 = vpop.eup %6145 }
 0x529   :  { %v2130_v30 = vmul.f32 %v6146_v49, %v2126_v15  ;;  %v6148_v27 = vpop.eup %6147 }
 0x52a   :  { %v2131_v28 = vmul.f32 %v6148_v27, %v2127_v22 }
 0x52b   :  { %v6150_v49 = vpop.eup %6149 }
 0x54a   :  { %v1964_v36 = vpop.f32.mrb[14].mxu0  ;;  %v2035_v52 = vpop.f32.mrb[14].mxu1 }
 0x54b   :  { %v2052_v54 = vrot.slane %v1964_v36, 5  ;;  %v1966_v37 = vpop.f32.mrb[15].mxu0  ;;  %v2037_v4 = vpop.f32.mrb[15].mxu1  ;;  %v2054_v22 = vrot.slane %v2035_v52, 5 }
 0x54c   :  { %v2053_v59 = vrot.slane %v1966_v37, 5  ;;  %v2055_v46 = vrot.slane %v2037_v4, 5 }
 0x54d   :  { %v2068_v14 = vadd.f32 %v2052_v54, %v7060_v21  ;;  %v2070_v48 = vadd.f32 %v2054_v22, %v7072_v41 }
 0x54e   :  { %v2069_v57 = vadd.f32 %v2053_v59, %v7062_v5  ;;  %v2071_v61 = vadd.f32 %v2055_v46, %v7074_v35  ;;  %v2096_v59 = vadd.f32 1.0, %v6150_v49 }
 0x54f   :  { %v3860_v15 = vmul.f32 -1.442695, %v2068_v14  ;;  %v3862_v51 = vmul.f32 -1.442695, %v2070_v48 }
 0x550   :  { %v3861_v27 = vmul.f32 -1.442695, %v2069_v57  ;;  %v3863_v37 = vmul.f32 -1.442695, %v2071_v61 }
 0x551   :  { %6151 = vpow2.f32 %v3860_v15 }
 0x552   :  { %6153 = vpow2.f32 %v3857_v55 }
 0x553   :  { %6155 = vpow2.f32 %v3861_v27 }
 0x55b   :  { %v6152_v8 = vpop.eup %6151 }
 0x55c   :  { %v6154_v36 = vpop.eup %6153  ;;  %v2100_v54 = vadd.f32 1.0, %v6152_v8 }
 0x55d   :  { %v6156_v11 = vpop.eup %6155  ;;  %v2097_v14 = vadd.f32 1.0, %v6154_v36 }
 0x55e   :  { %6157 = vrcp.f32 %v2100_v54  ;;  %v2101_v18 = vadd.f32 1.0, %v6156_v11 }
 0x55f   :  { %6159 = vpow2.f32 %v3862_v51 }
 0x560   :  { %6161 = vrcp.f32 %v2101_v18 }
 0x561   :  { %6163 = vpow2.f32 %v3863_v37 }
 0x562   :  { %6165 = vrcp.f32 %v2096_v59 }
 0x563   :  { %6167 = vrcp.f32 %v2097_v14 }
 0x568   :  { %v6158_v55 = vpop.eup %6157 }
 0x569   :  { %v6160_v52 = vpop.eup %6159  ;;  %v2120_v4 = vmul.f32 2.0, %v6158_v55 }
 0x56a   :  { %v6162_v57 = vpop.eup %6161  ;;  %v2102_v48 = vadd.f32 1.0, %v6160_v52 }
 0x56b   :  { %v6164_v15 = vpop.eup %6163  ;;  %v3864_v27 = vadd.f32 -1.0, %v2120_v4  ;;  %v2121_v22 = vmul.f32 2.0, %v6162_v57 }
 0x56c   :  { %v6166_v46 = vpop.eup %6165  ;;  %v2103_v54 = vadd.f32 1.0, %v6164_v15  ;;  %6169 = vrcp.f32 %v2102_v48  ;;  %v8909_v15 = vld [vmem:[#allocation112_spill] sm:$0xff] }
 0x56d   :  { %v2132_v8 = vmul.f32 %v6166_v46, %v3864_v27  ;;  %v3865_v61 = vadd.f32 -1.0, %v2121_v22  ;;  %v6168_v49 = vpop.eup %6167  ;;  %v8910_v27 = vld [vmem:[#allocation113_spill] sm:$0xff]  ;;  %v8911_v22 = vld [vmem:[#allocation114_spill] sm:$0xff]  ;;  %v8912_v46 = vld [vmem:[#allocation115_spill] sm:$0xff] }
 0x56e   :  { %v8913_v48 = vld [vmem:[#allocation116_spill] sm:$0xff] }
 0x56f   :  { %v7528_v11 = vadd.f32 %v2132_v8, %v2130_v30  ;;  %v2133_v51 = vmul.f32 %v6168_v49, %v3865_v61  ;;  %v8907_v30 = vld [vmem:[#allocation110_spill] sm:$0xff]  ;;  %v8914_v8 = vld [vmem:[#allocation117_spill] sm:$0xff]  ;;  %v8916_v49 = vld [vmem:[#allocation119_spill] sm:$0xff] }
 0x570   :  { %v8915_v61 = vld [vmem:[#allocation118_spill] sm:$0xff] }
 0x571   :  { %6171 = vtanh.f32 %v7528_v11  ;;  %v7531_v36 = vadd.f32 %v2133_v51, %v2131_v28  ;;  %v8908_v28 = vld [vmem:[#allocation111_spill] sm:$0xff]  ;;  %v8918_v51 = vld [vmem:[#allocation121_spill] sm:$0xff] }
 0x572   :  { %6173 = vrcp.f32 %v2103_v54  ;;  %v8917_v54 = vld [vmem:[#allocation120_spill] sm:$0xff] }
 0x573   :  { %6175 = vtanh.f32 %v7531_v36 }
 0x576   :  { %v6170_v37 = vpop.eup %6169 }
 0x57b   :  { %v6172_v59 = vpop.eup %6171 }
 0x57c   :  { %v6174_v18 = vpop.eup %6173  ;;  %v2138_v14 = vmul.f32 %v6172_v59, %v6170_v37  ;;  %v8919_v37 = vld [vmem:[#allocation122_spill] sm:$0xff]  ;;  %v8920_v59 = vld [vmem:[#allocation123_spill] sm:$0xff] }
 0x57d   :  { %v6176_v55 = vpop.eup %6175 }
 0x57e   :  { %v2139_v52 = vmul.f32 %v6176_v55, %v6174_v18  ;;  %v7534_v57 = vrot.slane %v2138_v14, 3  ;;  %v8921_v18 = vld [vmem:[#allocation124_spill] sm:$0xff]  ;;  %v8922_v14 = vld [vmem:[#allocation125_spill] sm:$0xff]  ;;  %v8923_v55 = vld [vmem:[#allocation126_spill] sm:$0xff] }
 0x580   :  { %v2143_v4 = vrot.slane %v2139_v52, 3  ;;  %v8924_v52 = vld [vmem:[#allocation127_spill] sm:$0xff] }
 0x582   :  { %2210 = vmatprep.mubr.f32.mxu0 %v2143_v4  ;;  %2281 = vmatprep.mubr.f32.mxu1 %v2143_v4 }
 0x583   :  { %2211 = vmatmul.mubr.f32.vlgmr.msra.gmra.mrb[16].mxu0 %v7534_v57  ;;  %2282 = vmatmul.mubr.f32.vlgmr.msra.gmra.mrb[16].mxu1 %v7534_v57 }
 0x584   :  { %5096 = vmatpush1.bf16.msra.mxu0 %v8611_v24  ;;  %5160 = vmatpush1.bf16.msra.mxu1 %v8612_v58 }
 0x585   :  { %2352 = vmatprep.mubr.f32.mxu0 %v2143_v4  ;;  %2423 = vmatprep.mubr.f32.mxu1 %v2143_v4  ;;  %v8925_v4 = vld [vmem:[#allocation128_spill] sm:$0xff] }
 0x586   :  { %5098 = vmatprep.subr.bf16.mxu0 %v8613_v56  ;;  %5162 = vmatprep.subr.bf16.mxu1 %v8614_v12 }
 0x588   :  { %5100 = vmatpush1.bf16.msra.mxu0 %v8615_v29  ;;  %5164 = vmatpush1.bf16.msra.mxu1 %v8616_v47 }
 0x589   :  { %5102 = vmatprep.subr.bf16.mxu0 %v8617_v38  ;;  %5166 = vmatprep.subr.bf16.mxu1 %v8618_v20 }
 0x58c   :  { %5104 = vmatpush1.bf16.msra.mxu0 %v8619_v32  ;;  %5168 = vmatpush1.bf16.msra.mxu1 %v8620_v6 }
 0x58d   :  { %5106 = vmatprep.subr.bf16.mxu0 %v8621_v62  ;;  %5170 = vmatprep.subr.bf16.mxu1 %v8622_v39 }
 0x590   :  { %5108 = vmatpush1.bf16.msra.mxu0 %v8623_v45  ;;  %5172 = vmatpush1.bf16.msra.mxu1 %v8624_v63 }
 0x591   :  { %5110 = vmatprep.subr.bf16.mxu0 %v8625_v31  ;;  %5174 = vmatprep.subr.bf16.mxu1 %v8626_v19 }
 0x594   :  { %5112 = vmatpush1.bf16.msra.mxu0 %v8627_v40  ;;  %5176 = vmatpush1.bf16.msra.mxu1 %v8628_v43 }
 0x595   :  { %5114 = vmatprep.subr.bf16.mxu0 %v8629_v33  ;;  %5178 = vmatprep.subr.bf16.mxu1 %v8630_v3 }
 0x598   :  { %5116 = vmatpush1.bf16.msra.mxu0 %v8631_v53  ;;  %5180 = vmatpush1.bf16.msra.mxu1 %v8632_v44 }
 0x599   :  { %5118 = vmatprep.subr.bf16.mxu0 %v8633_v26  ;;  %5182 = vmatprep.subr.bf16.mxu1 %v8719_v7 }
 0x59c   :  { %5120 = vmatpush1.bf16.msra.mxu0 %v8720_v10  ;;  %5184 = vmatpush1.bf16.msra.mxu1 %v8721_v60 }
 0x59d   :  { %5122 = vmatprep.subr.bf16.mxu0 %v8722_v1  ;;  %5186 = vmatprep.subr.bf16.mxu1 %v8723_v9 }
 0x5a0   :  { %5124 = vmatpush1.bf16.msra.mxu0 %v8724_v0  ;;  %5188 = vmatpush1.bf16.msra.mxu1 %v8725_v50 }
 0x5a1   :  { %5126 = vmatprep.subr.bf16.mxu0 %v8726_v13  ;;  %5190 = vmatprep.subr.bf16.mxu1 %v8727_v23 }
 0x5a4   :  { %5128 = vmatpush1.bf16.msra.mxu0 %v8728_v16  ;;  %5192 = vmatpush1.bf16.msra.mxu1 %v8729_v25 }
 0x5a5   :  { %5130 = vmatprep.subr.bf16.mxu0 %v8730_v17  ;;  %5194 = vmatprep.subr.bf16.mxu1 %v8731_v34 }
 0x5a8   :  { %5132 = vmatpush1.bf16.msra.mxu0 %v8907_v30  ;;  %5196 = vmatpush1.bf16.msra.mxu1 %v8908_v28 }
 0x5a9   :  { %5134 = vmatprep.subr.bf16.mxu0 %v8909_v15  ;;  %5198 = vmatprep.subr.bf16.mxu1 %v8910_v27  ;;  %v2517_v15 = vrot.slane %v7531_v36, 7 }
 0x5ac   :  { %5136 = vmatpush1.bf16.msra.mxu0 %v8911_v22  ;;  %5200 = vmatpush1.bf16.msra.mxu1 %v8912_v46  ;;  %v9000_v46 = vld [vmem:[#allocation137_spill] sm:$0xff] }
 0x5ad   :  { %5138 = vmatprep.subr.bf16.mxu0 %v8913_v48  ;;  %5202 = vmatprep.subr.bf16.mxu1 %v8914_v8  ;;  %v8999_v48 = vld [vmem:[#allocation136_spill] sm:$0xff] }
 0x5b0   :  { %5140 = vmatpush1.bf16.msra.mxu0 %v8915_v61  ;;  %5204 = vmatpush1.bf16.msra.mxu1 %v8916_v49  ;;  %v8926_v61 = vld [vmem:[#allocation129_spill] sm:$0xff]  ;;  %v8927_v49 = vld [vmem:[#allocation130_spill] sm:$0xff] }
 0x5b1   :  { %5142 = vmatprep.subr.bf16.mxu0 %v8917_v54  ;;  %5206 = vmatprep.subr.bf16.mxu1 %v8918_v51  ;;  %v8928_v54 = vld [vmem:[#allocation131_spill] sm:$0xff]  ;;  %v8929_v51 = vld [vmem:[#allocation132_spill] sm:$0xff] }
 0x5b4   :  { %5144 = vmatpush1.bf16.msra.mxu0 %v8919_v37  ;;  %5208 = vmatpush1.bf16.msra.mxu1 %v8920_v59  ;;  %v8930_v37 = vld [vmem:[#allocation133_spill] sm:$0xff]  ;;  %v8931_v59 = vld [vmem:[#allocation134_spill] sm:$0xff] }
 0x5b5   :  { %5146 = vmatprep.subr.bf16.mxu0 %v8921_v18  ;;  %5210 = vmatprep.subr.bf16.mxu1 %v8922_v14  ;;  %v8932_v18 = vld [vmem:[#allocation135_spill] sm:$0xff]  ;;  %v8933_v14 = vld [vmem:[#allocation8_spill] sm:$0xff] }
 0x5b8   :  { %5148 = vmatpush1.bf16.msra.mxu0 %v8923_v55  ;;  %5212 = vmatpush1.bf16.msra.mxu1 %v8924_v52  ;;  %v8934_v55 = vld [vmem:[#allocation9_spill] sm:$0xff] }
 0x5b9   :  { %5150 = vmatprep.subr.bf16.mxu0 %v8925_v4  ;;  %5214 = vmatprep.subr.bf16.mxu1 %v8926_v61  ;;  %v8935_v61 = vld [vmem:[#allocation10_spill] sm:$0xff]  ;;  %v8944_v4 = vld [vmem:[#allocation19_spill] sm:$0xff] }
 0x5bc   :  { %5152 = vmatpush1.bf16.msra.mxu0 %v8927_v49  ;;  %5216 = vmatpush1.bf16.msra.mxu1 %v8928_v54  ;;  %v8936_v49 = vld [vmem:[#allocation11_spill] sm:$0xff]  ;;  %v8937_v54 = vld [vmem:[#allocation12_spill] sm:$0xff] }
 0x5bd   :  { %5154 = vmatprep.subr.bf16.mxu0 %v8929_v51  ;;  %5218 = vmatprep.subr.bf16.mxu1 %v8930_v37  ;;  %v8938_v51 = vld [vmem:[#allocation13_spill] sm:$0xff]  ;;  %v8939_v37 = vld [vmem:[#allocation14_spill] sm:$0xff] }
 0x5c0   :  { %5156 = vmatpush1.bf16.msra.mxu0 %v8931_v59  ;;  %5220 = vmatpush1.bf16.msra.mxu1 %v8932_v18  ;;  %v8940_v59 = vld [vmem:[#allocation15_spill] sm:$0xff]  ;;  %v8941_v18 = vld [vmem:[#allocation16_spill] sm:$0xff] }
 0x5c1   :  { %5222 = vmatprep.subr.bf16.mxu0 %v8933_v14  ;;  %5286 = vmatprep.subr.bf16.mxu1 %v8934_v55  ;;  %v8942_v14 = vld [vmem:[#allocation17_spill] sm:$0xff]  ;;  %v8943_v55 = vld [vmem:[#allocation18_spill] sm:$0xff] }
 0x5c3   :  { %2353 = vmatmul.mubr.f32.vlgmr.msra.gmra.mrb[18].mxu0 %v7534_v57  ;;  %2424 = vmatmul.mubr.f32.vlgmr.msra.gmra.mrb[18].mxu1 %v7534_v57  ;;  %v8945_v57 = vld [vmem:[#allocation20_spill] sm:$0xff] }
 0x5c4   :  { %5224 = vmatpush1.bf16.msra.mxu0 %v8935_v61  ;;  %5288 = vmatpush1.bf16.msra.mxu1 %v8936_v49  ;;  %v8946_v61 = vld [vmem:[#allocation21_spill] sm:$0xff]  ;;  %v8947_v49 = vld [vmem:[#allocation22_spill] sm:$0xff] }
 0x5c5   :  { %5226 = vmatprep.subr.bf16.mxu0 %v8937_v54  ;;  %5290 = vmatprep.subr.bf16.mxu1 %v8938_v51  ;;  %v8948_v54 = vld [vmem:[#allocation23_spill] sm:$0xff]  ;;  %v8949_v51 = vld [vmem:[#allocation24_spill] sm:$0xff] }
 0x5c8   :  { %5228 = vmatpush1.bf16.msra.mxu0 %v8939_v37  ;;  %5292 = vmatpush1.bf16.msra.mxu1 %v8940_v59  ;;  %v8950_v37 = vld [vmem:[#allocation25_spill] sm:$0xff]  ;;  %v8951_v59 = vld [vmem:[#allocation26_spill] sm:$0xff] }
 0x5c9   :  { %5230 = vmatprep.subr.bf16.mxu0 %v8941_v18  ;;  %5294 = vmatprep.subr.bf16.mxu1 %v8942_v14  ;;  %v8952_v18 = vld [vmem:[#allocation27_spill] sm:$0xff]  ;;  %v8953_v14 = vld [vmem:[#allocation28_spill] sm:$0xff] }
 0x5cc   :  { %5232 = vmatpush1.bf16.msra.mxu0 %v8943_v55  ;;  %5296 = vmatpush1.bf16.msra.mxu1 %v8944_v4  ;;  %v8954_v55 = vld [vmem:[#allocation29_spill] sm:$0xff]  ;;  %v8955_v4 = vld [vmem:[#allocation30_spill] sm:$0xff] }
 0x5cd   :  { %5234 = vmatprep.subr.bf16.mxu0 %v8945_v57  ;;  %5298 = vmatprep.subr.bf16.mxu1 %v8946_v61  ;;  %v8956_v57 = vld [vmem:[#allocation31_spill] sm:$0xff]  ;;  %v8957_v61 = vld [vmem:[#allocation32_spill] sm:$0xff] }
 0x5d0   :  { %5236 = vmatpush1.bf16.msra.mxu0 %v8947_v49  ;;  %5300 = vmatpush1.bf16.msra.mxu1 %v8948_v54  ;;  %v8958_v49 = vld [vmem:[#allocation33_spill] sm:$0xff]  ;;  %v8959_v54 = vld [vmem:[#allocation34_spill] sm:$0xff] }
 0x5d1   :  { %5238 = vmatprep.subr.bf16.mxu0 %v8949_v51  ;;  %5302 = vmatprep.subr.bf16.mxu1 %v8950_v37  ;;  %v8960_v51 = vld [vmem:[#allocation35_spill] sm:$0xff]  ;;  %v8961_v37 = vld [vmem:[#allocation36_spill] sm:$0xff] }
 0x5d4   :  { %5240 = vmatpush1.bf16.msra.mxu0 %v8951_v59  ;;  %5304 = vmatpush1.bf16.msra.mxu1 %v8952_v18  ;;  %v8962_v59 = vld [vmem:[#allocation37_spill] sm:$0xff]  ;;  %v8963_v18 = vld [vmem:[#allocation38_spill] sm:$0xff] }
 0x5d5   :  { %5242 = vmatprep.subr.bf16.mxu0 %v8953_v14  ;;  %5306 = vmatprep.subr.bf16.mxu1 %v8954_v55  ;;  %v8964_v14 = vld [vmem:[#allocation39_spill] sm:$0xff]  ;;  %v8965_v55 = vld [vmem:[#allocation40_spill] sm:$0xff] }
 0x5d8   :  { %5244 = vmatpush1.bf16.msra.mxu0 %v8955_v4  ;;  %5308 = vmatpush1.bf16.msra.mxu1 %v8956_v57  ;;  %v8966_v4 = vld [vmem:[#allocation41_spill] sm:$0xff]  ;;  %v8967_v57 = vld [vmem:[#allocation42_spill] sm:$0xff] }
 0x5d9   :  { %5246 = vmatprep.subr.bf16.mxu0 %v8957_v61  ;;  %5310 = vmatprep.subr.bf16.mxu1 %v8958_v49  ;;  %v8968_v61 = vld [vmem:[#allocation43_spill] sm:$0xff]  ;;  %v8969_v49 = vld [vmem:[#allocation44_spill] sm:$0xff] }
 0x5dc   :  { %5248 = vmatpush1.bf16.msra.mxu0 %v8959_v54  ;;  %5312 = vmatpush1.bf16.msra.mxu1 %v8960_v51  ;;  %v8970_v54 = vld [vmem:[#allocation45_spill] sm:$0xff]  ;;  %v8971_v51 = vld [vmem:[#allocation46_spill] sm:$0xff] }
 0x5dd   :  { %5250 = vmatprep.subr.bf16.mxu0 %v8961_v37  ;;  %5314 = vmatprep.subr.bf16.mxu1 %v8962_v59  ;;  %v8972_v37 = vld [vmem:[#allocation47_spill] sm:$0xff]  ;;  %v8973_v59 = vld [vmem:[#allocation48_spill] sm:$0xff] }
 0x5e0   :  { %5252 = vmatpush1.bf16.msra.mxu0 %v8963_v18  ;;  %5316 = vmatpush1.bf16.msra.mxu1 %v8964_v14  ;;  %v8974_v18 = vld [vmem:[#allocation49_spill] sm:$0xff]  ;;  %v8975_v14 = vld [vmem:[#allocation50_spill] sm:$0xff] }
 0x5e1   :  { %5254 = vmatprep.subr.bf16.mxu0 %v8965_v55  ;;  %5318 = vmatprep.subr.bf16.mxu1 %v8966_v4  ;;  %v8976_v55 = vld [vmem:[#allocation51_spill] sm:$0xff]  ;;  %v8977_v4 = vld [vmem:[#allocation52_spill] sm:$0xff] }
 0x5e4   :  { %5256 = vmatpush1.bf16.msra.mxu0 %v8967_v57  ;;  %5320 = vmatpush1.bf16.msra.mxu1 %v8968_v61  ;;  %v8978_v57 = vld [vmem:[#allocation53_spill] sm:$0xff]  ;;  %v8979_v61 = vld [vmem:[#allocation54_spill] sm:$0xff] }
 0x5e5   :  { %5258 = vmatprep.subr.bf16.mxu0 %v8969_v49  ;;  %5322 = vmatprep.subr.bf16.mxu1 %v8970_v54  ;;  %v8980_v49 = vld [vmem:[#allocation55_spill] sm:$0xff]  ;;  %v8981_v54 = vld [vmem:[#allocation56_spill] sm:$0xff] }
 0x5e8   :  { %5260 = vmatpush1.bf16.msra.mxu0 %v8971_v51  ;;  %5324 = vmatpush1.bf16.msra.mxu1 %v8972_v37  ;;  %v8982_v51 = vld [vmem:[#allocation57_spill] sm:$0xff]  ;;  %v8983_v37 = vld [vmem:[#allocation58_spill] sm:$0xff] }
 0x5e9   :  { %5262 = vmatprep.subr.bf16.mxu0 %v8973_v59  ;;  %5326 = vmatprep.subr.bf16.mxu1 %v8974_v18  ;;  %v8984_v59 = vld [vmem:[#allocation59_spill] sm:$0xff]  ;;  %v8985_v18 = vld [vmem:[#allocation60_spill] sm:$0xff] }
 0x5ec   :  { %5264 = vmatpush1.bf16.msra.mxu0 %v8975_v14  ;;  %5328 = vmatpush1.bf16.msra.mxu1 %v8976_v55  ;;  %v8986_v14 = vld [vmem:[#allocation61_spill] sm:$0xff]  ;;  %v8987_v55 = vld [vmem:[#allocation62_spill] sm:$0xff] }
 0x5ed   :  { %5266 = vmatprep.subr.bf16.mxu0 %v8977_v4  ;;  %5330 = vmatprep.subr.bf16.mxu1 %v8978_v57  ;;  %v8988_v4 = vld [vmem:[#allocation63_spill] sm:$0xff]  ;;  %v8989_v57 = vld [vmem:[#allocation64_spill] sm:$0xff] }
 0x5f0   :  { %5268 = vmatpush1.bf16.msra.mxu0 %v8979_v61  ;;  %5332 = vmatpush1.bf16.msra.mxu1 %v8980_v49  ;;  %v8990_v61 = vld [vmem:[#allocation65_spill] sm:$0xff]  ;;  %v8991_v49 = vld [vmem:[#allocation66_spill] sm:$0xff] }
 0x5f1   :  { %5270 = vmatprep.subr.bf16.mxu0 %v8981_v54  ;;  %5334 = vmatprep.subr.bf16.mxu1 %v8982_v51  ;;  %v8992_v54 = vld [vmem:[#allocation67_spill] sm:$0xff]  ;;  %v8993_v51 = vld [vmem:[#allocation68_spill] sm:$0xff] }
 0x5f4   :  { %5272 = vmatpush1.bf16.msra.mxu0 %v8983_v37  ;;  %5336 = vmatpush1.bf16.msra.mxu1 %v8984_v59  ;;  %v8994_v37 = vld [vmem:[#allocation69_spill] sm:$0xff]  ;;  %v8995_v59 = vld [vmem:[#allocation70_spill] sm:$0xff] }
 0x5f5   :  { %5274 = vmatprep.subr.bf16.mxu0 %v8985_v18  ;;  %5338 = vmatprep.subr.bf16.mxu1 %v8986_v14  ;;  %v8996_v18 = vld [vmem:[#allocation71_spill] sm:$0xff]  ;;  %v8997_v14 = vld [vmem:[#allocation72_spill] sm:$0xff] }
 0x5f8   :  { %5276 = vmatpush1.bf16.msra.mxu0 %v8987_v55  ;;  %5340 = vmatpush1.bf16.msra.mxu1 %v8988_v4  ;;  %v8998_v55 = vld [vmem:[#allocation73_spill] sm:$0xff] }
 0x5f9   :  { %5278 = vmatprep.subr.bf16.mxu0 %v8989_v57  ;;  %5342 = vmatprep.subr.bf16.mxu1 %v8990_v61 }
 0x5fc   :  { %5280 = vmatpush1.bf16.msra.mxu0 %v8991_v49  ;;  %5344 = vmatpush1.bf16.msra.mxu1 %v8992_v54 }
 0x5fd   :  { %5282 = vmatprep.subr.bf16.mxu0 %v8993_v51  ;;  %5346 = vmatprep.subr.bf16.mxu1 %v8994_v37 }
 0x600   :  { %5284 = vmatpush1.bf16.msra.mxu0 %v8995_v59  ;;  %5348 = vmatpush1.bf16.msra.mxu1 %v8996_v18 }
 0x601   :  { %5350 = vmatprep.subr.bf16.mxu0 %v8997_v14  ;;  %5414 = vmatprep.subr.bf16.mxu1 %v8998_v55  ;;  %v2516_v55 = vrot.slane %v7528_v11, 7 }
 0x656   :  { %v2212_v4 = vpop.f32.mrb[16].mxu0  ;;  %v2283_v57 = vpop.f32.mrb[16].mxu1 }
 0x657   :  { %v2440_v52 = vrot.slane %v2283_v57, 4  ;;  %v2214_v61 = vpop.f32.mrb[17].mxu0  ;;  %v2285_v8 = vpop.f32.mrb[17].mxu1 }
 0x658   :  { %v2441_v49 = vrot.slane %v2285_v8, 4 }
 0x659   :  { %v2456_v54 = vadd.f32 %v2440_v52, %v8999_v48  ;;  %v2438_v48 = vrot.slane %v2212_v4, 4 }
 0x65a   :  { %v2457_v51 = vadd.f32 %v2441_v49, %v9000_v46  ;;  %v2439_v49 = vrot.slane %v2214_v61, 4 }
 0x65b   :  { %v3868_v22 = vmul.f32 -1.442695, %v2456_v54  ;;  %v2454_v54 = vadd.f32 %v2438_v48, %v7013_v2 }
 0x65c   :  { %v3869_v37 = vmul.f32 -1.442695, %v2457_v51 }
 0x65d   :  { %6177 = vpow2.f32 %v3868_v22  ;;  %v2455_v22 = vadd.f32 %v2439_v49, %v7040_v42 }
 0x65e   :  { %6179 = vpow2.f32 %v3869_v37 }
 0x65f   :  { %v3867_v30 = vmul.f32 -1.442695, %v2455_v22 }
 0x667   :  { %v6178_v59 = vpop.eup %6177 }
 0x668   :  { %v2488_v18 = vadd.f32 1.0, %v6178_v59  ;;  %v6180_v27 = vpop.eup %6179 }
 0x669   :  { %v2489_v14 = vadd.f32 1.0, %v6180_v27 }
 0x66a   :  { %6181 = vrcp.f32 %v2488_v18 }
 0x66b   :  { %6183 = vrcp.f32 %v2489_v14  ;;  %v3866_v14 = vmul.f32 -1.442695, %v2454_v54 }
 0x66d   :  { %6185 = vpow2.f32 %v3866_v14 }
 0x674   :  { %v6182_v57 = vpop.eup %6181 }
 0x675   :  { %v2520_v8 = vmul.f32 %v6182_v57, %v2516_v55  ;;  %v6184_v28 = vpop.eup %6183 }
 0x676   :  { %v2521_v52 = vmul.f32 %v6184_v28, %v2517_v15 }
 0x677   :  { %v6186_v57 = vpop.eup %6185 }
 0x696   :  { %v2354_v51 = vpop.f32.mrb[18].mxu0  ;;  %v2425_v37 = vpop.f32.mrb[18].mxu1 }
 0x697   :  { %v2442_v59 = vrot.slane %v2354_v51, 4  ;;  %v2356_v18 = vpop.f32.mrb[19].mxu0  ;;  %v2427_v27 = vpop.f32.mrb[19].mxu1  ;;  %v2444_v15 = vrot.slane %v2425_v37, 4 }
 0x698   :  { %v2443_v46 = vrot.slane %v2356_v18, 4  ;;  %v2445_v48 = vrot.slane %v2427_v27, 4 }
 0x699   :  { %v2458_v11 = vadd.f32 %v2442_v59, %v7060_v21  ;;  %v2460_v61 = vadd.f32 %v2444_v15, %v7072_v41 }
 0x69a   :  { %v2459_v36 = vadd.f32 %v2443_v46, %v7062_v5  ;;  %v2461_v4 = vadd.f32 %v2445_v48, %v7074_v35  ;;  %v2486_v46 = vadd.f32 1.0, %v6186_v57 }
 0x69b   :  { %v3870_v55 = vmul.f32 -1.442695, %v2458_v11  ;;  %v3872_v54 = vmul.f32 -1.442695, %v2460_v61 }
 0x69c   :  { %v3871_v28 = vmul.f32 -1.442695, %v2459_v36  ;;  %v3873_v18 = vmul.f32 -1.442695, %v2461_v4 }
 0x69d   :  { %6187 = vpow2.f32 %v3870_v55 }
 0x69e   :  { %6189 = vpow2.f32 %v3867_v30 }
 0x69f   :  { %6191 = vpow2.f32 %v3871_v28 }
 0x6a7   :  { %v6188_v49 = vpop.eup %6187 }
 0x6a8   :  { %v6190_v51 = vpop.eup %6189  ;;  %v2490_v59 = vadd.f32 1.0, %v6188_v49 }
 0x6a9   :  { %v6192_v22 = vpop.eup %6191  ;;  %v2487_v11 = vadd.f32 1.0, %v6190_v51 }
 0x6aa   :  { %6193 = vrcp.f32 %v2490_v59  ;;  %v2491_v14 = vadd.f32 1.0, %v6192_v22 }
 0x6ab   :  { %6195 = vpow2.f32 %v3872_v54 }
 0x6ac   :  { %6197 = vrcp.f32 %v2491_v14 }
 0x6ad   :  { %6199 = vpow2.f32 %v3873_v18 }
 0x6ae   :  { %6201 = vrcp.f32 %v2486_v46 }
 0x6af   :  { %6203 = vrcp.f32 %v2487_v11 }
 0x6b4   :  { %v6194_v30 = vpop.eup %6193 }
 0x6b5   :  { %v6196_v37 = vpop.eup %6195  ;;  %v2510_v27 = vmul.f32 2.0, %v6194_v30 }
 0x6b6   :  { %v6198_v36 = vpop.eup %6197  ;;  %v2492_v61 = vadd.f32 1.0, %v6196_v37 }
 0x6b7   :  { %v6200_v55 = vpop.eup %6199  ;;  %v3874_v28 = vadd.f32 -1.0, %v2510_v27  ;;  %v2511_v15 = vmul.f32 2.0, %v6198_v36 }
 0x6b8   :  { %v6202_v48 = vpop.eup %6201  ;;  %v2493_v59 = vadd.f32 1.0, %v6200_v55  ;;  %6205 = vrcp.f32 %v2492_v61  ;;  %v9003_v55 = vld [vmem:[#allocation112_spill] sm:$0xff] }
 0x6b9   :  { %v2522_v49 = vmul.f32 %v6202_v48, %v3874_v28  ;;  %v3875_v4 = vadd.f32 -1.0, %v2511_v15  ;;  %v6204_v57 = vpop.eup %6203  ;;  %v9004_v28 = vld [vmem:[#allocation113_spill] sm:$0xff]  ;;  %v9005_v15 = vld [vmem:[#allocation114_spill] sm:$0xff]  ;;  %v9006_v48 = vld [vmem:[#allocation115_spill] sm:$0xff] }
 0x6ba   :  { %v9007_v61 = vld [vmem:[#allocation116_spill] sm:$0xff] }
 0x6bb   :  { %v7678_v22 = vadd.f32 %v2522_v49, %v2520_v8  ;;  %v2523_v54 = vmul.f32 %v6204_v57, %v3875_v4  ;;  %v9001_v8 = vld [vmem:[#allocation110_spill] sm:$0xff]  ;;  %v9008_v49 = vld [vmem:[#allocation117_spill] sm:$0xff]  ;;  %v9010_v57 = vld [vmem:[#allocation119_spill] sm:$0xff] }
 0x6bc   :  { %v9009_v4 = vld [vmem:[#allocation118_spill] sm:$0xff] }
 0x6bd   :  { %6207 = vtanh.f32 %v7678_v22  ;;  %v7681_v51 = vadd.f32 %v2523_v54, %v2521_v52  ;;  %v9002_v52 = vld [vmem:[#allocation111_spill] sm:$0xff]  ;;  %v9012_v54 = vld [vmem:[#allocation121_spill] sm:$0xff] }
 0x6be   :  { %6209 = vrcp.f32 %v2493_v59  ;;  %v9011_v59 = vld [vmem:[#allocation120_spill] sm:$0xff] }
 0x6bf   :  { %6211 = vtanh.f32 %v7681_v51 }
 0x6c2   :  { %v6206_v18 = vpop.eup %6205 }
 0x6c7   :  { %v6208_v46 = vpop.eup %6207 }
 0x6c8   :  { %v6210_v14 = vpop.eup %6209  ;;  %v2528_v11 = vmul.f32 %v6208_v46, %v6206_v18  ;;  %v9013_v18 = vld [vmem:[#allocation122_spill] sm:$0xff]  ;;  %v9014_v46 = vld [vmem:[#allocation123_spill] sm:$0xff] }
 0x6c9   :  { %v6212_v30 = vpop.eup %6211 }
 0x6ca   :  { %v2529_v37 = vmul.f32 %v6212_v30, %v6210_v14  ;;  %v7684_v36 = vrot.slane %v2528_v11, 4  ;;  %v9015_v14 = vld [vmem:[#allocation124_spill] sm:$0xff]  ;;  %v9016_v11 = vld [vmem:[#allocation125_spill] sm:$0xff]  ;;  %v9017_v30 = vld [vmem:[#allocation126_spill] sm:$0xff] }
 0x6cc   :  { %v2533_v27 = vrot.slane %v2529_v37, 4  ;;  %v9018_v37 = vld [vmem:[#allocation127_spill] sm:$0xff] }
 0x6ce   :  { %2600 = vmatprep.mubr.f32.mxu0 %v2533_v27  ;;  %2671 = vmatprep.mubr.f32.mxu1 %v2533_v27 }
 0x6cf   :  { %2601 = vmatmul.mubr.f32.vlgmr.msra.gmra.mrb[20].mxu0 %v7684_v36  ;;  %2672 = vmatmul.mubr.f32.vlgmr.msra.gmra.mrb[20].mxu1 %v7684_v36 }
 0x6d0   :  { %5352 = vmatpush1.bf16.msra.mxu0 %v8611_v24  ;;  %5416 = vmatpush1.bf16.msra.mxu1 %v8612_v58 }
 0x6d1   :  { %2742 = vmatprep.mubr.f32.mxu0 %v2533_v27  ;;  %2813 = vmatprep.mubr.f32.mxu1 %v2533_v27  ;;  %v9019_v27 = vld [vmem:[#allocation128_spill] sm:$0xff] }
 0x6d2   :  { %5354 = vmatprep.subr.bf16.mxu0 %v8613_v56  ;;  %5418 = vmatprep.subr.bf16.mxu1 %v8614_v12 }
 0x6d4   :  { %5356 = vmatpush1.bf16.msra.mxu0 %v8615_v29  ;;  %5420 = vmatpush1.bf16.msra.mxu1 %v8616_v47 }
 0x6d5   :  { %5358 = vmatprep.subr.bf16.mxu0 %v8617_v38  ;;  %5422 = vmatprep.subr.bf16.mxu1 %v8618_v20 }
 0x6d8   :  { %5360 = vmatpush1.bf16.msra.mxu0 %v8619_v32  ;;  %5424 = vmatpush1.bf16.msra.mxu1 %v8620_v6 }
 0x6d9   :  { %5362 = vmatprep.subr.bf16.mxu0 %v8621_v62  ;;  %5426 = vmatprep.subr.bf16.mxu1 %v8622_v39 }
 0x6dc   :  { %5364 = vmatpush1.bf16.msra.mxu0 %v8623_v45  ;;  %5428 = vmatpush1.bf16.msra.mxu1 %v8624_v63 }
 0x6dd   :  { %5366 = vmatprep.subr.bf16.mxu0 %v8625_v31  ;;  %5430 = vmatprep.subr.bf16.mxu1 %v8626_v19 }
 0x6e0   :  { %5368 = vmatpush1.bf16.msra.mxu0 %v8627_v40  ;;  %5432 = vmatpush1.bf16.msra.mxu1 %v8628_v43 }
 0x6e1   :  { %5370 = vmatprep.subr.bf16.mxu0 %v8629_v33  ;;  %5434 = vmatprep.subr.bf16.mxu1 %v8630_v3 }
 0x6e4   :  { %5372 = vmatpush1.bf16.msra.mxu0 %v8631_v53  ;;  %5436 = vmatpush1.bf16.msra.mxu1 %v8632_v44 }
 0x6e5   :  { %5374 = vmatprep.subr.bf16.mxu0 %v8633_v26  ;;  %5438 = vmatprep.subr.bf16.mxu1 %v8719_v7 }
 0x6e8   :  { %5376 = vmatpush1.bf16.msra.mxu0 %v8720_v10  ;;  %5440 = vmatpush1.bf16.msra.mxu1 %v8721_v60 }
 0x6e9   :  { %5378 = vmatprep.subr.bf16.mxu0 %v8722_v1  ;;  %5442 = vmatprep.subr.bf16.mxu1 %v8723_v9 }
 0x6ec   :  { %5380 = vmatpush1.bf16.msra.mxu0 %v8724_v0  ;;  %5444 = vmatpush1.bf16.msra.mxu1 %v8725_v50 }
 0x6ed   :  { %5382 = vmatprep.subr.bf16.mxu0 %v8726_v13  ;;  %5446 = vmatprep.subr.bf16.mxu1 %v8727_v23 }
 0x6f0   :  { %5384 = vmatpush1.bf16.msra.mxu0 %v8728_v16  ;;  %5448 = vmatpush1.bf16.msra.mxu1 %v8729_v25 }
 0x6f1   :  { %5386 = vmatprep.subr.bf16.mxu0 %v8730_v17  ;;  %5450 = vmatprep.subr.bf16.mxu1 %v8731_v34 }
 0x6f4   :  { %5388 = vmatpush1.bf16.msra.mxu0 %v9001_v8  ;;  %5452 = vmatpush1.bf16.msra.mxu1 %v9002_v52 }
 0x6f5   :  { %5390 = vmatprep.subr.bf16.mxu0 %v9003_v55  ;;  %5454 = vmatprep.subr.bf16.mxu1 %v9004_v28  ;;  %v2907_v55 = vrot.slane %v7681_v51, 7 }
 0x6f8   :  { %5392 = vmatpush1.bf16.msra.mxu0 %v9005_v15  ;;  %5456 = vmatpush1.bf16.msra.mxu1 %v9006_v48  ;;  %v9094_v48 = vld [vmem:[#allocation137_spill] sm:$0xff] }
 0x6f9   :  { %5394 = vmatprep.subr.bf16.mxu0 %v9007_v61  ;;  %5458 = vmatprep.subr.bf16.mxu1 %v9008_v49  ;;  %v9093_v61 = vld [vmem:[#allocation136_spill] sm:$0xff] }
 0x6fc   :  { %5396 = vmatpush1.bf16.msra.mxu0 %v9009_v4  ;;  %5460 = vmatpush1.bf16.msra.mxu1 %v9010_v57  ;;  %v9020_v4 = vld [vmem:[#allocation129_spill] sm:$0xff]  ;;  %v9021_v57 = vld [vmem:[#allocation130_spill] sm:$0xff] }
 0x6fd   :  { %5398 = vmatprep.subr.bf16.mxu0 %v9011_v59  ;;  %5462 = vmatprep.subr.bf16.mxu1 %v9012_v54  ;;  %v9022_v59 = vld [vmem:[#allocation131_spill] sm:$0xff]  ;;  %v9023_v54 = vld [vmem:[#allocation132_spill] sm:$0xff] }
 0x700   :  { %5400 = vmatpush1.bf16.msra.mxu0 %v9013_v18  ;;  %5464 = vmatpush1.bf16.msra.mxu1 %v9014_v46  ;;  %v9024_v18 = vld [vmem:[#allocation133_spill] sm:$0xff]  ;;  %v9025_v46 = vld [vmem:[#allocation134_spill] sm:$0xff] }
 0x701   :  { %5402 = vmatprep.subr.bf16.mxu0 %v9015_v14  ;;  %5466 = vmatprep.subr.bf16.mxu1 %v9016_v11  ;;  %v9026_v14 = vld [vmem:[#allocation135_spill] sm:$0xff]  ;;  %v9027_v11 = vld [vmem:[#allocation8_spill] sm:$0xff] }
 0x704   :  { %5404 = vmatpush1.bf16.msra.mxu0 %v9017_v30  ;;  %5468 = vmatpush1.bf16.msra.mxu1 %v9018_v37  ;;  %v9028_v30 = vld [vmem:[#allocation9_spill] sm:$0xff] }
 0x705   :  { %5406 = vmatprep.subr.bf16.mxu0 %v9019_v27  ;;  %5470 = vmatprep.subr.bf16.mxu1 %v9020_v4  ;;  %v9029_v4 = vld [vmem:[#allocation10_spill] sm:$0xff]  ;;  %v9038_v27 = vld [vmem:[#allocation19_spill] sm:$0xff] }
 0x708   :  { %5408 = vmatpush1.bf16.msra.mxu0 %v9021_v57  ;;  %5472 = vmatpush1.bf16.msra.mxu1 %v9022_v59  ;;  %v9030_v57 = vld [vmem:[#allocation11_spill] sm:$0xff]  ;;  %v9031_v59 = vld [vmem:[#allocation12_spill] sm:$0xff] }
 0x709   :  { %5410 = vmatprep.subr.bf16.mxu0 %v9023_v54  ;;  %5474 = vmatprep.subr.bf16.mxu1 %v9024_v18  ;;  %v9032_v54 = vld [vmem:[#allocation13_spill] sm:$0xff]  ;;  %v9033_v18 = vld [vmem:[#allocation14_spill] sm:$0xff] }
 0x70c   :  { %5412 = vmatpush1.bf16.msra.mxu0 %v9025_v46  ;;  %5476 = vmatpush1.bf16.msra.mxu1 %v9026_v14  ;;  %v9034_v46 = vld [vmem:[#allocation15_spill] sm:$0xff]  ;;  %v9035_v14 = vld [vmem:[#allocation16_spill] sm:$0xff] }
 0x70d   :  { %5478 = vmatprep.subr.bf16.mxu0 %v9027_v11  ;;  %5542 = vmatprep.subr.bf16.mxu1 %v9028_v30  ;;  %v9036_v11 = vld [vmem:[#allocation17_spill] sm:$0xff]  ;;  %v9037_v30 = vld [vmem:[#allocation18_spill] sm:$0xff] }
 0x70f   :  { %2743 = vmatmul.mubr.f32.vlgmr.msra.gmra.mrb[22].mxu0 %v7684_v36  ;;  %2814 = vmatmul.mubr.f32.vlgmr.msra.gmra.mrb[22].mxu1 %v7684_v36  ;;  %v9039_v36 = vld [vmem:[#allocation20_spill] sm:$0xff] }
 0x710   :  { %5480 = vmatpush1.bf16.msra.mxu0 %v9029_v4  ;;  %5544 = vmatpush1.bf16.msra.mxu1 %v9030_v57  ;;  %v9040_v4 = vld [vmem:[#allocation21_spill] sm:$0xff]  ;;  %v9041_v57 = vld [vmem:[#allocation22_spill] sm:$0xff] }
 0x711   :  { %5482 = vmatprep.subr.bf16.mxu0 %v9031_v59  ;;  %5546 = vmatprep.subr.bf16.mxu1 %v9032_v54  ;;  %v9042_v59 = vld [vmem:[#allocation23_spill] sm:$0xff]  ;;  %v9043_v54 = vld [vmem:[#allocation24_spill] sm:$0xff] }
 0x714   :  { %5484 = vmatpush1.bf16.msra.mxu0 %v9033_v18  ;;  %5548 = vmatpush1.bf16.msra.mxu1 %v9034_v46  ;;  %v9044_v18 = vld [vmem:[#allocation25_spill] sm:$0xff]  ;;  %v9045_v46 = vld [vmem:[#allocation26_spill] sm:$0xff] }
 0x715   :  { %5486 = vmatprep.subr.bf16.mxu0 %v9035_v14  ;;  %5550 = vmatprep.subr.bf16.mxu1 %v9036_v11  ;;  %v9046_v14 = vld [vmem:[#allocation27_spill] sm:$0xff]  ;;  %v9047_v11 = vld [vmem:[#allocation28_spill] sm:$0xff] }
 0x718   :  { %5488 = vmatpush1.bf16.msra.mxu0 %v9037_v30  ;;  %5552 = vmatpush1.bf16.msra.mxu1 %v9038_v27  ;;  %v9048_v30 = vld [vmem:[#allocation29_spill] sm:$0xff]  ;;  %v9049_v27 = vld [vmem:[#allocation30_spill] sm:$0xff] }
 0x719   :  { %5490 = vmatprep.subr.bf16.mxu0 %v9039_v36  ;;  %5554 = vmatprep.subr.bf16.mxu1 %v9040_v4  ;;  %v9050_v36 = vld [vmem:[#allocation31_spill] sm:$0xff]  ;;  %v9051_v4 = vld [vmem:[#allocation32_spill] sm:$0xff] }
 0x71c   :  { %5492 = vmatpush1.bf16.msra.mxu0 %v9041_v57  ;;  %5556 = vmatpush1.bf16.msra.mxu1 %v9042_v59  ;;  %v9052_v57 = vld [vmem:[#allocation33_spill] sm:$0xff]  ;;  %v9053_v59 = vld [vmem:[#allocation34_spill] sm:$0xff] }
 0x71d   :  { %5494 = vmatprep.subr.bf16.mxu0 %v9043_v54  ;;  %5558 = vmatprep.subr.bf16.mxu1 %v9044_v18  ;;  %v9054_v54 = vld [vmem:[#allocation35_spill] sm:$0xff]  ;;  %v9055_v18 = vld [vmem:[#allocation36_spill] sm:$0xff] }
 0x720   :  { %5496 = vmatpush1.bf16.msra.mxu0 %v9045_v46  ;;  %5560 = vmatpush1.bf16.msra.mxu1 %v9046_v14  ;;  %v9056_v46 = vld [vmem:[#allocation37_spill] sm:$0xff]  ;;  %v9057_v14 = vld [vmem:[#allocation38_spill] sm:$0xff] }
 0x721   :  { %5498 = vmatprep.subr.bf16.mxu0 %v9047_v11  ;;  %5562 = vmatprep.subr.bf16.mxu1 %v9048_v30  ;;  %v9058_v11 = vld [vmem:[#allocation39_spill] sm:$0xff]  ;;  %v9059_v30 = vld [vmem:[#allocation40_spill] sm:$0xff] }
 0x724   :  { %5500 = vmatpush1.bf16.msra.mxu0 %v9049_v27  ;;  %5564 = vmatpush1.bf16.msra.mxu1 %v9050_v36  ;;  %v9060_v27 = vld [vmem:[#allocation41_spill] sm:$0xff]  ;;  %v9061_v36 = vld [vmem:[#allocation42_spill] sm:$0xff] }
 0x725   :  { %5502 = vmatprep.subr.bf16.mxu0 %v9051_v4  ;;  %5566 = vmatprep.subr.bf16.mxu1 %v9052_v57  ;;  %v9062_v4 = vld [vmem:[#allocation43_spill] sm:$0xff]  ;;  %v9063_v57 = vld [vmem:[#allocation44_spill] sm:$0xff] }
 0x728   :  { %5504 = vmatpush1.bf16.msra.mxu0 %v9053_v59  ;;  %5568 = vmatpush1.bf16.msra.mxu1 %v9054_v54  ;;  %v9064_v59 = vld [vmem:[#allocation45_spill] sm:$0xff]  ;;  %v9065_v54 = vld [vmem:[#allocation46_spill] sm:$0xff] }
 0x729   :  { %5506 = vmatprep.subr.bf16.mxu0 %v9055_v18  ;;  %5570 = vmatprep.subr.bf16.mxu1 %v9056_v46  ;;  %v9066_v18 = vld [vmem:[#allocation47_spill] sm:$0xff]  ;;  %v9067_v46 = vld [vmem:[#allocation48_spill] sm:$0xff] }
 0x72c   :  { %5508 = vmatpush1.bf16.msra.mxu0 %v9057_v14  ;;  %5572 = vmatpush1.bf16.msra.mxu1 %v9058_v11  ;;  %v9068_v14 = vld [vmem:[#allocation49_spill] sm:$0xff]  ;;  %v9069_v11 = vld [vmem:[#allocation50_spill] sm:$0xff] }
 0x72d   :  { %5510 = vmatprep.subr.bf16.mxu0 %v9059_v30  ;;  %5574 = vmatprep.subr.bf16.mxu1 %v9060_v27  ;;  %v9070_v30 = vld [vmem:[#allocation51_spill] sm:$0xff]  ;;  %v9071_v27 = vld [vmem:[#allocation52_spill] sm:$0xff] }
 0x730   :  { %5512 = vmatpush1.bf16.msra.mxu0 %v9061_v36  ;;  %5576 = vmatpush1.bf16.msra.mxu1 %v9062_v4  ;;  %v9072_v36 = vld [vmem:[#allocation53_spill] sm:$0xff]  ;;  %v9073_v4 = vld [vmem:[#allocation54_spill] sm:$0xff] }
 0x731   :  { %5514 = vmatprep.subr.bf16.mxu0 %v9063_v57  ;;  %5578 = vmatprep.subr.bf16.mxu1 %v9064_v59  ;;  %v9074_v57 = vld [vmem:[#allocation55_spill] sm:$0xff]  ;;  %v9075_v59 = vld [vmem:[#allocation56_spill] sm:$0xff] }
 0x734   :  { %5516 = vmatpush1.bf16.msra.mxu0 %v9065_v54  ;;  %5580 = vmatpush1.bf16.msra.mxu1 %v9066_v18  ;;  %v9076_v54 = vld [vmem:[#allocation57_spill] sm:$0xff]  ;;  %v9077_v18 = vld [vmem:[#allocation58_spill] sm:$0xff] }
 0x735   :  { %5518 = vmatprep.subr.bf16.mxu0 %v9067_v46  ;;  %5582 = vmatprep.subr.bf16.mxu1 %v9068_v14  ;;  %v9078_v46 = vld [vmem:[#allocation59_spill] sm:$0xff]  ;;  %v9079_v14 = vld [vmem:[#allocation60_spill] sm:$0xff] }
 0x738   :  { %5520 = vmatpush1.bf16.msra.mxu0 %v9069_v11  ;;  %5584 = vmatpush1.bf16.msra.mxu1 %v9070_v30  ;;  %v9080_v11 = vld [vmem:[#allocation61_spill] sm:$0xff]  ;;  %v9081_v30 = vld [vmem:[#allocation62_spill] sm:$0xff] }
 0x739   :  { %5522 = vmatprep.subr.bf16.mxu0 %v9071_v27  ;;  %5586 = vmatprep.subr.bf16.mxu1 %v9072_v36  ;;  %v9082_v27 = vld [vmem:[#allocation63_spill] sm:$0xff]  ;;  %v9083_v36 = vld [vmem:[#allocation64_spill] sm:$0xff] }
 0x73c   :  { %5524 = vmatpush1.bf16.msra.mxu0 %v9073_v4  ;;  %5588 = vmatpush1.bf16.msra.mxu1 %v9074_v57  ;;  %v9084_v4 = vld [vmem:[#allocation65_spill] sm:$0xff]  ;;  %v9085_v57 = vld [vmem:[#allocation66_spill] sm:$0xff] }
 0x73d   :  { %5526 = vmatprep.subr.bf16.mxu0 %v9075_v59  ;;  %5590 = vmatprep.subr.bf16.mxu1 %v9076_v54  ;;  %v9086_v59 = vld [vmem:[#allocation67_spill] sm:$0xff]  ;;  %v9087_v54 = vld [vmem:[#allocation68_spill] sm:$0xff] }
 0x740   :  { %5528 = vmatpush1.bf16.msra.mxu0 %v9077_v18  ;;  %5592 = vmatpush1.bf16.msra.mxu1 %v9078_v46  ;;  %v9088_v18 = vld [vmem:[#allocation69_spill] sm:$0xff]  ;;  %v9089_v46 = vld [vmem:[#allocation70_spill] sm:$0xff] }
 0x741   :  { %5530 = vmatprep.subr.bf16.mxu0 %v9079_v14  ;;  %5594 = vmatprep.subr.bf16.mxu1 %v9080_v11  ;;  %v9090_v14 = vld [vmem:[#allocation71_spill] sm:$0xff]  ;;  %v9091_v11 = vld [vmem:[#allocation72_spill] sm:$0xff] }
 0x744   :  { %5532 = vmatpush1.bf16.msra.mxu0 %v9081_v30  ;;  %5596 = vmatpush1.bf16.msra.mxu1 %v9082_v27  ;;  %v9092_v30 = vld [vmem:[#allocation73_spill] sm:$0xff] }
 0x745   :  { %5534 = vmatprep.subr.bf16.mxu0 %v9083_v36  ;;  %5598 = vmatprep.subr.bf16.mxu1 %v9084_v4 }
 0x748   :  { %5536 = vmatpush1.bf16.msra.mxu0 %v9085_v57  ;;  %5600 = vmatpush1.bf16.msra.mxu1 %v9086_v59 }
 0x749   :  { %5538 = vmatprep.subr.bf16.mxu0 %v9087_v54  ;;  %5602 = vmatprep.subr.bf16.mxu1 %v9088_v18 }
 0x74c   :  { %5540 = vmatpush1.bf16.msra.mxu0 %v9089_v46  ;;  %5604 = vmatpush1.bf16.msra.mxu1 %v9090_v14 }
 0x74d   :  { %5606 = vmatprep.subr.bf16.mxu0 %v9091_v11  ;;  %5670 = vmatprep.subr.bf16.mxu1 %v9092_v30  ;;  %v2906_v30 = vrot.slane %v7678_v22, 7 }
 0x7a2   :  { %v2602_v27 = vpop.f32.mrb[20].mxu0  ;;  %v2673_v36 = vpop.f32.mrb[20].mxu1 }
 0x7a3   :  { %v2830_v37 = vrot.slane %v2673_v36, 3  ;;  %v2604_v4 = vpop.f32.mrb[21].mxu0  ;;  %v2675_v49 = vpop.f32.mrb[21].mxu1 }
 0x7a4   :  { %v2831_v57 = vrot.slane %v2675_v49, 3 }
 0x7a5   :  { %v2846_v59 = vadd.f32 %v2830_v37, %v9093_v61  ;;  %v2828_v61 = vrot.slane %v2602_v27, 3 }
 0x7a6   :  { %v2847_v54 = vadd.f32 %v2831_v57, %v9094_v48  ;;  %v2829_v57 = vrot.slane %v2604_v4, 3 }
 0x7a7   :  { %v3878_v15 = vmul.f32 -1.442695, %v2846_v59  ;;  %v2844_v59 = vadd.f32 %v2828_v61, %v7013_v2 }
 0x7a8   :  { %v3879_v18 = vmul.f32 -1.442695, %v2847_v54 }
 0x7a9   :  { %6213 = vpow2.f32 %v3878_v15  ;;  %v2845_v15 = vadd.f32 %v2829_v57, %v7040_v42 }
 0x7aa   :  { %6215 = vpow2.f32 %v3879_v18 }
 0x7ab   :  { %v3877_v8 = vmul.f32 -1.442695, %v2845_v15 }
 0x7b3   :  { %v6214_v46 = vpop.eup %6213 }
 0x7b4   :  { %v2878_v14 = vadd.f32 1.0, %v6214_v46  ;;  %v6216_v28 = vpop.eup %6215 }
 0x7b5   :  { %v2879_v11 = vadd.f32 1.0, %v6216_v28 }
 0x7b6   :  { %6217 = vrcp.f32 %v2878_v14 }
 0x7b7   :  { %6219 = vrcp.f32 %v2879_v11  ;;  %v3876_v11 = vmul.f32 -1.442695, %v2844_v59 }
 0x7b9   :  { %6221 = vpow2.f32 %v3876_v11 }
 0x7c0   :  { %v6218_v36 = vpop.eup %6217 }
 0x7c1   :  { %v2910_v49 = vmul.f32 %v6218_v36, %v2906_v30  ;;  %v6220_v52 = vpop.eup %6219 }
 0x7c2   :  { %v2911_v37 = vmul.f32 %v6220_v52, %v2907_v55 }
 0x7c3   :  { %v6222_v36 = vpop.eup %6221 }
 0x7e2   :  { %v2744_v54 = vpop.f32.mrb[22].mxu0  ;;  %v2815_v18 = vpop.f32.mrb[22].mxu1 }
 0x7e3   :  { %v2832_v46 = vrot.slane %v2744_v54, 3  ;;  %v2746_v14 = vpop.f32.mrb[23].mxu0  ;;  %v2817_v28 = vpop.f32.mrb[23].mxu1  ;;  %v2834_v55 = vrot.slane %v2815_v18, 3 }
 0x7e4   :  { %v2833_v48 = vrot.slane %v2746_v14, 3  ;;  %v2835_v61 = vrot.slane %v2817_v28, 3 }
 0x7e5   :  { %v2848_v22 = vadd.f32 %v2832_v46, %v7060_v21  ;;  %v2850_v4 = vadd.f32 %v2834_v55, %v7072_v41 }
 0x7e6   :  { %v2849_v51 = vadd.f32 %v2833_v48, %v7062_v5  ;;  %v2851_v27 = vadd.f32 %v2835_v61, %v7074_v35  ;;  %v2876_v48 = vadd.f32 1.0, %v6222_v36 }
 0x7e7   :  { %v3880_v30 = vmul.f32 -1.442695, %v2848_v22  ;;  %v3882_v59 = vmul.f32 -1.442695, %v2850_v4 }
 0x7e8   :  { %v3881_v52 = vmul.f32 -1.442695, %v2849_v51  ;;  %v3883_v14 = vmul.f32 -1.442695, %v2851_v27 }
 0x7e9   :  { %6223 = vpow2.f32 %v3880_v30 }
 0x7ea   :  { %6225 = vpow2.f32 %v3877_v8 }
 0x7eb   :  { %6227 = vpow2.f32 %v3881_v52 }
 0x7f3   :  { %v6224_v57 = vpop.eup %6223 }
 0x7f4   :  { %v6226_v54 = vpop.eup %6225  ;;  %v2880_v46 = vadd.f32 1.0, %v6224_v57 }
 0x7f5   :  { %v6228_v15 = vpop.eup %6227  ;;  %v2877_v22 = vadd.f32 1.0, %v6226_v54 }
 0x7f6   :  { %6229 = vrcp.f32 %v2880_v46  ;;  %v2881_v11 = vadd.f32 1.0, %v6228_v15 }
 0x7f7   :  { %6231 = vpow2.f32 %v3882_v59 }
 0x7f8   :  { %6233 = vrcp.f32 %v2881_v11 }
 0x7f9   :  { %6235 = vpow2.f32 %v3883_v14 }
 0x7fa   :  { %6237 = vrcp.f32 %v2876_v48 }
 0x7fb   :  { %6239 = vrcp.f32 %v2877_v22 }
 0x800   :  { %v6230_v8 = vpop.eup %6229 }
 0x801   :  { %v6232_v18 = vpop.eup %6231  ;;  %v2900_v28 = vmul.f32 2.0, %v6230_v8 }
 0x802   :  { %v6234_v51 = vpop.eup %6233  ;;  %v2882_v4 = vadd.f32 1.0, %v6232_v18 }
 0x803   :  { %v6236_v30 = vpop.eup %6235  ;;  %v3884_v52 = vadd.f32 -1.0, %v2900_v28  ;;  %v2901_v55 = vmul.f32 2.0, %v6234_v51 }
 0x804   :  { %v6238_v61 = vpop.eup %6237  ;;  %v2883_v46 = vadd.f32 1.0, %v6236_v30  ;;  %6241 = vrcp.f32 %v2882_v4  ;;  %v9097_v30 = vld [vmem:[#allocation112_spill] sm:$0xff] }
 0x805   :  { %v2912_v57 = vmul.f32 %v6238_v61, %v3884_v52  ;;  %v3885_v27 = vadd.f32 -1.0, %v2901_v55  ;;  %v6240_v36 = vpop.eup %6239  ;;  %v9098_v52 = vld [vmem:[#allocation113_spill] sm:$0xff]  ;;  %v9099_v55 = vld [vmem:[#allocation114_spill] sm:$0xff]  ;;  %v9100_v61 = vld [vmem:[#allocation115_spill] sm:$0xff] }
 0x806   :  { %v9101_v4 = vld [vmem:[#allocation116_spill] sm:$0xff] }
 0x807   :  { %v7828_v15 = vadd.f32 %v2912_v57, %v2910_v49  ;;  %v2913_v59 = vmul.f32 %v6240_v36, %v3885_v27  ;;  %v9095_v49 = vld [vmem:[#allocation110_spill] sm:$0xff]  ;;  %v9102_v57 = vld [vmem:[#allocation117_spill] sm:$0xff]  ;;  %v9104_v36 = vld [vmem:[#allocation119_spill] sm:$0xff] }
 0x808   :  { %v9103_v27 = vld [vmem:[#allocation118_spill] sm:$0xff] }
 0x809   :  { %6243 = vtanh.f32 %v7828_v15  ;;  %v7831_v54 = vadd.f32 %v2913_v59, %v2911_v37  ;;  %v9096_v37 = vld [vmem:[#allocation111_spill] sm:$0xff]  ;;  %v9106_v59 = vld [vmem:[#allocation121_spill] sm:$0xff] }
 0x80a   :  { %6245 = vrcp.f32 %v2883_v46  ;;  %v9105_v46 = vld [vmem:[#allocation120_spill] sm:$0xff] }
 0x80b   :  { %6247 = vtanh.f32 %v7831_v54 }
 0x80e   :  { %v6242_v14 = vpop.eup %6241 }
 0x813   :  { %v6244_v48 = vpop.eup %6243 }
 0x814   :  { %v6246_v11 = vpop.eup %6245  ;;  %v2918_v22 = vmul.f32 %v6244_v48, %v6242_v14  ;;  %v9107_v14 = vld [vmem:[#allocation122_spill] sm:$0xff]  ;;  %v9108_v48 = vld [vmem:[#allocation123_spill] sm:$0xff] }
 0x815   :  { %v6248_v8 = vpop.eup %6247 }
 0x816   :  { %v2919_v18 = vmul.f32 %v6248_v8, %v6246_v11  ;;  %v7834_v51 = vrot.slane %v2918_v22, 5  ;;  %v9109_v11 = vld [vmem:[#allocation124_spill] sm:$0xff]  ;;  %v9110_v22 = vld [vmem:[#allocation125_spill] sm:$0xff]  ;;  %v9111_v8 = vld [vmem:[#allocation126_spill] sm:$0xff] }
 0x818   :  { %v2923_v28 = vrot.slane %v2919_v18, 5  ;;  %v9112_v18 = vld [vmem:[#allocation127_spill] sm:$0xff] }
 0x81a   :  { %2990 = vmatprep.mubr.f32.mxu0 %v2923_v28  ;;  %3061 = vmatprep.mubr.f32.mxu1 %v2923_v28 }
 0x81b   :  { %2991 = vmatmul.mubr.f32.vlgmr.msra.gmra.mrb[24].mxu0 %v7834_v51  ;;  %3062 = vmatmul.mubr.f32.vlgmr.msra.gmra.mrb[24].mxu1 %v7834_v51 }
 0x81c   :  { %5608 = vmatpush1.bf16.msra.mxu0 %v8611_v24  ;;  %5672 = vmatpush1.bf16.msra.mxu1 %v8612_v58 }
 0x81d   :  { %3132 = vmatprep.mubr.f32.mxu0 %v2923_v28  ;;  %3203 = vmatprep.mubr.f32.mxu1 %v2923_v28  ;;  %v9113_v28 = vld [vmem:[#allocation128_spill] sm:$0xff] }
 0x81e   :  { %5610 = vmatprep.subr.bf16.mxu0 %v8613_v56  ;;  %5674 = vmatprep.subr.bf16.mxu1 %v8614_v12 }
 0x820   :  { %5612 = vmatpush1.bf16.msra.mxu0 %v8615_v29  ;;  %5676 = vmatpush1.bf16.msra.mxu1 %v8616_v47 }
 0x821   :  { %5614 = vmatprep.subr.bf16.mxu0 %v8617_v38  ;;  %5678 = vmatprep.subr.bf16.mxu1 %v8618_v20 }
 0x824   :  { %5616 = vmatpush1.bf16.msra.mxu0 %v8619_v32  ;;  %5680 = vmatpush1.bf16.msra.mxu1 %v8620_v6 }
 0x825   :  { %5618 = vmatprep.subr.bf16.mxu0 %v8621_v62  ;;  %5682 = vmatprep.subr.bf16.mxu1 %v8622_v39 }
 0x828   :  { %5620 = vmatpush1.bf16.msra.mxu0 %v8623_v45  ;;  %5684 = vmatpush1.bf16.msra.mxu1 %v8624_v63 }
 0x829   :  { %5622 = vmatprep.subr.bf16.mxu0 %v8625_v31  ;;  %5686 = vmatprep.subr.bf16.mxu1 %v8626_v19 }
 0x82c   :  { %5624 = vmatpush1.bf16.msra.mxu0 %v8627_v40  ;;  %5688 = vmatpush1.bf16.msra.mxu1 %v8628_v43 }
 0x82d   :  { %5626 = vmatprep.subr.bf16.mxu0 %v8629_v33  ;;  %5690 = vmatprep.subr.bf16.mxu1 %v8630_v3 }
 0x830   :  { %5628 = vmatpush1.bf16.msra.mxu0 %v8631_v53  ;;  %5692 = vmatpush1.bf16.msra.mxu1 %v8632_v44 }
 0x831   :  { %5630 = vmatprep.subr.bf16.mxu0 %v8633_v26  ;;  %5694 = vmatprep.subr.bf16.mxu1 %v8719_v7 }
 0x834   :  { %5632 = vmatpush1.bf16.msra.mxu0 %v8720_v10  ;;  %5696 = vmatpush1.bf16.msra.mxu1 %v8721_v60 }
 0x835   :  { %5634 = vmatprep.subr.bf16.mxu0 %v8722_v1  ;;  %5698 = vmatprep.subr.bf16.mxu1 %v8723_v9 }
 0x838   :  { %5636 = vmatpush1.bf16.msra.mxu0 %v8724_v0  ;;  %5700 = vmatpush1.bf16.msra.mxu1 %v8725_v50 }
 0x839   :  { %5638 = vmatprep.subr.bf16.mxu0 %v8726_v13  ;;  %5702 = vmatprep.subr.bf16.mxu1 %v8727_v23 }
 0x83c   :  { %5640 = vmatpush1.bf16.msra.mxu0 %v8728_v16  ;;  %5704 = vmatpush1.bf16.msra.mxu1 %v8729_v25 }
 0x83d   :  { %5642 = vmatprep.subr.bf16.mxu0 %v8730_v17  ;;  %5706 = vmatprep.subr.bf16.mxu1 %v8731_v34 }
 0x840   :  { %5644 = vmatpush1.bf16.msra.mxu0 %v9095_v49  ;;  %5708 = vmatpush1.bf16.msra.mxu1 %v9096_v37 }
 0x841   :  { %5646 = vmatprep.subr.bf16.mxu0 %v9097_v30  ;;  %5710 = vmatprep.subr.bf16.mxu1 %v9098_v52  ;;  %v3297_v30 = vrot.slane %v7831_v54, 7 }
 0x844   :  { %5648 = vmatpush1.bf16.msra.mxu0 %v9099_v55  ;;  %5712 = vmatpush1.bf16.msra.mxu1 %v9100_v61  ;;  %v9188_v61 = vld [vmem:[#allocation137_spill] sm:$0xff] }
 0x845   :  { %5650 = vmatprep.subr.bf16.mxu0 %v9101_v4  ;;  %5714 = vmatprep.subr.bf16.mxu1 %v9102_v57  ;;  %v9187_v4 = vld [vmem:[#allocation136_spill] sm:$0xff] }
 0x848   :  { %5652 = vmatpush1.bf16.msra.mxu0 %v9103_v27  ;;  %5716 = vmatpush1.bf16.msra.mxu1 %v9104_v36  ;;  %v9114_v27 = vld [vmem:[#allocation129_spill] sm:$0xff]  ;;  %v9115_v36 = vld [vmem:[#allocation130_spill] sm:$0xff] }
 0x849   :  { %5654 = vmatprep.subr.bf16.mxu0 %v9105_v46  ;;  %5718 = vmatprep.subr.bf16.mxu1 %v9106_v59  ;;  %v9116_v46 = vld [vmem:[#allocation131_spill] sm:$0xff]  ;;  %v9117_v59 = vld [vmem:[#allocation132_spill] sm:$0xff] }
 0x84c   :  { %5656 = vmatpush1.bf16.msra.mxu0 %v9107_v14  ;;  %5720 = vmatpush1.bf16.msra.mxu1 %v9108_v48  ;;  %v9118_v14 = vld [vmem:[#allocation133_spill] sm:$0xff]  ;;  %v9119_v48 = vld [vmem:[#allocation134_spill] sm:$0xff] }
 0x84d   :  { %5658 = vmatprep.subr.bf16.mxu0 %v9109_v11  ;;  %5722 = vmatprep.subr.bf16.mxu1 %v9110_v22  ;;  %v9120_v11 = vld [vmem:[#allocation135_spill] sm:$0xff]  ;;  %v9121_v22 = vld [vmem:[#allocation8_spill] sm:$0xff] }
 0x850   :  { %5660 = vmatpush1.bf16.msra.mxu0 %v9111_v8  ;;  %5724 = vmatpush1.bf16.msra.mxu1 %v9112_v18  ;;  %v9122_v8 = vld [vmem:[#allocation9_spill] sm:$0xff] }
 0x851   :  { %5662 = vmatprep.subr.bf16.mxu0 %v9113_v28  ;;  %5726 = vmatprep.subr.bf16.mxu1 %v9114_v27  ;;  %v9123_v27 = vld [vmem:[#allocation10_spill] sm:$0xff]  ;;  %v9132_v28 = vld [vmem:[#allocation19_spill] sm:$0xff] }
 0x854   :  { %5664 = vmatpush1.bf16.msra.mxu0 %v9115_v36  ;;  %5728 = vmatpush1.bf16.msra.mxu1 %v9116_v46  ;;  %v9124_v36 = vld [vmem:[#allocation11_spill] sm:$0xff]  ;;  %v9125_v46 = vld [vmem:[#allocation12_spill] sm:$0xff] }
 0x855   :  { %5666 = vmatprep.subr.bf16.mxu0 %v9117_v59  ;;  %5730 = vmatprep.subr.bf16.mxu1 %v9118_v14  ;;  %v9126_v59 = vld [vmem:[#allocation13_spill] sm:$0xff]  ;;  %v9127_v14 = vld [vmem:[#allocation14_spill] sm:$0xff] }
 0x858   :  { %5668 = vmatpush1.bf16.msra.mxu0 %v9119_v48  ;;  %5732 = vmatpush1.bf16.msra.mxu1 %v9120_v11  ;;  %v9128_v48 = vld [vmem:[#allocation15_spill] sm:$0xff]  ;;  %v9129_v11 = vld [vmem:[#allocation16_spill] sm:$0xff] }
 0x859   :  { %5734 = vmatprep.subr.bf16.mxu0 %v9121_v22  ;;  %5798 = vmatprep.subr.bf16.mxu1 %v9122_v8  ;;  %v9130_v22 = vld [vmem:[#allocation17_spill] sm:$0xff]  ;;  %v9131_v8 = vld [vmem:[#allocation18_spill] sm:$0xff] }
 0x85b   :  { %3133 = vmatmul.mubr.f32.vlgmr.msra.gmra.mrb[26].mxu0 %v7834_v51  ;;  %3204 = vmatmul.mubr.f32.vlgmr.msra.gmra.mrb[26].mxu1 %v7834_v51  ;;  %v9133_v51 = vld [vmem:[#allocation20_spill] sm:$0xff] }
 0x85c   :  { %5736 = vmatpush1.bf16.msra.mxu0 %v9123_v27  ;;  %5800 = vmatpush1.bf16.msra.mxu1 %v9124_v36  ;;  %v9134_v27 = vld [vmem:[#allocation21_spill] sm:$0xff]  ;;  %v9135_v36 = vld [vmem:[#allocation22_spill] sm:$0xff] }
 0x85d   :  { %5738 = vmatprep.subr.bf16.mxu0 %v9125_v46  ;;  %5802 = vmatprep.subr.bf16.mxu1 %v9126_v59  ;;  %v9136_v46 = vld [vmem:[#allocation23_spill] sm:$0xff]  ;;  %v9137_v59 = vld [vmem:[#allocation24_spill] sm:$0xff] }
 0x860   :  { %5740 = vmatpush1.bf16.msra.mxu0 %v9127_v14  ;;  %5804 = vmatpush1.bf16.msra.mxu1 %v9128_v48  ;;  %v9138_v14 = vld [vmem:[#allocation25_spill] sm:$0xff]  ;;  %v9139_v48 = vld [vmem:[#allocation26_spill] sm:$0xff] }
 0x861   :  { %5742 = vmatprep.subr.bf16.mxu0 %v9129_v11  ;;  %5806 = vmatprep.subr.bf16.mxu1 %v9130_v22  ;;  %v9140_v11 = vld [vmem:[#allocation27_spill] sm:$0xff]  ;;  %v9141_v22 = vld [vmem:[#allocation28_spill] sm:$0xff] }
 0x864   :  { %5744 = vmatpush1.bf16.msra.mxu0 %v9131_v8  ;;  %5808 = vmatpush1.bf16.msra.mxu1 %v9132_v28  ;;  %v9142_v8 = vld [vmem:[#allocation29_spill] sm:$0xff]  ;;  %v9143_v28 = vld [vmem:[#allocation30_spill] sm:$0xff] }
 0x865   :  { %5746 = vmatprep.subr.bf16.mxu0 %v9133_v51  ;;  %5810 = vmatprep.subr.bf16.mxu1 %v9134_v27  ;;  %v9144_v51 = vld [vmem:[#allocation31_spill] sm:$0xff]  ;;  %v9145_v27 = vld [vmem:[#allocation32_spill] sm:$0xff] }
 0x868   :  { %5748 = vmatpush1.bf16.msra.mxu0 %v9135_v36  ;;  %5812 = vmatpush1.bf16.msra.mxu1 %v9136_v46  ;;  %v9146_v36 = vld [vmem:[#allocation33_spill] sm:$0xff]  ;;  %v9147_v46 = vld [vmem:[#allocation34_spill] sm:$0xff] }
 0x869   :  { %5750 = vmatprep.subr.bf16.mxu0 %v9137_v59  ;;  %5814 = vmatprep.subr.bf16.mxu1 %v9138_v14  ;;  %v9148_v59 = vld [vmem:[#allocation35_spill] sm:$0xff]  ;;  %v9149_v14 = vld [vmem:[#allocation36_spill] sm:$0xff] }
 0x86c   :  { %5752 = vmatpush1.bf16.msra.mxu0 %v9139_v48  ;;  %5816 = vmatpush1.bf16.msra.mxu1 %v9140_v11  ;;  %v9150_v48 = vld [vmem:[#allocation37_spill] sm:$0xff]  ;;  %v9151_v11 = vld [vmem:[#allocation38_spill] sm:$0xff] }
 0x86d   :  { %5754 = vmatprep.subr.bf16.mxu0 %v9141_v22  ;;  %5818 = vmatprep.subr.bf16.mxu1 %v9142_v8  ;;  %v9152_v22 = vld [vmem:[#allocation39_spill] sm:$0xff]  ;;  %v9153_v8 = vld [vmem:[#allocation40_spill] sm:$0xff] }
 0x870   :  { %5756 = vmatpush1.bf16.msra.mxu0 %v9143_v28  ;;  %5820 = vmatpush1.bf16.msra.mxu1 %v9144_v51  ;;  %v9154_v28 = vld [vmem:[#allocation41_spill] sm:$0xff]  ;;  %v9155_v51 = vld [vmem:[#allocation42_spill] sm:$0xff] }
 0x871   :  { %5758 = vmatprep.subr.bf16.mxu0 %v9145_v27  ;;  %5822 = vmatprep.subr.bf16.mxu1 %v9146_v36  ;;  %v9156_v27 = vld [vmem:[#allocation43_spill] sm:$0xff]  ;;  %v9157_v36 = vld [vmem:[#allocation44_spill] sm:$0xff] }
 0x874   :  { %5760 = vmatpush1.bf16.msra.mxu0 %v9147_v46  ;;  %5824 = vmatpush1.bf16.msra.mxu1 %v9148_v59  ;;  %v9158_v46 = vld [vmem:[#allocation45_spill] sm:$0xff]  ;;  %v9159_v59 = vld [vmem:[#allocation46_spill] sm:$0xff] }
 0x875   :  { %5762 = vmatprep.subr.bf16.mxu0 %v9149_v14  ;;  %5826 = vmatprep.subr.bf16.mxu1 %v9150_v48  ;;  %v9160_v14 = vld [vmem:[#allocation47_spill] sm:$0xff]  ;;  %v9161_v48 = vld [vmem:[#allocation48_spill] sm:$0xff] }
 0x878   :  { %5764 = vmatpush1.bf16.msra.mxu0 %v9151_v11  ;;  %5828 = vmatpush1.bf16.msra.mxu1 %v9152_v22  ;;  %v9162_v11 = vld [vmem:[#allocation49_spill] sm:$0xff]  ;;  %v9163_v22 = vld [vmem:[#allocation50_spill] sm:$0xff] }
 0x879   :  { %5766 = vmatprep.subr.bf16.mxu0 %v9153_v8  ;;  %5830 = vmatprep.subr.bf16.mxu1 %v9154_v28  ;;  %v9164_v8 = vld [vmem:[#allocation51_spill] sm:$0xff]  ;;  %v9165_v28 = vld [vmem:[#allocation52_spill] sm:$0xff] }
 0x87c   :  { %5768 = vmatpush1.bf16.msra.mxu0 %v9155_v51  ;;  %5832 = vmatpush1.bf16.msra.mxu1 %v9156_v27  ;;  %v9166_v51 = vld [vmem:[#allocation53_spill] sm:$0xff]  ;;  %v9167_v27 = vld [vmem:[#allocation54_spill] sm:$0xff] }
 0x87d   :  { %5770 = vmatprep.subr.bf16.mxu0 %v9157_v36  ;;  %5834 = vmatprep.subr.bf16.mxu1 %v9158_v46  ;;  %v9168_v36 = vld [vmem:[#allocation55_spill] sm:$0xff]  ;;  %v9169_v46 = vld [vmem:[#allocation56_spill] sm:$0xff] }
 0x880   :  { %5772 = vmatpush1.bf16.msra.mxu0 %v9159_v59  ;;  %5836 = vmatpush1.bf16.msra.mxu1 %v9160_v14  ;;  %v9170_v59 = vld [vmem:[#allocation57_spill] sm:$0xff]  ;;  %v9171_v14 = vld [vmem:[#allocation58_spill] sm:$0xff] }
 0x881   :  { %5774 = vmatprep.subr.bf16.mxu0 %v9161_v48  ;;  %5838 = vmatprep.subr.bf16.mxu1 %v9162_v11  ;;  %v9172_v48 = vld [vmem:[#allocation59_spill] sm:$0xff]  ;;  %v9173_v11 = vld [vmem:[#allocation60_spill] sm:$0xff] }
 0x884   :  { %5776 = vmatpush1.bf16.msra.mxu0 %v9163_v22  ;;  %5840 = vmatpush1.bf16.msra.mxu1 %v9164_v8  ;;  %v9174_v22 = vld [vmem:[#allocation61_spill] sm:$0xff]  ;;  %v9175_v8 = vld [vmem:[#allocation62_spill] sm:$0xff] }
 0x885   :  { %5778 = vmatprep.subr.bf16.mxu0 %v9165_v28  ;;  %5842 = vmatprep.subr.bf16.mxu1 %v9166_v51  ;;  %v9176_v28 = vld [vmem:[#allocation63_spill] sm:$0xff]  ;;  %v9177_v51 = vld [vmem:[#allocation64_spill] sm:$0xff] }
 0x888   :  { %5780 = vmatpush1.bf16.msra.mxu0 %v9167_v27  ;;  %5844 = vmatpush1.bf16.msra.mxu1 %v9168_v36  ;;  %v9178_v27 = vld [vmem:[#allocation65_spill] sm:$0xff]  ;;  %v9179_v36 = vld [vmem:[#allocation66_spill] sm:$0xff] }
 0x889   :  { %5782 = vmatprep.subr.bf16.mxu0 %v9169_v46  ;;  %5846 = vmatprep.subr.bf16.mxu1 %v9170_v59  ;;  %v9180_v46 = vld [vmem:[#allocation67_spill] sm:$0xff]  ;;  %v9181_v59 = vld [vmem:[#allocation68_spill] sm:$0xff] }
 0x88c   :  { %5784 = vmatpush1.bf16.msra.mxu0 %v9171_v14  ;;  %5848 = vmatpush1.bf16.msra.mxu1 %v9172_v48  ;;  %v9182_v14 = vld [vmem:[#allocation69_spill] sm:$0xff]  ;;  %v9183_v48 = vld [vmem:[#allocation70_spill] sm:$0xff] }
 0x88d   :  { %5786 = vmatprep.subr.bf16.mxu0 %v9173_v11  ;;  %5850 = vmatprep.subr.bf16.mxu1 %v9174_v22  ;;  %v9184_v11 = vld [vmem:[#allocation71_spill] sm:$0xff]  ;;  %v9185_v22 = vld [vmem:[#allocation72_spill] sm:$0xff] }
 0x890   :  { %5788 = vmatpush1.bf16.msra.mxu0 %v9175_v8  ;;  %5852 = vmatpush1.bf16.msra.mxu1 %v9176_v28  ;;  %v9186_v8 = vld [vmem:[#allocation73_spill] sm:$0xff] }
 0x891   :  { %5790 = vmatprep.subr.bf16.mxu0 %v9177_v51  ;;  %5854 = vmatprep.subr.bf16.mxu1 %v9178_v27 }
 0x894   :  { %5792 = vmatpush1.bf16.msra.mxu0 %v9179_v36  ;;  %5856 = vmatpush1.bf16.msra.mxu1 %v9180_v46 }
 0x895   :  { %5794 = vmatprep.subr.bf16.mxu0 %v9181_v59  ;;  %5858 = vmatprep.subr.bf16.mxu1 %v9182_v14 }
 0x898   :  { %5796 = vmatpush1.bf16.msra.mxu0 %v9183_v48  ;;  %5860 = vmatpush1.bf16.msra.mxu1 %v9184_v11 }
 0x899   :  { %5862 = vmatprep.subr.bf16.mxu0 %v9185_v22  ;;  %5926 = vmatprep.subr.bf16.mxu1 %v9186_v8  ;;  %v3296_v8 = vrot.slane %v7828_v15, 7 }
 0x8ee   :  { %v2992_v28 = vpop.f32.mrb[24].mxu0  ;;  %v3063_v51 = vpop.f32.mrb[24].mxu1 }
 0x8ef   :  { %v3220_v18 = vrot.slane %v3063_v51, 2  ;;  %v2994_v27 = vpop.f32.mrb[25].mxu0  ;;  %v3065_v57 = vpop.f32.mrb[25].mxu1 }
 0x8f0   :  { %v3221_v36 = vrot.slane %v3065_v57, 2 }
 0x8f1   :  { %v3236_v46 = vadd.f32 %v3220_v18, %v9187_v4  ;;  %v3218_v4 = vrot.slane %v2992_v28, 2 }
 0x8f2   :  { %v3237_v59 = vadd.f32 %v3221_v36, %v9188_v61  ;;  %v3219_v36 = vrot.slane %v2994_v27, 2 }
 0x8f3   :  { %v3888_v55 = vmul.f32 -1.442695, %v3236_v46  ;;  %v3234_v46 = vadd.f32 %v3218_v4, %v7013_v2 }
 0x8f4   :  { %v3889_v14 = vmul.f32 -1.442695, %v3237_v59 }
 0x8f5   :  { %6249 = vpow2.f32 %v3888_v55  ;;  %v3235_v55 = vadd.f32 %v3219_v36, %v7040_v42 }
 0x8f6   :  { %6251 = vpow2.f32 %v3889_v14 }
 0x8f7   :  { %v3887_v49 = vmul.f32 -1.442695, %v3235_v55 }
 0x8ff   :  { %v6250_v48 = vpop.eup %6249 }
 0x900   :  { %v3268_v11 = vadd.f32 1.0, %v6250_v48  ;;  %v6252_v52 = vpop.eup %6251 }
 0x901   :  { %v3269_v22 = vadd.f32 1.0, %v6252_v52 }
 0x902   :  { %6253 = vrcp.f32 %v3268_v11 }
 0x903   :  { %6255 = vrcp.f32 %v3269_v22  ;;  %v3886_v22 = vmul.f32 -1.442695, %v3234_v46 }
 0x905   :  { %6257 = vpow2.f32 %v3886_v22 }
 0x90c   :  { %v6254_v51 = vpop.eup %6253 }
 0x90d   :  { %v3300_v57 = vmul.f32 %v6254_v51, %v3296_v8  ;;  %v6256_v37 = vpop.eup %6255 }
 0x90e   :  { %v3301_v18 = vmul.f32 %v6256_v37, %v3297_v30 }
 0x90f   :  { %v6258_v51 = vpop.eup %6257 }
 0x92e   :  { %v3134_v59 = vpop.f32.mrb[26].mxu0  ;;  %v3205_v14 = vpop.f32.mrb[26].mxu1 }
 0x92f   :  { %v3222_v48 = vrot.slane %v3134_v59, 2  ;;  %v3136_v11 = vpop.f32.mrb[27].mxu0  ;;  %v3207_v52 = vpop.f32.mrb[27].mxu1  ;;  %v3224_v30 = vrot.slane %v3205_v14, 2 }
 0x930   :  { %v3223_v61 = vrot.slane %v3136_v11, 2  ;;  %v3225_v4 = vrot.slane %v3207_v52, 2 }
 0x931   :  { %v3238_v15 = vadd.f32 %v3222_v48, %v7060_v21  ;;  %v3240_v28 = vadd.f32 %v3224_v30, %v7072_v41 }
 0x932   :  { %v3239_v54 = vadd.f32 %v3223_v61, %v7062_v5  ;;  %v3241_v27 = vadd.f32 %v3225_v4, %v7074_v35  ;;  %v3266_v61 = vadd.f32 1.0, %v6258_v51 }
 0x933   :  { %v3890_v8 = vmul.f32 -1.442695, %v3238_v15  ;;  %v3892_v46 = vmul.f32 -1.442695, %v3240_v28 }
 0x934   :  { %v3891_v37 = vmul.f32 -1.442695, %v3239_v54  ;;  %v3893_v11 = vmul.f32 -1.442695, %v3241_v27 }
 0x935   :  { %6259 = vpow2.f32 %v3890_v8 }
 0x936   :  { %6261 = vpow2.f32 %v3887_v49 }
 0x937   :  { %6263 = vpow2.f32 %v3891_v37 }
 0x93f   :  { %v6260_v36 = vpop.eup %6259 }
 0x940   :  { %v6262_v59 = vpop.eup %6261  ;;  %v3270_v48 = vadd.f32 1.0, %v6260_v36 }
 0x941   :  { %v6264_v55 = vpop.eup %6263  ;;  %v3267_v15 = vadd.f32 1.0, %v6262_v59 }
 0x942   :  { %6265 = vrcp.f32 %v3270_v48  ;;  %v3271_v22 = vadd.f32 1.0, %v6264_v55 }
 0x943   :  { %6267 = vpow2.f32 %v3892_v46 }
 0x944   :  { %6269 = vrcp.f32 %v3271_v22 }
 0x945   :  { %6271 = vpow2.f32 %v3893_v11 }
 0x946   :  { %6273 = vrcp.f32 %v3266_v61 }
 0x947   :  { %6275 = vrcp.f32 %v3267_v15 }
 0x94c   :  { %v6266_v49 = vpop.eup %6265 }
 0x94d   :  { %v6268_v14 = vpop.eup %6267  ;;  %v3290_v52 = vmul.f32 2.0, %v6266_v49 }
 0x94e   :  { %v6270_v54 = vpop.eup %6269  ;;  %v3272_v28 = vadd.f32 1.0, %v6268_v14 }
 0x94f   :  { %v6272_v8 = vpop.eup %6271  ;;  %v3894_v37 = vadd.f32 -1.0, %v3290_v52  ;;  %v3291_v30 = vmul.f32 2.0, %v6270_v54 }
 0x950   :  { %v6274_v4 = vpop.eup %6273  ;;  %v3273_v48 = vadd.f32 1.0, %v6272_v8  ;;  %6277 = vrcp.f32 %v3272_v28  ;;  %v3720_v8 = vld [vmem:[%s8177_s4 + $0xa0] sm:$0xff]  ;;  %v3705_v28 = vld [vmem:[%s8177_s4 + $0x28] sm:$0xff] }
 0x951   :  { %v3302_v36 = vmul.f32 %v6274_v4, %v3894_v37  ;;  %v3895_v27 = vadd.f32 -1.0, %v3291_v30  ;;  %v6276_v51 = vpop.eup %6275  ;;  %v3721_v37 = vld [vmem:[%s8177_s4 + $0xa8] sm:$0xff]  ;;  %v3704_v4 = vld [vmem:[%s8177_s4 + $0x20] sm:$0xff] }
 0x952   :  { %v5997_v30 = vpack.c.bf16 %v3721_v37, %v3720_v8 }
 0x953   :  { %v7978_v55 = vadd.f32 %v3302_v36, %v3300_v57  ;;  %v3303_v46 = vmul.f32 %v6276_v51, %v3895_v27  ;;  %v3703_v57 = vld [vmem:[%s8177_s4 + $0x18] sm:$0xff]  ;;  %v5999_v36 = vpack.c.bf16 %v3705_v28, %v3704_v4  ;;  %v3722_v27 = vld [vmem:[%s8177_s4 + $0xb0] sm:$0xff] }
 0x954   :  { %v3723_v51 = vld [vmem:[%s8177_s4 + $0xb8] sm:$0xff] }
 0x955   :  { %6279 = vtanh.f32 %v7978_v55  ;;  %v7981_v59 = vadd.f32 %v3303_v46, %v3301_v18  ;;  %v3706_v46 = vld [vmem:[%s8177_s4 + $0x30] sm:$0xff] }
 0x956   :  { %6281 = vrcp.f32 %v3273_v48  ;;  %v6001_v48 = vpack.c.bf16 %v3723_v51, %v3722_v27 }
 0x957   :  { %6283 = vtanh.f32 %v7981_v59 }
 0x95a   :  { %v6278_v11 = vpop.eup %6277 }
 0x95f   :  { %v6280_v61 = vpop.eup %6279 }
 0x960   :  { %v6282_v22 = vpop.eup %6281  ;;  %v3308_v15 = vmul.f32 %v6280_v61, %v6278_v11  ;;  %v3707_v11 = vld [vmem:[%s8177_s4 + $0x38] sm:$0xff] }
 0x961   :  { %v6284_v49 = vpop.eup %6283  ;;  %v6003_v61 = vpack.c.bf16 %v3707_v11, %v3706_v46 }
 0x962   :  { %v3309_v14 = vmul.f32 %v6284_v49, %v6282_v22  ;;  %v7984_v54 = vrot.slane %v3308_v15, 6  ;;  %v3724_v22 = vld [vmem:[%s8177_s4 + $0xc0] sm:$0xff]  ;;  %v3725_v15 = vld [vmem:[%s8177_s4 + $0xc8] sm:$0xff] }
 0x963   :  { %v6005_v49 = vpack.c.bf16 %v3725_v15, %v3724_v22 }
 0x964   :  { %v3313_v52 = vrot.slane %v3309_v14, 6  ;;  %v3708_v14 = vld [vmem:[%s8177_s4 + $0x40] sm:$0xff] }
 0x966   :  { %3380 = vmatprep.mubr.f32.mxu0 %v3313_v52  ;;  %3451 = vmatprep.mubr.f32.mxu1 %v3313_v52 }
 0x967   :  { %3381 = vmatmul.mubr.f32.vlgmr.msra.gmra.mrb[28].mxu0 %v7984_v54  ;;  %3452 = vmatmul.mubr.f32.vlgmr.msra.gmra.mrb[28].mxu1 %v7984_v54 }
 0x968   :  { %5864 = vmatpush1.bf16.msra.mxu0 %v8611_v24  ;;  %5928 = vmatpush1.bf16.msra.mxu1 %v8612_v58  ;;  %v9189_v24 = vld [vmem:[#allocation110_spill] sm:$0xff]  ;;  %v9190_v58 = vld [vmem:[#allocation111_spill] sm:$0xff] }
 0x969   :  { %3522 = vmatprep.mubr.f32.mxu0 %v3313_v52  ;;  %3593 = vmatprep.mubr.f32.mxu1 %v3313_v52  ;;  %v3709_v52 = vld [vmem:[%s8177_s4 + $0x48] sm:$0xff] }
 0x96a   :  { %5866 = vmatprep.subr.bf16.mxu0 %v8613_v56  ;;  %5930 = vmatprep.subr.bf16.mxu1 %v8614_v12  ;;  %v9191_v56 = vld [vmem:[#allocation112_spill] sm:$0xff]  ;;  %v9192_v12 = vld [vmem:[#allocation113_spill] sm:$0xff] }
 0x96c   :  { %5868 = vmatpush1.bf16.msra.mxu0 %v8615_v29  ;;  %5932 = vmatpush1.bf16.msra.mxu1 %v8616_v47  ;;  %v9193_v29 = vld [vmem:[#allocation114_spill] sm:$0xff]  ;;  %v9194_v47 = vld [vmem:[#allocation115_spill] sm:$0xff] }
 0x96d   :  { %5870 = vmatprep.subr.bf16.mxu0 %v8617_v38  ;;  %5934 = vmatprep.subr.bf16.mxu1 %v8618_v20  ;;  %v9195_v38 = vld [vmem:[#allocation116_spill] sm:$0xff]  ;;  %v9196_v20 = vld [vmem:[#allocation117_spill] sm:$0xff] }
 0x970   :  { %5872 = vmatpush1.bf16.msra.mxu0 %v8619_v32  ;;  %5936 = vmatpush1.bf16.msra.mxu1 %v8620_v6  ;;  %v9197_v32 = vld [vmem:[#allocation118_spill] sm:$0xff]  ;;  %v9198_v6 = vld [vmem:[#allocation119_spill] sm:$0xff] }
 0x971   :  { %5874 = vmatprep.subr.bf16.mxu0 %v8621_v62  ;;  %5938 = vmatprep.subr.bf16.mxu1 %v8622_v39  ;;  %v9199_v62 = vld [vmem:[#allocation120_spill] sm:$0xff]  ;;  %v9200_v39 = vld [vmem:[#allocation121_spill] sm:$0xff] }
 0x974   :  { %5876 = vmatpush1.bf16.msra.mxu0 %v8623_v45  ;;  %5940 = vmatpush1.bf16.msra.mxu1 %v8624_v63  ;;  %v9201_v45 = vld [vmem:[#allocation122_spill] sm:$0xff]  ;;  %v9202_v63 = vld [vmem:[#allocation123_spill] sm:$0xff] }
 0x975   :  { %5878 = vmatprep.subr.bf16.mxu0 %v8625_v31  ;;  %5942 = vmatprep.subr.bf16.mxu1 %v8626_v19  ;;  %v9203_v31 = vld [vmem:[#allocation124_spill] sm:$0xff]  ;;  %v9204_v19 = vld [vmem:[#allocation125_spill] sm:$0xff] }
 0x978   :  { %5880 = vmatpush1.bf16.msra.mxu0 %v8627_v40  ;;  %5944 = vmatpush1.bf16.msra.mxu1 %v8628_v43  ;;  %v9205_v40 = vld [vmem:[#allocation126_spill] sm:$0xff]  ;;  %v9206_v43 = vld [vmem:[#allocation127_spill] sm:$0xff] }
 0x979   :  { %5882 = vmatprep.subr.bf16.mxu0 %v8629_v33  ;;  %5946 = vmatprep.subr.bf16.mxu1 %v8630_v3  ;;  %v9207_v33 = vld [vmem:[#allocation128_spill] sm:$0xff]  ;;  %v9208_v3 = vld [vmem:[#allocation129_spill] sm:$0xff] }
 0x97c   :  { %5884 = vmatpush1.bf16.msra.mxu0 %v8631_v53  ;;  %5948 = vmatpush1.bf16.msra.mxu1 %v8632_v44  ;;  %v9209_v53 = vld [vmem:[#allocation130_spill] sm:$0xff]  ;;  %v9210_v44 = vld [vmem:[#allocation131_spill] sm:$0xff] }
 0x97d   :  { %5886 = vmatprep.subr.bf16.mxu0 %v8633_v26  ;;  %5950 = vmatprep.subr.bf16.mxu1 %v8719_v7  ;;  %v9211_v26 = vld [vmem:[#allocation132_spill] sm:$0xff]  ;;  %v9212_v7 = vld [vmem:[#allocation133_spill] sm:$0xff] }
 0x980   :  { %5888 = vmatpush1.bf16.msra.mxu0 %v8720_v10  ;;  %5952 = vmatpush1.bf16.msra.mxu1 %v8721_v60  ;;  %v9213_v10 = vld [vmem:[#allocation134_spill] sm:$0xff]  ;;  %v9214_v60 = vld [vmem:[#allocation135_spill] sm:$0xff] }
 0x981   :  { %5890 = vmatprep.subr.bf16.mxu0 %v8722_v1  ;;  %5954 = vmatprep.subr.bf16.mxu1 %v8723_v9  ;;  %v3716_v1 = vld [vmem:[%s8177_s4 + $0x80] sm:$0xff]  ;;  %v3717_v9 = vld [vmem:[%s8177_s4 + $0x88] sm:$0xff] }
 0x984   :  { %5892 = vmatpush1.bf16.msra.mxu0 %v8724_v0  ;;  %5956 = vmatpush1.bf16.msra.mxu1 %v8725_v50  ;;  %v5989_v0 = vpack.c.bf16 %v3717_v9, %v3716_v1  ;;  %v3700_v50 = vld [vmem:[%s8177_s4] sm:$0xff] }
 0x985   :  { %5894 = vmatprep.subr.bf16.mxu0 %v8726_v13  ;;  %5958 = vmatprep.subr.bf16.mxu1 %v8727_v23  ;;  %v3701_v13 = vld [vmem:[%s8177_s4 + $0x8] sm:$0xff]  ;;  %v9216_v1 = vld [vmem:[#allocation137_spill] sm:$0xff] }
 0x986   :  { %v5991_v23 = vpack.c.bf16 %v3701_v13, %v3700_v50 }
 0x988   :  { %5896 = vmatpush1.bf16.msra.mxu0 %v8728_v16  ;;  %5960 = vmatpush1.bf16.msra.mxu1 %v8729_v25  ;;  %v3718_v16 = vld [vmem:[%s8177_s4 + $0x90] sm:$0xff]  ;;  %v3719_v25 = vld [vmem:[%s8177_s4 + $0x98] sm:$0xff] }
 0x989   :  { %5898 = vmatprep.subr.bf16.mxu0 %v8730_v17  ;;  %5962 = vmatprep.subr.bf16.mxu1 %v8731_v34  ;;  %v5993_v17 = vpack.c.bf16 %v3719_v25, %v3718_v16  ;;  %v3702_v34 = vld [vmem:[%s8177_s4 + $0x10] sm:$0xff] }
 0x98a   :  { %v5995_v18 = vpack.c.bf16 %v3703_v57, %v3702_v34  ;;  %v3687_v57 = vrot.slane %v7981_v59, 7 }
 0x98c   :  { %5900 = vmatpush1.bf16.msra.mxu0 %v9189_v24  ;;  %5964 = vmatpush1.bf16.msra.mxu1 %v9190_v58  ;;  %v3726_v24 = vld [vmem:[%s8177_s4 + $0xd0] sm:$0xff]  ;;  %v3727_v58 = vld [vmem:[%s8177_s4 + $0xd8] sm:$0xff] }
 0x98d   :  { %5902 = vmatprep.subr.bf16.mxu0 %v9191_v56  ;;  %5966 = vmatprep.subr.bf16.mxu1 %v9192_v12  ;;  %v3710_v56 = vld [vmem:[%s8177_s4 + $0x50] sm:$0xff]  ;;  %v6009_v12 = vpack.c.bf16 %v3727_v58, %v3726_v24 }
 0x990   :  { %5904 = vmatpush1.bf16.msra.mxu0 %v9193_v29  ;;  %5968 = vmatpush1.bf16.msra.mxu1 %v9194_v47  ;;  %v3711_v29 = vld [vmem:[%s8177_s4 + $0x58] sm:$0xff]  ;;  %v3728_v47 = vld [vmem:[%s8177_s4 + $0xe0] sm:$0xff] }
 0x991   :  { %5906 = vmatprep.subr.bf16.mxu0 %v9195_v38  ;;  %5970 = vmatprep.subr.bf16.mxu1 %v9196_v20  ;;  %v3729_v38 = vld [vmem:[%s8177_s4 + $0xe8] sm:$0xff]  ;;  %v6011_v20 = vpack.c.bf16 %v3711_v29, %v3710_v56 }
 0x994   :  { %5908 = vmatpush1.bf16.msra.mxu0 %v9197_v32  ;;  %5972 = vmatpush1.bf16.msra.mxu1 %v9198_v6  ;;  %v6013_v32 = vpack.c.bf16 %v3729_v38, %v3728_v47  ;;  %v3712_v6 = vld [vmem:[%s8177_s4 + $0x60] sm:$0xff] }
 0x995   :  { %5910 = vmatprep.subr.bf16.mxu0 %v9199_v62  ;;  %5974 = vmatprep.subr.bf16.mxu1 %v9200_v39  ;;  %v3713_v62 = vld [vmem:[%s8177_s4 + $0x68] sm:$0xff]  ;;  %v3730_v39 = vld [vmem:[%s8177_s4 + $0xf0] sm:$0xff] }
 0x998   :  { %5912 = vmatpush1.bf16.msra.mxu0 %v9201_v45  ;;  %5976 = vmatpush1.bf16.msra.mxu1 %v9202_v63  ;;  %v3731_v45 = vld [vmem:[%s8177_s4 + $0xf8] sm:$0xff]  ;;  %v6015_v63 = vpack.c.bf16 %v3713_v62, %v3712_v6 }
 0x999   :  { %5914 = vmatprep.subr.bf16.mxu0 %v9203_v31  ;;  %5978 = vmatprep.subr.bf16.mxu1 %v9204_v19  ;;  %v6017_v31 = vpack.c.bf16 %v3731_v45, %v3730_v39  ;;  %v3714_v19 = vld [vmem:[%s8177_s4 + $0x70] sm:$0xff] }
 0x99c   :  { %5916 = vmatpush1.bf16.msra.mxu0 %v9205_v40  ;;  %5980 = vmatpush1.bf16.msra.mxu1 %v9206_v43  ;;  %v3715_v40 = vld [vmem:[%s8177_s4 + $0x78] sm:$0xff] }
 0x99d   :  { %5918 = vmatprep.subr.bf16.mxu0 %v9207_v33  ;;  %5982 = vmatprep.subr.bf16.mxu1 %v9208_v3  ;;  %v6019_v43 = vpack.c.bf16 %v3715_v40, %v3714_v19 }
 0x9a0   :  { %5920 = vmatpush1.bf16.msra.mxu0 %v9209_v53  ;;  %5984 = vmatpush1.bf16.msra.mxu1 %v9210_v44 }
 0x9a1   :  { %5922 = vmatprep.subr.bf16.mxu0 %v9211_v26  ;;  %5986 = vmatprep.subr.bf16.mxu1 %v9212_v7 }
 0x9a4   :  { %5924 = vmatpush1.bf16.msra.mxu0 %v9213_v10  ;;  %5988 = vmatpush1.bf16.msra.mxu1 %v9214_v60  ;;  %v9215_v10 = vld [vmem:[#allocation136_spill] sm:$0xff] }
 0x9a5   :  { %5990 = vmatprep.subr.bf16.mxu0 %v5989_v0 }
 0x9a7   :  { %3523 = vmatmul.mubr.f32.vlgmr.msra.gmra.mrb[30].mxu0 %v7984_v54  ;;  %3594 = vmatmul.mubr.f32.vlgmr.msra.gmra.mrb[30].mxu1 %v7984_v54  ;;  %v6007_v54 = vpack.c.bf16 %v3709_v52, %v3708_v14 }
 0x9a8   :  { %5992 = vmatpush3.bf16.msra.mxu0 %v5991_v23 }
 0x9a9   :  { %5994 = vmatprep.subr.bf16.mxu0 %v5993_v17  ;;  %v3686_v17 = vrot.slane %v7978_v55, 7 }
 0x9ac   :  { %5996 = vmatpush3.bf16.msra.mxu0 %v5995_v18 }
 0x9ad   :  { %5998 = vmatprep.subr.bf16.mxu0 %v5997_v30 }
 0x9b0   :  { %6000 = vmatpush3.bf16.msra.mxu0 %v5999_v36 }
 0x9b1   :  { %6002 = vmatprep.subr.bf16.mxu0 %v6001_v48 }
 0x9b4   :  { %6004 = vmatpush3.bf16.msra.mxu0 %v6003_v61 }
 0x9b5   :  { %6006 = vmatprep.subr.bf16.mxu0 %v6005_v49 }
 0x9b8   :  { %6008 = vmatpush3.bf16.msra.mxu0 %v6007_v54 }
 0x9b9   :  { %6010 = vmatprep.subr.bf16.mxu0 %v6009_v12 }
 0x9bc   :  { %6012 = vmatpush3.bf16.msra.mxu0 %v6011_v20 }
 0x9bd   :  { %6014 = vmatprep.subr.bf16.mxu0 %v6013_v32 }
 0x9c0   :  { %6016 = vmatpush3.bf16.msra.mxu0 %v6015_v63 }
 0x9c1   :  { %6018 = vmatprep.subr.bf16.mxu0 %v6017_v31 }
 0x9c4   :  { %6020 = vmatpush3.bf16.msra.mxu0 %v6019_v43 }
 0xa3a   :  { %v3382_v33 = vpop.f32.mrb[28].mxu0  ;;  %v3453_v3 = vpop.f32.mrb[28].mxu1 }
 0xa3b   :  { %v3610_v53 = vrot.slane %v3453_v3, 1  ;;  %v3384_v44 = vpop.f32.mrb[29].mxu0  ;;  %v3455_v26 = vpop.f32.mrb[29].mxu1  ;;  %v3608_v30 = vrot.slane %v3382_v33, 1 }
 0xa3c   :  { %v3611_v7 = vrot.slane %v3455_v26, 1  ;;  %v3609_v4 = vrot.slane %v3384_v44, 1 }
 0xa3d   :  { %v3626_v60 = vadd.f32 %v3610_v53, %v9215_v10  ;;  %v3624_v28 = vadd.f32 %v3608_v30, %v7013_v2 }
 0xa3e   :  { %v3627_v9 = vadd.f32 %v3611_v7, %v9216_v1  ;;  %v3625_v36 = vadd.f32 %v3609_v4, %v7040_v42 }
 0xa3f   :  { %v3898_v0 = vmul.f32 -1.442695, %v3626_v60  ;;  %v3896_v61 = vmul.f32 -1.442695, %v3624_v28 }
 0xa40   :  { %v3899_v50 = vmul.f32 -1.442695, %v3627_v9  ;;  %v3897_v15 = vmul.f32 -1.442695, %v3625_v36 }
 0xa41   :  { %6285 = vpow2.f32 %v3898_v0 }
 0xa42   :  { %6287 = vpow2.f32 %v3899_v50 }
 0xa4b   :  { %v6286_v13 = vpop.eup %6285 }
 0xa4c   :  { %v3658_v23 = vadd.f32 1.0, %v6286_v13  ;;  %v6288_v16 = vpop.eup %6287 }
 0xa4d   :  { %v3659_v25 = vadd.f32 1.0, %v6288_v16 }
 0xa4e   :  { %6289 = vrcp.f32 %v3658_v23  ;;  %v3732_v23 = vld [vmem:[%s8178_s5] sm:$0x1] }
 0xa4f   :  { %6291 = vrcp.f32 %v3659_v25 }
 0xa50   :  { %6293 = vpow2.f32 %v3896_v61 }
 0xa58   :  { %v6290_v34 = vpop.eup %6289 }
 0xa59   :  { %v3690_v18 = vmul.f32 %v6290_v34, %v3686_v17  ;;  %v6292_v8 = vpop.eup %6291 }
 0xa5a   :  { %v3691_v37 = vmul.f32 %v6292_v8, %v3687_v57  ;;  %v6294_v24 = vpop.eup %6293 }
 0xa7a   :  { %v3524_v27 = vpop.f32.mrb[30].mxu0  ;;  %v3595_v51 = vpop.f32.mrb[30].mxu1 }
 0xa7b   :  { %v3612_v48 = vrot.slane %v3524_v27, 1  ;;  %v3526_v46 = vpop.f32.mrb[31].mxu0  ;;  %v3597_v11 = vpop.f32.mrb[31].mxu1  ;;  %v3614_v2 = vrot.slane %v3595_v51, 1 }
 0xa7c   :  { %v3613_v22 = vrot.slane %v3526_v46, 1  ;;  %v3615_v42 = vrot.slane %v3597_v11, 1 }
 0xa7d   :  { %v3628_v55 = vadd.f32 %v3612_v48, %v7060_v21  ;;  %v3630_v52 = vadd.f32 %v3614_v2, %v7072_v41 }
 0xa7e   :  { %v3629_v59 = vadd.f32 %v3613_v22, %v7062_v5  ;;  %v3631_v54 = vadd.f32 %v3615_v42, %v7074_v35  ;;  %v3656_v5 = vadd.f32 1.0, %v6294_v24 }
 0xa7f   :  { %v3900_v49 = vmul.f32 -1.442695, %v3628_v55  ;;  %v3902_v56 = vmul.f32 -1.442695, %v3630_v52 }
 0xa80   :  { %v3901_v14 = vmul.f32 -1.442695, %v3629_v59  ;;  %v3903_v47 = vmul.f32 -1.442695, %v3631_v54 }
 0xa81   :  { %6295 = vpow2.f32 %v3900_v49 }
 0xa82   :  { %6297 = vpow2.f32 %v3897_v15 }
 0xa83   :  { %6299 = vpow2.f32 %v3901_v14 }
 0xa8b   :  { %v6296_v58 = vpop.eup %6295 }
 0xa8c   :  { %v6298_v12 = vpop.eup %6297  ;;  %v3660_v21 = vadd.f32 1.0, %v6296_v58 }
 0xa8d   :  { %v6300_v29 = vpop.eup %6299  ;;  %v3657_v20 = vadd.f32 1.0, %v6298_v12 }
 0xa8e   :  { %6301 = vrcp.f32 %v3660_v21  ;;  %v3661_v38 = vadd.f32 1.0, %v6300_v29 }
 0xa8f   :  { %6303 = vpow2.f32 %v3902_v56 }
 0xa90   :  { %6305 = vrcp.f32 %v3661_v38 }
 0xa91   :  { %6307 = vpow2.f32 %v3903_v47 }
 0xa92   :  { %6309 = vrcp.f32 %v3656_v5 }
 0xa93   :  { %6311 = vrcp.f32 %v3657_v20 }
 0xa98   :  { %v6302_v32 = vpop.eup %6301 }
 0xa99   :  { %v6304_v41 = vpop.eup %6303  ;;  %v3680_v6 = vmul.f32 2.0, %v6302_v32 }
 0xa9a   :  { %v6306_v35 = vpop.eup %6305  ;;  %v3662_v31 = vadd.f32 1.0, %v6304_v41 }
 0xa9b   :  { %v6308_v62 = vpop.eup %6307  ;;  %v3904_v39 = vadd.f32 -1.0, %v3680_v6  ;;  %v3681_v45 = vmul.f32 2.0, %v6306_v35 }
 0xa9c   :  { %v6310_v63 = vpop.eup %6309  ;;  %v3663_v33 = vadd.f32 1.0, %v6308_v62  ;;  %6313 = vrcp.f32 %v3662_v31 }
 0xa9d   :  { %v3692_v19 = vmul.f32 %v6310_v63, %v3904_v39  ;;  %v3905_v40 = vadd.f32 -1.0, %v3681_v45  ;;  %v6312_v43 = vpop.eup %6311 }
 0xa9f   :  { %v3694_v3 = vadd.f32 %v3692_v19, %v3690_v18  ;;  %v3693_v53 = vmul.f32 %v6312_v43, %v3905_v40 }
 0xaa1   :  { %6315 = vtanh.f32 %v3694_v3  ;;  %v3695_v44 = vadd.f32 %v3693_v53, %v3691_v37 }
 0xaa2   :  { %6317 = vrcp.f32 %v3663_v33 }
 0xaa3   :  { %6319 = vtanh.f32 %v3695_v44 }
 0xaa6   :  { %v6314_v26 = vpop.eup %6313 }
 0xaab   :  { %v6316_v7 = vpop.eup %6315 }
 0xaac   :  { %v6318_v10 = vpop.eup %6317  ;;  %v3698_v60 = vmul.f32 %v6316_v7, %v6314_v26 }
 0xaad   :  { %v6320_v1 = vpop.eup %6319 }
 0xaae   :  { %v3699_v9 = vmul.f32 %v6320_v1, %v6318_v10  ;;  %v3735_v50 = vrot.slane %v3698_v60, 7 }
 0xab0   :  { %v3736_v0 = vrot.slane %v3699_v9, 7 }
 0xab2   :  { %3803 = vmatprep.mubr.f32.mxu0 %v3736_v0 }
 0xab3   :  { %3804 = vmatmul.mubr.f32.vlgmr.msra.gmra.mrb[32].mxu0 %v3735_v50 }
 0xb86   :  { %v3938_v13 = vpop.f32.mrb[32].mxu0 }
 0xb87   :  { %v3939_v16 = vpop.f32.mrb[33].mxu0 }
 0xb88   :  { %v3940_v25 = vadd.f32 %v3939_v16, %v3938_v13 }
 0xb8a   :  { %v3806_v17 = vadd.f32 %v3940_v25, %v3732_v23 }
 0xb8c   :  { %3810 = vst.msk [vmem:[#allocation5] sm:$0x1] %vm3809_vm0, %v3806_v17 }
 0xb8d   :  { %6354 = shalt.err (!%p6351_p12)
}
 0xb8e   :  { %s6355_s5 = scalar_lea.hbm %s8179_s6, 16 }
 0xb8f   :  { %p6356_p13 = scmp.ne.s32.totalorder %s8179_s6, %s6355_s5  ;;  %p6359_p0 = scmp.lt.u32.totalorder %s6355_s5, %s8179_s6 }
 0xb91   :  { %p6361_p1 = pnand %p6359_p0, %p6356_p13 }
 0xb93   :  { %6364 = shalt.err (!%p6361_p1)
}
 0xb94   :  { %3820 = dma.vmem_to_hbm [thread:$0]  %s3818_s29, 16, %s8179_s6, [#allocation4]  }
 0xb95   :  { %6367 = dma.done.wait [#allocation4], 16  }
 0xb96   :  { %6368 = vsyncadd [#allocation4], 4294967280 }
 0xb97   :  { %3824 = vsyncpa [#allocation3], 1 }
 0xb98   :  { %3825 = vsyncpa [#allocation4], 1 }

</bundles_post_ra>
